<compile_context>
chip_gen: v6e
topology: v6e:2x2x1
jax: 0.10.0
libtpu: 0.0.40
codegen_flags: <defaults>
</compile_context>

<pallas_src>
import functools

import jax
import jax.numpy as jnp
from jax import lax
from jax.experimental import pallas as pl
from jax.experimental.pallas import tpu as pltpu


N_HEADS = 8
N_LAYERS = 3
FORWARD_EXPANSION = 2
LN_EPS = 1e-5  # PyTorch nn.LayerNorm default


def _layernorm(y, g, b):
    mean = jnp.mean(y, axis=-1, keepdims=True)
    var = jnp.mean((y - mean) ** 2, axis=-1, keepdims=True)
    return (y - mean) * lax.rsqrt(var + LN_EPS) * g + b


def _nat_decoder_kernel(
    # inputs (per-batch x block, batch dim squeezed; weights are whole arrays)
    x_ref,                     # (P, E)
    w_pre_ref, b_pre_ref,      # (E, D), (1, D)
    w_len_ref, b_len_ref,      # (L, P), (L, 1)      (PyTorch (out, in) layout)
    w_qkv_ref, b_qkv_ref,      # (NL, D, 3D), (NL, 1, 3D)
    w_o_ref, b_o_ref,          # (NL, D, D),  (NL, 1, D)
    g0_ref, be0_ref,           # (NL, 1, D) x 2
    w1_ref, b1_ref,            # (NL, D, H),  (NL, 1, H)
    w2_ref, b2_ref,            # (NL, H, D),  (NL, 1, D)
    g1_ref, be1_ref,           # (NL, 1, D) x 2
    w_fc_ref, b_fc_ref,        # (D, V), (1, V)
    # output
    o_ref,                     # (L, V)
    # scratch
    qkv_scratch,               # VMEM (L, 3D) f32
    attn_scratch,              # VMEM (L, D)  f32
    *, n_layers, n_heads,
):
    f32 = jnp.float32
    D = w_pre_ref.shape[1]
    hd = D // n_heads
    scale = 1.0 / float(hd) ** 0.5

    # ---------------- stem: pre_fc, then length_fc over the pixel axis ----------------
    x = x_ref[...].astype(f32)                                                    # (P, E)
    h = jnp.dot(x, w_pre_ref[...], preferred_element_type=f32) + b_pre_ref[...]  # (P, D)
    # (B,P,D) -> transpose -> Linear(P,L) -> transpose  ==  contract the pixel axis:
    # h_len[l, d] = sum_p W_len[l, p] * h[p, d] + b_len[l]
    h = jnp.dot(w_len_ref[...], h, preferred_element_type=f32) + b_len_ref[...]  # (L, D)

    # ---------------- transformer layers (unrolled; weights VMEM-resident) ------------
    for l in range(n_layers):
        # fused QKV projection
        qkv = jnp.dot(h, w_qkv_ref[l], preferred_element_type=f32) + b_qkv_ref[l]  # (L, 3D)
        qkv_scratch[...] = qkv

        # per-head scaled dot-product attention; heads are contiguous lane slices of
        # the scratch; the concatenated head outputs are assembled in attn_scratch so
        # the output projection is one lane-dense (L, D) @ (D, D) matmul.
        for hh in range(n_heads):
            q_h = qkv_scratch[:, hh * hd:(hh + 1) * hd] * scale              # (L, hd)
            k_h = qkv_scratch[:, D + hh * hd:D + (hh + 1) * hd]              # (L, hd)
            v_h = qkv_scratch[:, 2 * D + hh * hd:2 * D + (hh + 1) * hd]      # (L, hd)
            s = lax.dot_general(q_h, k_h, (((1,), (1,)), ((), ())),
                                preferred_element_type=f32)                  # (L, L)
            s = s - jnp.max(s, axis=-1, keepdims=True)
            p = jnp.exp(s)
            p = p * pl.reciprocal(jnp.sum(p, axis=-1, keepdims=True), approx=True)
            o_h = jnp.dot(p, v_h, preferred_element_type=f32)                # (L, hd)
            attn_scratch[:, hh * hd:(hh + 1) * hd] = o_h

        attn = (jnp.dot(attn_scratch[...], w_o_ref[l], preferred_element_type=f32)
                + b_o_ref[l])                                                # (L, D)

        # SkipConnectionLN #0 (dropout p=0.0 -> identity)
        h = _layernorm(attn + h, g0_ref[l], be0_ref[l])

        # FFN: Linear -> ReLU -> Linear, then SkipConnectionLN #1
        f = jnp.maximum(
            jnp.dot(h, w1_ref[l], preferred_element_type=f32) + b1_ref[l], 0.0)
        f = jnp.dot(f, w2_ref[l], preferred_element_type=f32) + b2_ref[l]
        h = _layernorm(f + h, g1_ref[l], be1_ref[l])

    # ---------------- vocab projection ----------------
    out = jnp.dot(h, w_fc_ref[...], preferred_element_type=f32) + b_fc_ref[...]  # (L, V)
    o_ref[...] = out.astype(o_ref.dtype)


# --------------------------------------------------------------------------------------
# Wrapper
# --------------------------------------------------------------------------------------
_WEIGHT_NAMES = (
    "w_pre", "b_pre", "w_len", "b_len",
    "w_qkv", "b_qkv", "w_o", "b_o",
    "g0", "be0", "w1", "b1", "w2", "b2",
    "g1", "be1", "w_fc", "b_fc",
)


def nat_decoder_forward(x, params):
    B, P, E = x.shape
    D = params["w_pre"].shape[1]
    L = params["w_len"].shape[0]
    V = params["w_fc"].shape[1]
    n_layers = params["w_qkv"].shape[0]

    weights = [params[name] for name in _WEIGHT_NAMES]

    def full_spec(a):
        nd = a.ndim
        # whole array resident in VMEM; same block every grid step -> DMA'd once.
        return pl.BlockSpec(tuple(a.shape), lambda b, _nd=nd: (0,) * _nd)

    kernel = functools.partial(_nat_decoder_kernel,
                               n_layers=n_layers, n_heads=N_HEADS)

    out = pl.pallas_call(
        kernel,
        out_shape=jax.ShapeDtypeStruct((B, L, V), x.dtype),
        grid=(B,),
        in_specs=[pl.BlockSpec((None, P, E), lambda b: (b, 0, 0))]
                 + [full_spec(w) for w in weights],
        out_specs=pl.BlockSpec((None, L, V), lambda b: (b, 0, 0)),
        scratch_shapes=[
            pltpu.VMEM((L, 3 * D), jnp.float32),   # fused QKV activations
            pltpu.VMEM((L, D), jnp.float32),       # concatenated head outputs
        ],
        compiler_params=pltpu.CompilerParams(
            dimension_semantics=("parallel",)),     # batch axis -> v7x dual-TC friendly
    )(x, *weights)
    return out


# --------------------------------------------------------------------------------------
# Deterministic parameter init (packed layout: layers stacked, QKV fused, 2-D biases)
# --------------------------------------------------------------------------------------
def init_params(key, encoder_dim, decoder_dim, vocab_size, max_dec_len, num_pixels,
                n_layers=N_LAYERS, forward_expansion=FORWARD_EXPANSION,
                dtype=jnp.float32):
    def nxt():
        nonlocal key
        key, sub = jax.random.split(key)
        return sub

    def w(shape, scale=0.02):
        return (scale * jax.random.normal(nxt(), shape)).astype(dtype)

    def zeros(shape):
        return jnp.zeros(shape, dtype)

    def ones(shape):
        return jnp.ones(shape, dtype)

    D = decoder_dim
    H = D * forward_expansion
    return dict(
        # stem
        w_pre=w((encoder_dim, D)), b_pre=zeros((1, D)),
        w_len=w((max_dec_len, num_pixels)), b_len=zeros((max_dec_len, 1)),
        # transformer layers (stacked over leading layer axis; Q|K|V concatenated)
        w_qkv=w((n_layers, D, 3 * D)), b_qkv=zeros((n_layers, 1, 3 * D)),
        w_o=w((n_layers, D, D)), b_o=zeros((n_layers, 1, D)),
        g0=ones((n_layers, 1, D)), be0=zeros((n_layers, 1, D)),
        w1=w((n_layers, D, H)), b1=zeros((n_layers, 1, H)),
        w2=w((n_layers, H, D)), b2=zeros((n_layers, 1, D)),
        g1=ones((n_layers, 1, D)), be1=zeros((n_layers, 1, D)),
        # vocab head
        w_fc=w((D, vocab_size)), b_fc=zeros((1, vocab_size)),
    )


if __name__ == "__main__":
    B = 2
    num_pixels = 16
    encoder_dim = 32
    decoder_dim = 32
    max_dec_len = 8
    vocab_size = 40

    key = jax.random.PRNGKey(0)
    key, xkey = jax.random.split(key)
    x = jax.random.normal(xkey, (B, num_pixels, encoder_dim), dtype=jnp.float32)

    params = init_params(key, encoder_dim, decoder_dim, vocab_size,
                         max_dec_len, num_pixels)

    fwd = jax.jit(nat_decoder_forward)
    out = jax.block_until_ready(fwd(x, params))

    assert out.shape == (B, max_dec_len, vocab_size), out.shape
    assert bool(jnp.all(jnp.isfinite(out)))
    print("KERNEL_OK")
</pallas_src>

<mosaic_0001>
module attributes {stable_mosaic.version = 11 : i64} {
  func.func @_nat_decoder_kernel(%arg0: i32, %arg1: memref<1x16x32xf32, #tpu.memory_space<vmem>>, %arg2: memref<32x32xf32, #tpu.memory_space<vmem>>, %arg3: memref<1x32xf32, #tpu.memory_space<vmem>>, %arg4: memref<8x16xf32, #tpu.memory_space<vmem>>, %arg5: memref<8x1xf32, #tpu.memory_space<vmem>>, %arg6: memref<3x32x96xf32, #tpu.memory_space<vmem>>, %arg7: memref<3x1x96xf32, #tpu.memory_space<vmem>>, %arg8: memref<3x32x32xf32, #tpu.memory_space<vmem>>, %arg9: memref<3x1x32xf32, #tpu.memory_space<vmem>>, %arg10: memref<3x1x32xf32, #tpu.memory_space<vmem>>, %arg11: memref<3x1x32xf32, #tpu.memory_space<vmem>>, %arg12: memref<3x32x64xf32, #tpu.memory_space<vmem>>, %arg13: memref<3x1x64xf32, #tpu.memory_space<vmem>>, %arg14: memref<3x64x32xf32, #tpu.memory_space<vmem>>, %arg15: memref<3x1x32xf32, #tpu.memory_space<vmem>>, %arg16: memref<3x1x32xf32, #tpu.memory_space<vmem>>, %arg17: memref<3x1x32xf32, #tpu.memory_space<vmem>>, %arg18: memref<32x40xf32, #tpu.memory_space<vmem>>, %arg19: memref<1x40xf32, #tpu.memory_space<vmem>>, %arg20: memref<1x8x40xf32, #tpu.memory_space<vmem>>, %arg21: memref<8x96xf32, #tpu.memory_space<vmem>>, %arg22: memref<8x32xf32, #tpu.memory_space<vmem>>) attributes {dimension_semantics = [#tpu.dimension_semantics<parallel>], iteration_bounds = array<i64: 2>, scalar_prefetch = 0 : i64, scratch_operands = 2 : i64, tpu.core_type = #tpu.core_type<tc>, window_params = [{transform_indices = @transform_0, window_bounds = array<i64: 1, 16, 32>}, {pipeline_mode = #tpu.pipeline_mode<synchronous>, transform_indices = @transform_1, window_bounds = array<i64: 32, 32>}, {pipeline_mode = #tpu.pipeline_mode<synchronous>, transform_indices = @transform_2, window_bounds = array<i64: 1, 32>}, {pipeline_mode = #tpu.pipeline_mode<synchronous>, transform_indices = @transform_3, window_bounds = array<i64: 8, 16>}, {pipeline_mode = #tpu.pipeline_mode<synchronous>, transform_indices = @transform_4, window_bounds = array<i64: 8, 1>}, {pipeline_mode = #tpu.pipeline_mode<synchronous>, transform_indices = @transform_5, window_bounds = array<i64: 3, 32, 96>}, {pipeline_mode = #tpu.pipeline_mode<synchronous>, transform_indices = @transform_6, window_bounds = array<i64: 3, 1, 96>}, {pipeline_mode = #tpu.pipeline_mode<synchronous>, transform_indices = @transform_7, window_bounds = array<i64: 3, 32, 32>}, {pipeline_mode = #tpu.pipeline_mode<synchronous>, transform_indices = @transform_8, window_bounds = array<i64: 3, 1, 32>}, {pipeline_mode = #tpu.pipeline_mode<synchronous>, transform_indices = @transform_9, window_bounds = array<i64: 3, 1, 32>}, {pipeline_mode = #tpu.pipeline_mode<synchronous>, transform_indices = @transform_10, window_bounds = array<i64: 3, 1, 32>}, {pipeline_mode = #tpu.pipeline_mode<synchronous>, transform_indices = @transform_11, window_bounds = array<i64: 3, 32, 64>}, {pipeline_mode = #tpu.pipeline_mode<synchronous>, transform_indices = @transform_12, window_bounds = array<i64: 3, 1, 64>}, {pipeline_mode = #tpu.pipeline_mode<synchronous>, transform_indices = @transform_13, window_bounds = array<i64: 3, 64, 32>}, {pipeline_mode = #tpu.pipeline_mode<synchronous>, transform_indices = @transform_14, window_bounds = array<i64: 3, 1, 32>}, {pipeline_mode = #tpu.pipeline_mode<synchronous>, transform_indices = @transform_15, window_bounds = array<i64: 3, 1, 32>}, {pipeline_mode = #tpu.pipeline_mode<synchronous>, transform_indices = @transform_16, window_bounds = array<i64: 3, 1, 32>}, {pipeline_mode = #tpu.pipeline_mode<synchronous>, transform_indices = @transform_17, window_bounds = array<i64: 32, 40>}, {pipeline_mode = #tpu.pipeline_mode<synchronous>, transform_indices = @transform_18, window_bounds = array<i64: 1, 40>}, {transform_indices = @transform_19, window_bounds = array<i64: 1, 8, 40>}]} {
    %c0 = arith.constant 0 : index
    %c0_0 = arith.constant 0 : index
    %c0_1 = arith.constant 0 : index
    %0 = vector.load %arg1[%c0, %c0_0, %c0_1] : memref<1x16x32xf32, #tpu.memory_space<vmem>>, vector<1x16x32xf32>
    %1 = vector.shape_cast %0 : vector<1x16x32xf32> to vector<16x32xf32>
    %c0_2 = arith.constant 0 : index
    %c0_3 = arith.constant 0 : index
    %2 = vector.load %arg2[%c0_2, %c0_3] : memref<32x32xf32, #tpu.memory_space<vmem>>, vector<32x32xf32>
    %cst = arith.constant dense<0.000000e+00> : vector<16x32xf32>
    %3 = tpu.matmul %1, %2, %cst {dimension_numbers = #tpu.dot_dimension_numbers<[1], [0], [0], [1], [0, 0, 1, 1], [], []>} : vector<16x32xf32>, vector<32x32xf32>, vector<16x32xf32> -> vector<16x32xf32>
    %c0_4 = arith.constant 0 : index
    %c0_5 = arith.constant 0 : index
    %4 = vector.load %arg3[%c0_4, %c0_5] : memref<1x32xf32, #tpu.memory_space<vmem>>, vector<1x32xf32>
    %5 = vector.broadcast %4 : vector<1x32xf32> to vector<16x32xf32>
    %6 = arith.addf %3, %5 : vector<16x32xf32>
    %c0_6 = arith.constant 0 : index
    %c0_7 = arith.constant 0 : index
    %7 = vector.load %arg4[%c0_6, %c0_7] : memref<8x16xf32, #tpu.memory_space<vmem>>, vector<8x16xf32>
    %cst_8 = arith.constant dense<0.000000e+00> : vector<8x32xf32>
    %8 = tpu.matmul %7, %6, %cst_8 {dimension_numbers = #tpu.dot_dimension_numbers<[1], [0], [0], [1], [0, 0, 1, 1], [], []>} : vector<8x16xf32>, vector<16x32xf32>, vector<8x32xf32> -> vector<8x32xf32>
    %c0_9 = arith.constant 0 : index
    %c0_10 = arith.constant 0 : index
    %9 = vector.load %arg5[%c0_9, %c0_10] : memref<8x1xf32, #tpu.memory_space<vmem>>, vector<8x1xf32>
    %10 = vector.broadcast %9 : vector<8x1xf32> to vector<8x32xf32>
    %11 = arith.addf %8, %10 : vector<8x32xf32>
    %c0_11 = arith.constant 0 : index
    %c0_12 = arith.constant 0 : index
    %c0_13 = arith.constant 0 : index
    %12 = vector.load %arg6[%c0_11, %c0_12, %c0_13] : memref<3x32x96xf32, #tpu.memory_space<vmem>>, vector<1x32x96xf32>
    %13 = vector.shape_cast %12 : vector<1x32x96xf32> to vector<32x96xf32>
    %cst_14 = arith.constant dense<0.000000e+00> : vector<8x96xf32>
    %14 = tpu.matmul %11, %13, %cst_14 {dimension_numbers = #tpu.dot_dimension_numbers<[1], [0], [0], [1], [0, 0, 1, 1], [], []>} : vector<8x32xf32>, vector<32x96xf32>, vector<8x96xf32> -> vector<8x96xf32>
    %c0_15 = arith.constant 0 : index
    %c0_16 = arith.constant 0 : index
    %c0_17 = arith.constant 0 : index
    %15 = vector.load %arg7[%c0_15, %c0_16, %c0_17] : memref<3x1x96xf32, #tpu.memory_space<vmem>>, vector<1x1x96xf32>
    %16 = vector.shape_cast %15 : vector<1x1x96xf32> to vector<1x96xf32>
    %17 = vector.broadcast %16 : vector<1x96xf32> to vector<8x96xf32>
    %18 = arith.addf %14, %17 : vector<8x96xf32>
    %c0_18 = arith.constant 0 : index
    %c0_19 = arith.constant 0 : index
    %19 = vector.load %arg21[%c0_18, %c0_19] : memref<8x96xf32, #tpu.memory_space<vmem>>, vector<8x96xf32>
    tpu.vector_store %arg21[%c0_18, %c0_19], %18 {strides = array<i32>} : memref<8x96xf32, #tpu.memory_space<vmem>>, vector<8x96xf32>,
    %c0_20 = arith.constant 0 : index
    %c0_21 = arith.constant 0 : index
    %20 = vector.load %arg21[%c0_20, %c0_21] : memref<8x96xf32, #tpu.memory_space<vmem>>, vector<8x4xf32>
    %cst_22 = arith.constant 5.000000e-01 : f32
    %21 = vector.broadcast %cst_22 : f32 to vector<8x4xf32>
    %22 = arith.mulf %20, %21 : vector<8x4xf32>
    %c0_23 = arith.constant 0 : index
    %c32 = arith.constant 32 : index
    %23 = vector.load %arg21[%c0_23, %c32] : memref<8x96xf32, #tpu.memory_space<vmem>>, vector<8x4xf32>
    %c0_24 = arith.constant 0 : index
    %c64 = arith.constant 64 : index
    %24 = vector.load %arg21[%c0_24, %c64] : memref<8x96xf32, #tpu.memory_space<vmem>>, vector<8x4xf32>
    %cst_25 = arith.constant dense<0.000000e+00> : vector<8x8xf32>
    %25 = tpu.matmul %22, %23, %cst_25 {dimension_numbers = #tpu.dot_dimension_numbers<[1], [1], [0], [0], [0, 0, 1, 0], [], []>} : vector<8x4xf32>, vector<8x4xf32>, vector<8x8xf32> -> vector<8x8xf32>
    %cst_26 = arith.constant dense<0xFF800000> : vector<8xf32>
    %26 = vector.multi_reduction <maximumf>, %25, %cst_26 [1] : vector<8x8xf32> to vector<8xf32>
    %27 = vector.shape_cast %26 : vector<8xf32> to vector<8x1xf32>
    %28 = vector.broadcast %27 : vector<8x1xf32> to vector<8x8xf32>
    %29 = arith.subf %25, %28 : vector<8x8xf32>
    %30 = math.exp %29 : vector<8x8xf32>
    %cst_27 = arith.constant dense<0.000000e+00> : vector<8xf32>
    %31 = vector.multi_reduction <add>, %30, %cst_27 [1] : vector<8x8xf32> to vector<8xf32>
    %32 = vector.shape_cast %31 : vector<8xf32> to vector<8x1xf32>
    %33 = tpu.reciprocal %32 {approx = true} : vector<8x1xf32> -> vector<8x1xf32>
    %34 = vector.broadcast %33 : vector<8x1xf32> to vector<8x8xf32>
    %35 = arith.mulf %30, %34 : vector<8x8xf32>
    %cst_28 = arith.constant dense<0.000000e+00> : vector<8x4xf32>
    %36 = tpu.matmul %35, %24, %cst_28 {dimension_numbers = #tpu.dot_dimension_numbers<[1], [0], [0], [1], [0, 0, 1, 1], [], []>} : vector<8x8xf32>, vector<8x4xf32>, vector<8x4xf32> -> vector<8x4xf32>
    %c0_29 = arith.constant 0 : index
    %c0_30 = arith.constant 0 : index
    %37 = vector.load %arg22[%c0_29, %c0_30] : memref<8x32xf32, #tpu.memory_space<vmem>>, vector<8x4xf32>
    tpu.vector_store %arg22[%c0_29, %c0_30], %36 {strides = array<i32>} : memref<8x32xf32, #tpu.memory_space<vmem>>, vector<8x4xf32>,
    %c0_31 = arith.constant 0 : index
    %c4 = arith.constant 4 : index
    %38 = vector.load %arg21[%c0_31, %c4] : memref<8x96xf32, #tpu.memory_space<vmem>>, vector<8x4xf32>
    %cst_32 = arith.constant 5.000000e-01 : f32
    %39 = vector.broadcast %cst_32 : f32 to vector<8x4xf32>
    %40 = arith.mulf %38, %39 : vector<8x4xf32>
    %c0_33 = arith.constant 0 : index
    %c36 = arith.constant 36 : index
    %41 = vector.load %arg21[%c0_33, %c36] : memref<8x96xf32, #tpu.memory_space<vmem>>, vector<8x4xf32>
    %c0_34 = arith.constant 0 : index
    %c68 = arith.constant 68 : index
    %42 = vector.load %arg21[%c0_34, %c68] : memref<8x96xf32, #tpu.memory_space<vmem>>, vector<8x4xf32>
    %cst_35 = arith.constant dense<0.000000e+00> : vector<8x8xf32>
    %43 = tpu.matmul %40, %41, %cst_35 {dimension_numbers = #tpu.dot_dimension_numbers<[1], [1], [0], [0], [0, 0, 1, 0], [], []>} : vector<8x4xf32>, vector<8x4xf32>, vector<8x8xf32> -> vector<8x8xf32>
    %cst_36 = arith.constant dense<0xFF800000> : vector<8xf32>
    %44 = vector.multi_reduction <maximumf>, %43, %cst_36 [1] : vector<8x8xf32> to vector<8xf32>
    %45 = vector.shape_cast %44 : vector<8xf32> to vector<8x1xf32>
    %46 = vector.broadcast %45 : vector<8x1xf32> to vector<8x8xf32>
    %47 = arith.subf %43, %46 : vector<8x8xf32>
    %48 = math.exp %47 : vector<8x8xf32>
    %cst_37 = arith.constant dense<0.000000e+00> : vector<8xf32>
    %49 = vector.multi_reduction <add>, %48, %cst_37 [1] : vector<8x8xf32> to vector<8xf32>
    %50 = vector.shape_cast %49 : vector<8xf32> to vector<8x1xf32>
    %51 = tpu.reciprocal %50 {approx = true} : vector<8x1xf32> -> vector<8x1xf32>
    %52 = vector.broadcast %51 : vector<8x1xf32> to vector<8x8xf32>
    %53 = arith.mulf %48, %52 : vector<8x8xf32>
    %cst_38 = arith.constant dense<0.000000e+00> : vector<8x4xf32>
    %54 = tpu.matmul %53, %42, %cst_38 {dimension_numbers = #tpu.dot_dimension_numbers<[1], [0], [0], [1], [0, 0, 1, 1], [], []>} : vector<8x8xf32>, vector<8x4xf32>, vector<8x4xf32> -> vector<8x4xf32>
    %c0_39 = arith.constant 0 : index
    %c4_40 = arith.constant 4 : index
    %55 = vector.load %arg22[%c0_39, %c4_40] : memref<8x32xf32, #tpu.memory_space<vmem>>, vector<8x4xf32>
    tpu.vector_store %arg22[%c0_39, %c4_40], %54 {strides = array<i32>} : memref<8x32xf32, #tpu.memory_space<vmem>>, vector<8x4xf32>,
    %c0_41 = arith.constant 0 : index
    %c8 = arith.constant 8 : index
    %56 = vector.load %arg21[%c0_41, %c8] : memref<8x96xf32, #tpu.memory_space<vmem>>, vector<8x4xf32>
    %cst_42 = arith.constant 5.000000e-01 : f32
    %57 = vector.broadcast %cst_42 : f32 to vector<8x4xf32>
    %58 = arith.mulf %56, %57 : vector<8x4xf32>
    %c0_43 = arith.constant 0 : index
    %c40 = arith.constant 40 : index
    %59 = vector.load %arg21[%c0_43, %c40] : memref<8x96xf32, #tpu.memory_space<vmem>>, vector<8x4xf32>
    %c0_44 = arith.constant 0 : index
    %c72 = arith.constant 72 : index
    %60 = vector.load %arg21[%c0_44, %c72] : memref<8x96xf32, #tpu.memory_space<vmem>>, vector<8x4xf32>
    %cst_45 = arith.constant dense<0.000000e+00> : vector<8x8xf32>
    %61 = tpu.matmul %58, %59, %cst_45 {dimension_numbers = #tpu.dot_dimension_numbers<[1], [1], [0], [0], [0, 0, 1, 0], [], []>} : vector<8x4xf32>, vector<8x4xf32>, vector<8x8xf32> -> vector<8x8xf32>
    %cst_46 = arith.constant dense<0xFF800000> : vector<8xf32>
    %62 = vector.multi_reduction <maximumf>, %61, %cst_46 [1] : vector<8x8xf32> to vector<8xf32>
    %63 = vector.shape_cast %62 : vector<8xf32> to vector<8x1xf32>
    %64 = vector.broadcast %63 : vector<8x1xf32> to vector<8x8xf32>
    %65 = arith.subf %61, %64 : vector<8x8xf32>
    %66 = math.exp %65 : vector<8x8xf32>
    %cst_47 = arith.constant dense<0.000000e+00> : vector<8xf32>
    %67 = vector.multi_reduction <add>, %66, %cst_47 [1] : vector<8x8xf32> to vector<8xf32>
    %68 = vector.shape_cast %67 : vector<8xf32> to vector<8x1xf32>
    %69 = tpu.reciprocal %68 {approx = true} : vector<8x1xf32> -> vector<8x1xf32>
    %70 = vector.broadcast %69 : vector<8x1xf32> to vector<8x8xf32>
    %71 = arith.mulf %66, %70 : vector<8x8xf32>
    %cst_48 = arith.constant dense<0.000000e+00> : vector<8x4xf32>
    %72 = tpu.matmul %71, %60, %cst_48 {dimension_numbers = #tpu.dot_dimension_numbers<[1], [0], [0], [1], [0, 0, 1, 1], [], []>} : vector<8x8xf32>, vector<8x4xf32>, vector<8x4xf32> -> vector<8x4xf32>
    %c0_49 = arith.constant 0 : index
    %c8_50 = arith.constant 8 : index
    %73 = vector.load %arg22[%c0_49, %c8_50] : memref<8x32xf32, #tpu.memory_space<vmem>>, vector<8x4xf32>
    tpu.vector_store %arg22[%c0_49, %c8_50], %72 {strides = array<i32>} : memref<8x32xf32, #tpu.memory_space<vmem>>, vector<8x4xf32>,
    %c0_51 = arith.constant 0 : index
    %c12 = arith.constant 12 : index
    %74 = vector.load %arg21[%c0_51, %c12] : memref<8x96xf32, #tpu.memory_space<vmem>>, vector<8x4xf32>
    %cst_52 = arith.constant 5.000000e-01 : f32
    %75 = vector.broadcast %cst_52 : f32 to vector<8x4xf32>
    %76 = arith.mulf %74, %75 : vector<8x4xf32>
    %c0_53 = arith.constant 0 : index
    %c44 = arith.constant 44 : index
    %77 = vector.load %arg21[%c0_53, %c44] : memref<8x96xf32, #tpu.memory_space<vmem>>, vector<8x4xf32>
    %c0_54 = arith.constant 0 : index
    %c76 = arith.constant 76 : index
    %78 = vector.load %arg21[%c0_54, %c76] : memref<8x96xf32, #tpu.memory_space<vmem>>, vector<8x4xf32>
    %cst_55 = arith.constant dense<0.000000e+00> : vector<8x8xf32>
    %79 = tpu.matmul %76, %77, %cst_55 {dimension_numbers = #tpu.dot_dimension_numbers<[1], [1], [0], [0], [0, 0, 1, 0], [], []>} : vector<8x4xf32>, vector<8x4xf32>, vector<8x8xf32> -> vector<8x8xf32>
    %cst_56 = arith.constant dense<0xFF800000> : vector<8xf32>
    %80 = vector.multi_reduction <maximumf>, %79, %cst_56 [1] : vector<8x8xf32> to vector<8xf32>
    %81 = vector.shape_cast %80 : vector<8xf32> to vector<8x1xf32>
    %82 = vector.broadcast %81 : vector<8x1xf32> to vector<8x8xf32>
    %83 = arith.subf %79, %82 : vector<8x8xf32>
    %84 = math.exp %83 : vector<8x8xf32>
    %cst_57 = arith.constant dense<0.000000e+00> : vector<8xf32>
    %85 = vector.multi_reduction <add>, %84, %cst_57 [1] : vector<8x8xf32> to vector<8xf32>
    %86 = vector.shape_cast %85 : vector<8xf32> to vector<8x1xf32>
    %87 = tpu.reciprocal %86 {approx = true} : vector<8x1xf32> -> vector<8x1xf32>
    %88 = vector.broadcast %87 : vector<8x1xf32> to vector<8x8xf32>
    %89 = arith.mulf %84, %88 : vector<8x8xf32>
    %cst_58 = arith.constant dense<0.000000e+00> : vector<8x4xf32>
    %90 = tpu.matmul %89, %78, %cst_58 {dimension_numbers = #tpu.dot_dimension_numbers<[1], [0], [0], [1], [0, 0, 1, 1], [], []>} : vector<8x8xf32>, vector<8x4xf32>, vector<8x4xf32> -> vector<8x4xf32>
    %c0_59 = arith.constant 0 : index
    %c12_60 = arith.constant 12 : index
    %91 = vector.load %arg22[%c0_59, %c12_60] : memref<8x32xf32, #tpu.memory_space<vmem>>, vector<8x4xf32>
    tpu.vector_store %arg22[%c0_59, %c12_60], %90 {strides = array<i32>} : memref<8x32xf32, #tpu.memory_space<vmem>>, vector<8x4xf32>,
    %c0_61 = arith.constant 0 : index
    %c16 = arith.constant 16 : index
    %92 = vector.load %arg21[%c0_61, %c16] : memref<8x96xf32, #tpu.memory_space<vmem>>, vector<8x4xf32>
    %cst_62 = arith.constant 5.000000e-01 : f32
    %93 = vector.broadcast %cst_62 : f32 to vector<8x4xf32>
    %94 = arith.mulf %92, %93 : vector<8x4xf32>
    %c0_63 = arith.constant 0 : index
    %c48 = arith.constant 48 : index
    %95 = vector.load %arg21[%c0_63, %c48] : memref<8x96xf32, #tpu.memory_space<vmem>>, vector<8x4xf32>
    %c0_64 = arith.constant 0 : index
    %c80 = arith.constant 80 : index
    %96 = vector.load %arg21[%c0_64, %c80] : memref<8x96xf32, #tpu.memory_space<vmem>>, vector<8x4xf32>
    %cst_65 = arith.constant dense<0.000000e+00> : vector<8x8xf32>
    %97 = tpu.matmul %94, %95, %cst_65 {dimension_numbers = #tpu.dot_dimension_numbers<[1], [1], [0], [0], [0, 0, 1, 0], [], []>} : vector<8x4xf32>, vector<8x4xf32>, vector<8x8xf32> -> vector<8x8xf32>
    %cst_66 = arith.constant dense<0xFF800000> : vector<8xf32>
    %98 = vector.multi_reduction <maximumf>, %97, %cst_66 [1] : vector<8x8xf32> to vector<8xf32>
    %99 = vector.shape_cast %98 : vector<8xf32> to vector<8x1xf32>
    %100 = vector.broadcast %99 : vector<8x1xf32> to vector<8x8xf32>
    %101 = arith.subf %97, %100 : vector<8x8xf32>
    %102 = math.exp %101 : vector<8x8xf32>
    %cst_67 = arith.constant dense<0.000000e+00> : vector<8xf32>
    %103 = vector.multi_reduction <add>, %102, %cst_67 [1] : vector<8x8xf32> to vector<8xf32>
    %104 = vector.shape_cast %103 : vector<8xf32> to vector<8x1xf32>
    %105 = tpu.reciprocal %104 {approx = true} : vector<8x1xf32> -> vector<8x1xf32>
    %106 = vector.broadcast %105 : vector<8x1xf32> to vector<8x8xf32>
    %107 = arith.mulf %102, %106 : vector<8x8xf32>
    %cst_68 = arith.constant dense<0.000000e+00> : vector<8x4xf32>
    %108 = tpu.matmul %107, %96, %cst_68 {dimension_numbers = #tpu.dot_dimension_numbers<[1], [0], [0], [1], [0, 0, 1, 1], [], []>} : vector<8x8xf32>, vector<8x4xf32>, vector<8x4xf32> -> vector<8x4xf32>
    %c0_69 = arith.constant 0 : index
    %c16_70 = arith.constant 16 : index
    %109 = vector.load %arg22[%c0_69, %c16_70] : memref<8x32xf32, #tpu.memory_space<vmem>>, vector<8x4xf32>
    tpu.vector_store %arg22[%c0_69, %c16_70], %108 {strides = array<i32>} : memref<8x32xf32, #tpu.memory_space<vmem>>, vector<8x4xf32>,
    %c0_71 = arith.constant 0 : index
    %c20 = arith.constant 20 : index
    %110 = vector.load %arg21[%c0_71, %c20] : memref<8x96xf32, #tpu.memory_space<vmem>>, vector<8x4xf32>
    %cst_72 = arith.constant 5.000000e-01 : f32
    %111 = vector.broadcast %cst_72 : f32 to vector<8x4xf32>
    %112 = arith.mulf %110, %111 : vector<8x4xf32>
    %c0_73 = arith.constant 0 : index
    %c52 = arith.constant 52 : index
    %113 = vector.load %arg21[%c0_73, %c52] : memref<8x96xf32, #tpu.memory_space<vmem>>, vector<8x4xf32>
    %c0_74 = arith.constant 0 : index
    %c84 = arith.constant 84 : index
    %114 = vector.load %arg21[%c0_74, %c84] : memref<8x96xf32, #tpu.memory_space<vmem>>, vector<8x4xf32>
    %cst_75 = arith.constant dense<0.000000e+00> : vector<8x8xf32>
    %115 = tpu.matmul %112, %113, %cst_75 {dimension_numbers = #tpu.dot_dimension_numbers<[1], [1], [0], [0], [0, 0, 1, 0], [], []>} : vector<8x4xf32>, vector<8x4xf32>, vector<8x8xf32> -> vector<8x8xf32>
    %cst_76 = arith.constant dense<0xFF800000> : vector<8xf32>
    %116 = vector.multi_reduction <maximumf>, %115, %cst_76 [1] : vector<8x8xf32> to vector<8xf32>
    %117 = vector.shape_cast %116 : vector<8xf32> to vector<8x1xf32>
    %118 = vector.broadcast %117 : vector<8x1xf32> to vector<8x8xf32>
    %119 = arith.subf %115, %118 : vector<8x8xf32>
    %120 = math.exp %119 : vector<8x8xf32>
    %cst_77 = arith.constant dense<0.000000e+00> : vector<8xf32>
    %121 = vector.multi_reduction <add>, %120, %cst_77 [1] : vector<8x8xf32> to vector<8xf32>
    %122 = vector.shape_cast %121 : vector<8xf32> to vector<8x1xf32>
    %123 = tpu.reciprocal %122 {approx = true} : vector<8x1xf32> -> vector<8x1xf32>
    %124 = vector.broadcast %123 : vector<8x1xf32> to vector<8x8xf32>
    %125 = arith.mulf %120, %124 : vector<8x8xf32>
    %cst_78 = arith.constant dense<0.000000e+00> : vector<8x4xf32>
    %126 = tpu.matmul %125, %114, %cst_78 {dimension_numbers = #tpu.dot_dimension_numbers<[1], [0], [0], [1], [0, 0, 1, 1], [], []>} : vector<8x8xf32>, vector<8x4xf32>, vector<8x4xf32> -> vector<8x4xf32>
    %c0_79 = arith.constant 0 : index
    %c20_80 = arith.constant 20 : index
    %127 = vector.load %arg22[%c0_79, %c20_80] : memref<8x32xf32, #tpu.memory_space<vmem>>, vector<8x4xf32>
    tpu.vector_store %arg22[%c0_79, %c20_80], %126 {strides = array<i32>} : memref<8x32xf32, #tpu.memory_space<vmem>>, vector<8x4xf32>,
    %c0_81 = arith.constant 0 : index
    %c24 = arith.constant 24 : index
    %128 = vector.load %arg21[%c0_81, %c24] : memref<8x96xf32, #tpu.memory_space<vmem>>, vector<8x4xf32>
    %cst_82 = arith.constant 5.000000e-01 : f32
    %129 = vector.broadcast %cst_82 : f32 to vector<8x4xf32>
    %130 = arith.mulf %128, %129 : vector<8x4xf32>
    %c0_83 = arith.constant 0 : index
    %c56 = arith.constant 56 : index
    %131 = vector.load %arg21[%c0_83, %c56] : memref<8x96xf32, #tpu.memory_space<vmem>>, vector<8x4xf32>
    %c0_84 = arith.constant 0 : index
    %c88 = arith.constant 88 : index
    %132 = vector.load %arg21[%c0_84, %c88] : memref<8x96xf32, #tpu.memory_space<vmem>>, vector<8x4xf32>
    %cst_85 = arith.constant dense<0.000000e+00> : vector<8x8xf32>
    %133 = tpu.matmul %130, %131, %cst_85 {dimension_numbers = #tpu.dot_dimension_numbers<[1], [1], [0], [0], [0, 0, 1, 0], [], []>} : vector<8x4xf32>, vector<8x4xf32>, vector<8x8xf32> -> vector<8x8xf32>
    %cst_86 = arith.constant dense<0xFF800000> : vector<8xf32>
    %134 = vector.multi_reduction <maximumf>, %133, %cst_86 [1] : vector<8x8xf32> to vector<8xf32>
    %135 = vector.shape_cast %134 : vector<8xf32> to vector<8x1xf32>
    %136 = vector.broadcast %135 : vector<8x1xf32> to vector<8x8xf32>
    %137 = arith.subf %133, %136 : vector<8x8xf32>
    %138 = math.exp %137 : vector<8x8xf32>
    %cst_87 = arith.constant dense<0.000000e+00> : vector<8xf32>
    %139 = vector.multi_reduction <add>, %138, %cst_87 [1] : vector<8x8xf32> to vector<8xf32>
    %140 = vector.shape_cast %139 : vector<8xf32> to vector<8x1xf32>
    %141 = tpu.reciprocal %140 {approx = true} : vector<8x1xf32> -> vector<8x1xf32>
    %142 = vector.broadcast %141 : vector<8x1xf32> to vector<8x8xf32>
    %143 = arith.mulf %138, %142 : vector<8x8xf32>
    %cst_88 = arith.constant dense<0.000000e+00> : vector<8x4xf32>
    %144 = tpu.matmul %143, %132, %cst_88 {dimension_numbers = #tpu.dot_dimension_numbers<[1], [0], [0], [1], [0, 0, 1, 1], [], []>} : vector<8x8xf32>, vector<8x4xf32>, vector<8x4xf32> -> vector<8x4xf32>
    %c0_89 = arith.constant 0 : index
    %c24_90 = arith.constant 24 : index
    %145 = vector.load %arg22[%c0_89, %c24_90] : memref<8x32xf32, #tpu.memory_space<vmem>>, vector<8x4xf32>
    tpu.vector_store %arg22[%c0_89, %c24_90], %144 {strides = array<i32>} : memref<8x32xf32, #tpu.memory_space<vmem>>, vector<8x4xf32>,
    %c0_91 = arith.constant 0 : index
    %c28 = arith.constant 28 : index
    %146 = vector.load %arg21[%c0_91, %c28] : memref<8x96xf32, #tpu.memory_space<vmem>>, vector<8x4xf32>
    %cst_92 = arith.constant 5.000000e-01 : f32
    %147 = vector.broadcast %cst_92 : f32 to vector<8x4xf32>
    %148 = arith.mulf %146, %147 : vector<8x4xf32>
    %c0_93 = arith.constant 0 : index
    %c60 = arith.constant 60 : index
    %149 = vector.load %arg21[%c0_93, %c60] : memref<8x96xf32, #tpu.memory_space<vmem>>, vector<8x4xf32>
    %c0_94 = arith.constant 0 : index
    %c92 = arith.constant 92 : index
    %150 = vector.load %arg21[%c0_94, %c92] : memref<8x96xf32, #tpu.memory_space<vmem>>, vector<8x4xf32>
    %cst_95 = arith.constant dense<0.000000e+00> : vector<8x8xf32>
    %151 = tpu.matmul %148, %149, %cst_95 {dimension_numbers = #tpu.dot_dimension_numbers<[1], [1], [0], [0], [0, 0, 1, 0], [], []>} : vector<8x4xf32>, vector<8x4xf32>, vector<8x8xf32> -> vector<8x8xf32>
    %cst_96 = arith.constant dense<0xFF800000> : vector<8xf32>
    %152 = vector.multi_reduction <maximumf>, %151, %cst_96 [1] : vector<8x8xf32> to vector<8xf32>
    %153 = vector.shape_cast %152 : vector<8xf32> to vector<8x1xf32>
    %154 = vector.broadcast %153 : vector<8x1xf32> to vector<8x8xf32>
    %155 = arith.subf %151, %154 : vector<8x8xf32>
    %156 = math.exp %155 : vector<8x8xf32>
    %cst_97 = arith.constant dense<0.000000e+00> : vector<8xf32>
    %157 = vector.multi_reduction <add>, %156, %cst_97 [1] : vector<8x8xf32> to vector<8xf32>
    %158 = vector.shape_cast %157 : vector<8xf32> to vector<8x1xf32>
    %159 = tpu.reciprocal %158 {approx = true} : vector<8x1xf32> -> vector<8x1xf32>
    %160 = vector.broadcast %159 : vector<8x1xf32> to vector<8x8xf32>
    %161 = arith.mulf %156, %160 : vector<8x8xf32>
    %cst_98 = arith.constant dense<0.000000e+00> : vector<8x4xf32>
    %162 = tpu.matmul %161, %150, %cst_98 {dimension_numbers = #tpu.dot_dimension_numbers<[1], [0], [0], [1], [0, 0, 1, 1], [], []>} : vector<8x8xf32>, vector<8x4xf32>, vector<8x4xf32> -> vector<8x4xf32>
    %c0_99 = arith.constant 0 : index
    %c28_100 = arith.constant 28 : index
    %163 = vector.load %arg22[%c0_99, %c28_100] : memref<8x32xf32, #tpu.memory_space<vmem>>, vector<8x4xf32>
    tpu.vector_store %arg22[%c0_99, %c28_100], %162 {strides = array<i32>} : memref<8x32xf32, #tpu.memory_space<vmem>>, vector<8x4xf32>,
    %c0_101 = arith.constant 0 : index
    %c0_102 = arith.constant 0 : index
    %164 = vector.load %arg22[%c0_101, %c0_102] : memref<8x32xf32, #tpu.memory_space<vmem>>, vector<8x32xf32>
    %c0_103 = arith.constant 0 : index
    %c0_104 = arith.constant 0 : index
    %c0_105 = arith.constant 0 : index
    %165 = vector.load %arg8[%c0_103, %c0_104, %c0_105] : memref<3x32x32xf32, #tpu.memory_space<vmem>>, vector<1x32x32xf32>
    %166 = vector.shape_cast %165 : vector<1x32x32xf32> to vector<32x32xf32>
    %cst_106 = arith.constant dense<0.000000e+00> : vector<8x32xf32>
    %167 = tpu.matmul %164, %166, %cst_106 {dimension_numbers = #tpu.dot_dimension_numbers<[1], [0], [0], [1], [0, 0, 1, 1], [], []>} : vector<8x32xf32>, vector<32x32xf32>, vector<8x32xf32> -> vector<8x32xf32>
    %c0_107 = arith.constant 0 : index
    %c0_108 = arith.constant 0 : index
    %c0_109 = arith.constant 0 : index
    %168 = vector.load %arg9[%c0_107, %c0_108, %c0_109] : memref<3x1x32xf32, #tpu.memory_space<vmem>>, vector<1x1x32xf32>
    %169 = vector.shape_cast %168 : vector<1x1x32xf32> to vector<1x32xf32>
    %170 = vector.broadcast %169 : vector<1x32xf32> to vector<8x32xf32>
    %171 = arith.addf %167, %170 : vector<8x32xf32>
    %172 = arith.addf %171, %11 : vector<8x32xf32>
    %c0_110 = arith.constant 0 : index
    %c0_111 = arith.constant 0 : index
    %c0_112 = arith.constant 0 : index
    %173 = vector.load %arg10[%c0_110, %c0_111, %c0_112] : memref<3x1x32xf32, #tpu.memory_space<vmem>>, vector<1x1x32xf32>
    %174 = vector.shape_cast %173 : vector<1x1x32xf32> to vector<1x32xf32>
    %c0_113 = arith.constant 0 : index
    %c0_114 = arith.constant 0 : index
    %c0_115 = arith.constant 0 : index
    %175 = vector.load %arg11[%c0_113, %c0_114, %c0_115] : memref<3x1x32xf32, #tpu.memory_space<vmem>>, vector<1x1x32xf32>
    %176 = vector.shape_cast %175 : vector<1x1x32xf32> to vector<1x32xf32>
    %cst_116 = arith.constant dense<0.000000e+00> : vector<8xf32>
    %177 = vector.multi_reduction <add>, %172, %cst_116 [1] : vector<8x32xf32> to vector<8xf32>
    %178 = vector.shape_cast %177 : vector<8xf32> to vector<8x1xf32>
    %cst_117 = arith.constant 3.200000e+01 : f32
    %179 = vector.broadcast %cst_117 : f32 to vector<8x1xf32>
    %180 = arith.divf %178, %179 : vector<8x1xf32>
    %181 = vector.broadcast %180 : vector<8x1xf32> to vector<8x32xf32>
    %182 = arith.subf %172, %181 : vector<8x32xf32>
    %183 = arith.mulf %182, %182 : vector<8x32xf32>
    %cst_118 = arith.constant dense<0.000000e+00> : vector<8xf32>
    %184 = vector.multi_reduction <add>, %183, %cst_118 [1] : vector<8x32xf32> to vector<8xf32>
    %185 = vector.shape_cast %184 : vector<8xf32> to vector<8x1xf32>
    %cst_119 = arith.constant 3.200000e+01 : f32
    %186 = vector.broadcast %cst_119 : f32 to vector<8x1xf32>
    %187 = arith.divf %185, %186 : vector<8x1xf32>
    %188 = vector.broadcast %180 : vector<8x1xf32> to vector<8x32xf32>
    %189 = arith.subf %172, %188 : vector<8x32xf32>
    %cst_120 = arith.constant 9.99999974E-6 : f32
    %190 = vector.broadcast %cst_120 : f32 to vector<8x1xf32>
    %191 = arith.addf %187, %190 : vector<8x1xf32>
    %192 = math.rsqrt %191 : vector<8x1xf32>
    %193 = vector.broadcast %192 : vector<8x1xf32> to vector<8x32xf32>
    %194 = arith.mulf %189, %193 : vector<8x32xf32>
    %195 = vector.broadcast %174 : vector<1x32xf32> to vector<8x32xf32>
    %196 = arith.mulf %194, %195 : vector<8x32xf32>
    %197 = vector.broadcast %176 : vector<1x32xf32> to vector<8x32xf32>
    %198 = arith.addf %196, %197 : vector<8x32xf32>
    %c0_121 = arith.constant 0 : index
    %c0_122 = arith.constant 0 : index
    %c0_123 = arith.constant 0 : index
    %199 = vector.load %arg12[%c0_121, %c0_122, %c0_123] : memref<3x32x64xf32, #tpu.memory_space<vmem>>, vector<1x32x64xf32>
    %200 = vector.shape_cast %199 : vector<1x32x64xf32> to vector<32x64xf32>
    %cst_124 = arith.constant dense<0.000000e+00> : vector<8x64xf32>
    %201 = tpu.matmul %198, %200, %cst_124 {dimension_numbers = #tpu.dot_dimension_numbers<[1], [0], [0], [1], [0, 0, 1, 1], [], []>} : vector<8x32xf32>, vector<32x64xf32>, vector<8x64xf32> -> vector<8x64xf32>
    %c0_125 = arith.constant 0 : index
    %c0_126 = arith.constant 0 : index
    %c0_127 = arith.constant 0 : index
    %202 = vector.load %arg13[%c0_125, %c0_126, %c0_127] : memref<3x1x64xf32, #tpu.memory_space<vmem>>, vector<1x1x64xf32>
    %203 = vector.shape_cast %202 : vector<1x1x64xf32> to vector<1x64xf32>
    %204 = vector.broadcast %203 : vector<1x64xf32> to vector<8x64xf32>
    %205 = arith.addf %201, %204 : vector<8x64xf32>
    %cst_128 = arith.constant 0.000000e+00 : f32
    %206 = vector.broadcast %cst_128 : f32 to vector<8x64xf32>
    %207 = arith.maximumf %205, %206 : vector<8x64xf32>
    %c0_129 = arith.constant 0 : index
    %c0_130 = arith.constant 0 : index
    %c0_131 = arith.constant 0 : index
    %208 = vector.load %arg14[%c0_129, %c0_130, %c0_131] : memref<3x64x32xf32, #tpu.memory_space<vmem>>, vector<1x64x32xf32>
    %209 = vector.shape_cast %208 : vector<1x64x32xf32> to vector<64x32xf32>
    %cst_132 = arith.constant dense<0.000000e+00> : vector<8x32xf32>
    %210 = tpu.matmul %207, %209, %cst_132 {dimension_numbers = #tpu.dot_dimension_numbers<[1], [0], [0], [1], [0, 0, 1, 1], [], []>} : vector<8x64xf32>, vector<64x32xf32>, vector<8x32xf32> -> vector<8x32xf32>
    %c0_133 = arith.constant 0 : index
    %c0_134 = arith.constant 0 : index
    %c0_135 = arith.constant 0 : index
    %211 = vector.load %arg15[%c0_133, %c0_134, %c0_135] : memref<3x1x32xf32, #tpu.memory_space<vmem>>, vector<1x1x32xf32>
    %212 = vector.shape_cast %211 : vector<1x1x32xf32> to vector<1x32xf32>
    %213 = vector.broadcast %212 : vector<1x32xf32> to vector<8x32xf32>
    %214 = arith.addf %210, %213 : vector<8x32xf32>
    %215 = arith.addf %214, %198 : vector<8x32xf32>
    %c0_136 = arith.constant 0 : index
    %c0_137 = arith.constant 0 : index
    %c0_138 = arith.constant 0 : index
    %216 = vector.load %arg16[%c0_136, %c0_137, %c0_138] : memref<3x1x32xf32, #tpu.memory_space<vmem>>, vector<1x1x32xf32>
    %217 = vector.shape_cast %216 : vector<1x1x32xf32> to vector<1x32xf32>
    %c0_139 = arith.constant 0 : index
    %c0_140 = arith.constant 0 : index
    %c0_141 = arith.constant 0 : index
    %218 = vector.load %arg17[%c0_139, %c0_140, %c0_141] : memref<3x1x32xf32, #tpu.memory_space<vmem>>, vector<1x1x32xf32>
    %219 = vector.shape_cast %218 : vector<1x1x32xf32> to vector<1x32xf32>
    %cst_142 = arith.constant dense<0.000000e+00> : vector<8xf32>
    %220 = vector.multi_reduction <add>, %215, %cst_142 [1] : vector<8x32xf32> to vector<8xf32>
    %221 = vector.shape_cast %220 : vector<8xf32> to vector<8x1xf32>
    %cst_143 = arith.constant 3.200000e+01 : f32
    %222 = vector.broadcast %cst_143 : f32 to vector<8x1xf32>
    %223 = arith.divf %221, %222 : vector<8x1xf32>
    %224 = vector.broadcast %223 : vector<8x1xf32> to vector<8x32xf32>
    %225 = arith.subf %215, %224 : vector<8x32xf32>
    %226 = arith.mulf %225, %225 : vector<8x32xf32>
    %cst_144 = arith.constant dense<0.000000e+00> : vector<8xf32>
    %227 = vector.multi_reduction <add>, %226, %cst_144 [1] : vector<8x32xf32> to vector<8xf32>
    %228 = vector.shape_cast %227 : vector<8xf32> to vector<8x1xf32>
    %cst_145 = arith.constant 3.200000e+01 : f32
    %229 = vector.broadcast %cst_145 : f32 to vector<8x1xf32>
    %230 = arith.divf %228, %229 : vector<8x1xf32>
    %231 = vector.broadcast %223 : vector<8x1xf32> to vector<8x32xf32>
    %232 = arith.subf %215, %231 : vector<8x32xf32>
    %cst_146 = arith.constant 9.99999974E-6 : f32
    %233 = vector.broadcast %cst_146 : f32 to vector<8x1xf32>
    %234 = arith.addf %230, %233 : vector<8x1xf32>
    %235 = math.rsqrt %234 : vector<8x1xf32>
    %236 = vector.broadcast %235 : vector<8x1xf32> to vector<8x32xf32>
    %237 = arith.mulf %232, %236 : vector<8x32xf32>
    %238 = vector.broadcast %217 : vector<1x32xf32> to vector<8x32xf32>
    %239 = arith.mulf %237, %238 : vector<8x32xf32>
    %240 = vector.broadcast %219 : vector<1x32xf32> to vector<8x32xf32>
    %241 = arith.addf %239, %240 : vector<8x32xf32>
    %c1 = arith.constant 1 : index
    %c0_147 = arith.constant 0 : index
    %c0_148 = arith.constant 0 : index
    %242 = vector.load %arg6[%c1, %c0_147, %c0_148] : memref<3x32x96xf32, #tpu.memory_space<vmem>>, vector<1x32x96xf32>
    %243 = vector.shape_cast %242 : vector<1x32x96xf32> to vector<32x96xf32>
    %cst_149 = arith.constant dense<0.000000e+00> : vector<8x96xf32>
    %244 = tpu.matmul %241, %243, %cst_149 {dimension_numbers = #tpu.dot_dimension_numbers<[1], [0], [0], [1], [0, 0, 1, 1], [], []>} : vector<8x32xf32>, vector<32x96xf32>, vector<8x96xf32> -> vector<8x96xf32>
    %c1_150 = arith.constant 1 : index
    %c0_151 = arith.constant 0 : index
    %c0_152 = arith.constant 0 : index
    %245 = vector.load %arg7[%c1_150, %c0_151, %c0_152] : memref<3x1x96xf32, #tpu.memory_space<vmem>>, vector<1x1x96xf32>
    %246 = vector.shape_cast %245 : vector<1x1x96xf32> to vector<1x96xf32>
    %247 = vector.broadcast %246 : vector<1x96xf32> to vector<8x96xf32>
    %248 = arith.addf %244, %247 : vector<8x96xf32>
    %c0_153 = arith.constant 0 : index
    %c0_154 = arith.constant 0 : index
    %249 = vector.load %arg21[%c0_153, %c0_154] : memref<8x96xf32, #tpu.memory_space<vmem>>, vector<8x96xf32>
    tpu.vector_store %arg21[%c0_153, %c0_154], %248 {strides = array<i32>} : memref<8x96xf32, #tpu.memory_space<vmem>>, vector<8x96xf32>,
    %c0_155 = arith.constant 0 : index
    %c0_156 = arith.constant 0 : index
    %250 = vector.load %arg21[%c0_155, %c0_156] : memref<8x96xf32, #tpu.memory_space<vmem>>, vector<8x4xf32>
    %cst_157 = arith.constant 5.000000e-01 : f32
    %251 = vector.broadcast %cst_157 : f32 to vector<8x4xf32>
    %252 = arith.mulf %250, %251 : vector<8x4xf32>
    %c0_158 = arith.constant 0 : index
    %c32_159 = arith.constant 32 : index
    %253 = vector.load %arg21[%c0_158, %c32_159] : memref<8x96xf32, #tpu.memory_space<vmem>>, vector<8x4xf32>
    %c0_160 = arith.constant 0 : index
    %c64_161 = arith.constant 64 : index
    %254 = vector.load %arg21[%c0_160, %c64_161] : memref<8x96xf32, #tpu.memory_space<vmem>>, vector<8x4xf32>
    %cst_162 = arith.constant dense<0.000000e+00> : vector<8x8xf32>
    %255 = tpu.matmul %252, %253, %cst_162 {dimension_numbers = #tpu.dot_dimension_numbers<[1], [1], [0], [0], [0, 0, 1, 0], [], []>} : vector<8x4xf32>, vector<8x4xf32>, vector<8x8xf32> -> vector<8x8xf32>
    %cst_163 = arith.constant dense<0xFF800000> : vector<8xf32>
    %256 = vector.multi_reduction <maximumf>, %255, %cst_163 [1] : vector<8x8xf32> to vector<8xf32>
    %257 = vector.shape_cast %256 : vector<8xf32> to vector<8x1xf32>
    %258 = vector.broadcast %257 : vector<8x1xf32> to vector<8x8xf32>
    %259 = arith.subf %255, %258 : vector<8x8xf32>
    %260 = math.exp %259 : vector<8x8xf32>
    %cst_164 = arith.constant dense<0.000000e+00> : vector<8xf32>
    %261 = vector.multi_reduction <add>, %260, %cst_164 [1] : vector<8x8xf32> to vector<8xf32>
    %262 = vector.shape_cast %261 : vector<8xf32> to vector<8x1xf32>
    %263 = tpu.reciprocal %262 {approx = true} : vector<8x1xf32> -> vector<8x1xf32>
    %264 = vector.broadcast %263 : vector<8x1xf32> to vector<8x8xf32>
    %265 = arith.mulf %260, %264 : vector<8x8xf32>
    %cst_165 = arith.constant dense<0.000000e+00> : vector<8x4xf32>
    %266 = tpu.matmul %265, %254, %cst_165 {dimension_numbers = #tpu.dot_dimension_numbers<[1], [0], [0], [1], [0, 0, 1, 1], [], []>} : vector<8x8xf32>, vector<8x4xf32>, vector<8x4xf32> -> vector<8x4xf32>
    %c0_166 = arith.constant 0 : index
    %c0_167 = arith.constant 0 : index
    %267 = vector.load %arg22[%c0_166, %c0_167] : memref<8x32xf32, #tpu.memory_space<vmem>>, vector<8x4xf32>
    tpu.vector_store %arg22[%c0_166, %c0_167], %266 {strides = array<i32>} : memref<8x32xf32, #tpu.memory_space<vmem>>, vector<8x4xf32>,
    %c0_168 = arith.constant 0 : index
    %c4_169 = arith.constant 4 : index
    %268 = vector.load %arg21[%c0_168, %c4_169] : memref<8x96xf32, #tpu.memory_space<vmem>>, vector<8x4xf32>
    %cst_170 = arith.constant 5.000000e-01 : f32
    %269 = vector.broadcast %cst_170 : f32 to vector<8x4xf32>
    %270 = arith.mulf %268, %269 : vector<8x4xf32>
    %c0_171 = arith.constant 0 : index
    %c36_172 = arith.constant 36 : index
    %271 = vector.load %arg21[%c0_171, %c36_172] : memref<8x96xf32, #tpu.memory_space<vmem>>, vector<8x4xf32>
    %c0_173 = arith.constant 0 : index
    %c68_174 = arith.constant 68 : index
    %272 = vector.load %arg21[%c0_173, %c68_174] : memref<8x96xf32, #tpu.memory_space<vmem>>, vector<8x4xf32>
    %cst_175 = arith.constant dense<0.000000e+00> : vector<8x8xf32>
    %273 = tpu.matmul %270, %271, %cst_175 {dimension_numbers = #tpu.dot_dimension_numbers<[1], [1], [0], [0], [0, 0, 1, 0], [], []>} : vector<8x4xf32>, vector<8x4xf32>, vector<8x8xf32> -> vector<8x8xf32>
    %cst_176 = arith.constant dense<0xFF800000> : vector<8xf32>
    %274 = vector.multi_reduction <maximumf>, %273, %cst_176 [1] : vector<8x8xf32> to vector<8xf32>
    %275 = vector.shape_cast %274 : vector<8xf32> to vector<8x1xf32>
    %276 = vector.broadcast %275 : vector<8x1xf32> to vector<8x8xf32>
    %277 = arith.subf %273, %276 : vector<8x8xf32>
    %278 = math.exp %277 : vector<8x8xf32>
    %cst_177 = arith.constant dense<0.000000e+00> : vector<8xf32>
    %279 = vector.multi_reduction <add>, %278, %cst_177 [1] : vector<8x8xf32> to vector<8xf32>
    %280 = vector.shape_cast %279 : vector<8xf32> to vector<8x1xf32>
    %281 = tpu.reciprocal %280 {approx = true} : vector<8x1xf32> -> vector<8x1xf32>
    %282 = vector.broadcast %281 : vector<8x1xf32> to vector<8x8xf32>
    %283 = arith.mulf %278, %282 : vector<8x8xf32>
    %cst_178 = arith.constant dense<0.000000e+00> : vector<8x4xf32>
    %284 = tpu.matmul %283, %272, %cst_178 {dimension_numbers = #tpu.dot_dimension_numbers<[1], [0], [0], [1], [0, 0, 1, 1], [], []>} : vector<8x8xf32>, vector<8x4xf32>, vector<8x4xf32> -> vector<8x4xf32>
    %c0_179 = arith.constant 0 : index
    %c4_180 = arith.constant 4 : index
    %285 = vector.load %arg22[%c0_179, %c4_180] : memref<8x32xf32, #tpu.memory_space<vmem>>, vector<8x4xf32>
    tpu.vector_store %arg22[%c0_179, %c4_180], %284 {strides = array<i32>} : memref<8x32xf32, #tpu.memory_space<vmem>>, vector<8x4xf32>,
    %c0_181 = arith.constant 0 : index
    %c8_182 = arith.constant 8 : index
    %286 = vector.load %arg21[%c0_181, %c8_182] : memref<8x96xf32, #tpu.memory_space<vmem>>, vector<8x4xf32>
    %cst_183 = arith.constant 5.000000e-01 : f32
    %287 = vector.broadcast %cst_183 : f32 to vector<8x4xf32>
    %288 = arith.mulf %286, %287 : vector<8x4xf32>
    %c0_184 = arith.constant 0 : index
    %c40_185 = arith.constant 40 : index
    %289 = vector.load %arg21[%c0_184, %c40_185] : memref<8x96xf32, #tpu.memory_space<vmem>>, vector<8x4xf32>
    %c0_186 = arith.constant 0 : index
    %c72_187 = arith.constant 72 : index
    %290 = vector.load %arg21[%c0_186, %c72_187] : memref<8x96xf32, #tpu.memory_space<vmem>>, vector<8x4xf32>
    %cst_188 = arith.constant dense<0.000000e+00> : vector<8x8xf32>
    %291 = tpu.matmul %288, %289, %cst_188 {dimension_numbers = #tpu.dot_dimension_numbers<[1], [1], [0], [0], [0, 0, 1, 0], [], []>} : vector<8x4xf32>, vector<8x4xf32>, vector<8x8xf32> -> vector<8x8xf32>
    %cst_189 = arith.constant dense<0xFF800000> : vector<8xf32>
    %292 = vector.multi_reduction <maximumf>, %291, %cst_189 [1] : vector<8x8xf32> to vector<8xf32>
    %293 = vector.shape_cast %292 : vector<8xf32> to vector<8x1xf32>
    %294 = vector.broadcast %293 : vector<8x1xf32> to vector<8x8xf32>
    %295 = arith.subf %291, %294 : vector<8x8xf32>
    %296 = math.exp %295 : vector<8x8xf32>
    %cst_190 = arith.constant dense<0.000000e+00> : vector<8xf32>
    %297 = vector.multi_reduction <add>, %296, %cst_190 [1] : vector<8x8xf32> to vector<8xf32>
    %298 = vector.shape_cast %297 : vector<8xf32> to vector<8x1xf32>
    %299 = tpu.reciprocal %298 {approx = true} : vector<8x1xf32> -> vector<8x1xf32>
    %300 = vector.broadcast %299 : vector<8x1xf32> to vector<8x8xf32>
    %301 = arith.mulf %296, %300 : vector<8x8xf32>
    %cst_191 = arith.constant dense<0.000000e+00> : vector<8x4xf32>
    %302 = tpu.matmul %301, %290, %cst_191 {dimension_numbers = #tpu.dot_dimension_numbers<[1], [0], [0], [1], [0, 0, 1, 1], [], []>} : vector<8x8xf32>, vector<8x4xf32>, vector<8x4xf32> -> vector<8x4xf32>
    %c0_192 = arith.constant 0 : index
    %c8_193 = arith.constant 8 : index
    %303 = vector.load %arg22[%c0_192, %c8_193] : memref<8x32xf32, #tpu.memory_space<vmem>>, vector<8x4xf32>
    tpu.vector_store %arg22[%c0_192, %c8_193], %302 {strides = array<i32>} : memref<8x32xf32, #tpu.memory_space<vmem>>, vector<8x4xf32>,
    %c0_194 = arith.constant 0 : index
    %c12_195 = arith.constant 12 : index
    %304 = vector.load %arg21[%c0_194, %c12_195] : memref<8x96xf32, #tpu.memory_space<vmem>>, vector<8x4xf32>
    %cst_196 = arith.constant 5.000000e-01 : f32
    %305 = vector.broadcast %cst_196 : f32 to vector<8x4xf32>
    %306 = arith.mulf %304, %305 : vector<8x4xf32>
    %c0_197 = arith.constant 0 : index
    %c44_198 = arith.constant 44 : index
    %307 = vector.load %arg21[%c0_197, %c44_198] : memref<8x96xf32, #tpu.memory_space<vmem>>, vector<8x4xf32>
    %c0_199 = arith.constant 0 : index
    %c76_200 = arith.constant 76 : index
    %308 = vector.load %arg21[%c0_199, %c76_200] : memref<8x96xf32, #tpu.memory_space<vmem>>, vector<8x4xf32>
    %cst_201 = arith.constant dense<0.000000e+00> : vector<8x8xf32>
    %309 = tpu.matmul %306, %307, %cst_201 {dimension_numbers = #tpu.dot_dimension_numbers<[1], [1], [0], [0], [0, 0, 1, 0], [], []>} : vector<8x4xf32>, vector<8x4xf32>, vector<8x8xf32> -> vector<8x8xf32>
    %cst_202 = arith.constant dense<0xFF800000> : vector<8xf32>
    %310 = vector.multi_reduction <maximumf>, %309, %cst_202 [1] : vector<8x8xf32> to vector<8xf32>
    %311 = vector.shape_cast %310 : vector<8xf32> to vector<8x1xf32>
    %312 = vector.broadcast %311 : vector<8x1xf32> to vector<8x8xf32>
    %313 = arith.subf %309, %312 : vector<8x8xf32>
    %314 = math.exp %313 : vector<8x8xf32>
    %cst_203 = arith.constant dense<0.000000e+00> : vector<8xf32>
    %315 = vector.multi_reduction <add>, %314, %cst_203 [1] : vector<8x8xf32> to vector<8xf32>
    %316 = vector.shape_cast %315 : vector<8xf32> to vector<8x1xf32>
    %317 = tpu.reciprocal %316 {approx = true} : vector<8x1xf32> -> vector<8x1xf32>
    %318 = vector.broadcast %317 : vector<8x1xf32> to vector<8x8xf32>
    %319 = arith.mulf %314, %318 : vector<8x8xf32>
    %cst_204 = arith.constant dense<0.000000e+00> : vector<8x4xf32>
    %320 = tpu.matmul %319, %308, %cst_204 {dimension_numbers = #tpu.dot_dimension_numbers<[1], [0], [0], [1], [0, 0, 1, 1], [], []>} : vector<8x8xf32>, vector<8x4xf32>, vector<8x4xf32> -> vector<8x4xf32>
    %c0_205 = arith.constant 0 : index
    %c12_206 = arith.constant 12 : index
    %321 = vector.load %arg22[%c0_205, %c12_206] : memref<8x32xf32, #tpu.memory_space<vmem>>, vector<8x4xf32>
    tpu.vector_store %arg22[%c0_205, %c12_206], %320 {strides = array<i32>} : memref<8x32xf32, #tpu.memory_space<vmem>>, vector<8x4xf32>,
    %c0_207 = arith.constant 0 : index
    %c16_208 = arith.constant 16 : index
    %322 = vector.load %arg21[%c0_207, %c16_208] : memref<8x96xf32, #tpu.memory_space<vmem>>, vector<8x4xf32>
    %cst_209 = arith.constant 5.000000e-01 : f32
    %323 = vector.broadcast %cst_209 : f32 to vector<8x4xf32>
    %324 = arith.mulf %322, %323 : vector<8x4xf32>
    %c0_210 = arith.constant 0 : index
    %c48_211 = arith.constant 48 : index
    %325 = vector.load %arg21[%c0_210, %c48_211] : memref<8x96xf32, #tpu.memory_space<vmem>>, vector<8x4xf32>
    %c0_212 = arith.constant 0 : index
    %c80_213 = arith.constant 80 : index
    %326 = vector.load %arg21[%c0_212, %c80_213] : memref<8x96xf32, #tpu.memory_space<vmem>>, vector<8x4xf32>
    %cst_214 = arith.constant dense<0.000000e+00> : vector<8x8xf32>
    %327 = tpu.matmul %324, %325, %cst_214 {dimension_numbers = #tpu.dot_dimension_numbers<[1], [1], [0], [0], [0, 0, 1, 0], [], []>} : vector<8x4xf32>, vector<8x4xf32>, vector<8x8xf32> -> vector<8x8xf32>
    %cst_215 = arith.constant dense<0xFF800000> : vector<8xf32>
    %328 = vector.multi_reduction <maximumf>, %327, %cst_215 [1] : vector<8x8xf32> to vector<8xf32>
    %329 = vector.shape_cast %328 : vector<8xf32> to vector<8x1xf32>
    %330 = vector.broadcast %329 : vector<8x1xf32> to vector<8x8xf32>
    %331 = arith.subf %327, %330 : vector<8x8xf32>
    %332 = math.exp %331 : vector<8x8xf32>
    %cst_216 = arith.constant dense<0.000000e+00> : vector<8xf32>
    %333 = vector.multi_reduction <add>, %332, %cst_216 [1] : vector<8x8xf32> to vector<8xf32>
    %334 = vector.shape_cast %333 : vector<8xf32> to vector<8x1xf32>
    %335 = tpu.reciprocal %334 {approx = true} : vector<8x1xf32> -> vector<8x1xf32>
    %336 = vector.broadcast %335 : vector<8x1xf32> to vector<8x8xf32>
    %337 = arith.mulf %332, %336 : vector<8x8xf32>
    %cst_217 = arith.constant dense<0.000000e+00> : vector<8x4xf32>
    %338 = tpu.matmul %337, %326, %cst_217 {dimension_numbers = #tpu.dot_dimension_numbers<[1], [0], [0], [1], [0, 0, 1, 1], [], []>} : vector<8x8xf32>, vector<8x4xf32>, vector<8x4xf32> -> vector<8x4xf32>
    %c0_218 = arith.constant 0 : index
    %c16_219 = arith.constant 16 : index
    %339 = vector.load %arg22[%c0_218, %c16_219] : memref<8x32xf32, #tpu.memory_space<vmem>>, vector<8x4xf32>
    tpu.vector_store %arg22[%c0_218, %c16_219], %338 {strides = array<i32>} : memref<8x32xf32, #tpu.memory_space<vmem>>, vector<8x4xf32>,
    %c0_220 = arith.constant 0 : index
    %c20_221 = arith.constant 20 : index
    %340 = vector.load %arg21[%c0_220, %c20_221] : memref<8x96xf32, #tpu.memory_space<vmem>>, vector<8x4xf32>
    %cst_222 = arith.constant 5.000000e-01 : f32
    %341 = vector.broadcast %cst_222 : f32 to vector<8x4xf32>
    %342 = arith.mulf %340, %341 : vector<8x4xf32>
    %c0_223 = arith.constant 0 : index
    %c52_224 = arith.constant 52 : index
    %343 = vector.load %arg21[%c0_223, %c52_224] : memref<8x96xf32, #tpu.memory_space<vmem>>, vector<8x4xf32>
    %c0_225 = arith.constant 0 : index
    %c84_226 = arith.constant 84 : index
    %344 = vector.load %arg21[%c0_225, %c84_226] : memref<8x96xf32, #tpu.memory_space<vmem>>, vector<8x4xf32>
    %cst_227 = arith.constant dense<0.000000e+00> : vector<8x8xf32>
    %345 = tpu.matmul %342, %343, %cst_227 {dimension_numbers = #tpu.dot_dimension_numbers<[1], [1], [0], [0], [0, 0, 1, 0], [], []>} : vector<8x4xf32>, vector<8x4xf32>, vector<8x8xf32> -> vector<8x8xf32>
    %cst_228 = arith.constant dense<0xFF800000> : vector<8xf32>
    %346 = vector.multi_reduction <maximumf>, %345, %cst_228 [1] : vector<8x8xf32> to vector<8xf32>
    %347 = vector.shape_cast %346 : vector<8xf32> to vector<8x1xf32>
    %348 = vector.broadcast %347 : vector<8x1xf32> to vector<8x8xf32>
    %349 = arith.subf %345, %348 : vector<8x8xf32>
    %350 = math.exp %349 : vector<8x8xf32>
    %cst_229 = arith.constant dense<0.000000e+00> : vector<8xf32>
    %351 = vector.multi_reduction <add>, %350, %cst_229 [1] : vector<8x8xf32> to vector<8xf32>
    %352 = vector.shape_cast %351 : vector<8xf32> to vector<8x1xf32>
    %353 = tpu.reciprocal %352 {approx = true} : vector<8x1xf32> -> vector<8x1xf32>
    %354 = vector.broadcast %353 : vector<8x1xf32> to vector<8x8xf32>
    %355 = arith.mulf %350, %354 : vector<8x8xf32>
    %cst_230 = arith.constant dense<0.000000e+00> : vector<8x4xf32>
    %356 = tpu.matmul %355, %344, %cst_230 {dimension_numbers = #tpu.dot_dimension_numbers<[1], [0], [0], [1], [0, 0, 1, 1], [], []>} : vector<8x8xf32>, vector<8x4xf32>, vector<8x4xf32> -> vector<8x4xf32>
    %c0_231 = arith.constant 0 : index
    %c20_232 = arith.constant 20 : index
    %357 = vector.load %arg22[%c0_231, %c20_232] : memref<8x32xf32, #tpu.memory_space<vmem>>, vector<8x4xf32>
    tpu.vector_store %arg22[%c0_231, %c20_232], %356 {strides = array<i32>} : memref<8x32xf32, #tpu.memory_space<vmem>>, vector<8x4xf32>,
    %c0_233 = arith.constant 0 : index
    %c24_234 = arith.constant 24 : index
    %358 = vector.load %arg21[%c0_233, %c24_234] : memref<8x96xf32, #tpu.memory_space<vmem>>, vector<8x4xf32>
    %cst_235 = arith.constant 5.000000e-01 : f32
    %359 = vector.broadcast %cst_235 : f32 to vector<8x4xf32>
    %360 = arith.mulf %358, %359 : vector<8x4xf32>
    %c0_236 = arith.constant 0 : index
    %c56_237 = arith.constant 56 : index
    %361 = vector.load %arg21[%c0_236, %c56_237] : memref<8x96xf32, #tpu.memory_space<vmem>>, vector<8x4xf32>
    %c0_238 = arith.constant 0 : index
    %c88_239 = arith.constant 88 : index
    %362 = vector.load %arg21[%c0_238, %c88_239] : memref<8x96xf32, #tpu.memory_space<vmem>>, vector<8x4xf32>
    %cst_240 = arith.constant dense<0.000000e+00> : vector<8x8xf32>
    %363 = tpu.matmul %360, %361, %cst_240 {dimension_numbers = #tpu.dot_dimension_numbers<[1], [1], [0], [0], [0, 0, 1, 0], [], []>} : vector<8x4xf32>, vector<8x4xf32>, vector<8x8xf32> -> vector<8x8xf32>
    %cst_241 = arith.constant dense<0xFF800000> : vector<8xf32>
    %364 = vector.multi_reduction <maximumf>, %363, %cst_241 [1] : vector<8x8xf32> to vector<8xf32>
    %365 = vector.shape_cast %364 : vector<8xf32> to vector<8x1xf32>
    %366 = vector.broadcast %365 : vector<8x1xf32> to vector<8x8xf32>
    %367 = arith.subf %363, %366 : vector<8x8xf32>
    %368 = math.exp %367 : vector<8x8xf32>
    %cst_242 = arith.constant dense<0.000000e+00> : vector<8xf32>
    %369 = vector.multi_reduction <add>, %368, %cst_242 [1] : vector<8x8xf32> to vector<8xf32>
    %370 = vector.shape_cast %369 : vector<8xf32> to vector<8x1xf32>
    %371 = tpu.reciprocal %370 {approx = true} : vector<8x1xf32> -> vector<8x1xf32>
    %372 = vector.broadcast %371 : vector<8x1xf32> to vector<8x8xf32>
    %373 = arith.mulf %368, %372 : vector<8x8xf32>
    %cst_243 = arith.constant dense<0.000000e+00> : vector<8x4xf32>
    %374 = tpu.matmul %373, %362, %cst_243 {dimension_numbers = #tpu.dot_dimension_numbers<[1], [0], [0], [1], [0, 0, 1, 1], [], []>} : vector<8x8xf32>, vector<8x4xf32>, vector<8x4xf32> -> vector<8x4xf32>
    %c0_244 = arith.constant 0 : index
    %c24_245 = arith.constant 24 : index
    %375 = vector.load %arg22[%c0_244, %c24_245] : memref<8x32xf32, #tpu.memory_space<vmem>>, vector<8x4xf32>
    tpu.vector_store %arg22[%c0_244, %c24_245], %374 {strides = array<i32>} : memref<8x32xf32, #tpu.memory_space<vmem>>, vector<8x4xf32>,
    %c0_246 = arith.constant 0 : index
    %c28_247 = arith.constant 28 : index
    %376 = vector.load %arg21[%c0_246, %c28_247] : memref<8x96xf32, #tpu.memory_space<vmem>>, vector<8x4xf32>
    %cst_248 = arith.constant 5.000000e-01 : f32
    %377 = vector.broadcast %cst_248 : f32 to vector<8x4xf32>
    %378 = arith.mulf %376, %377 : vector<8x4xf32>
    %c0_249 = arith.constant 0 : index
    %c60_250 = arith.constant 60 : index
    %379 = vector.load %arg21[%c0_249, %c60_250] : memref<8x96xf32, #tpu.memory_space<vmem>>, vector<8x4xf32>
    %c0_251 = arith.constant 0 : index
    %c92_252 = arith.constant 92 : index
    %380 = vector.load %arg21[%c0_251, %c92_252] : memref<8x96xf32, #tpu.memory_space<vmem>>, vector<8x4xf32>
    %cst_253 = arith.constant dense<0.000000e+00> : vector<8x8xf32>
    %381 = tpu.matmul %378, %379, %cst_253 {dimension_numbers = #tpu.dot_dimension_numbers<[1], [1], [0], [0], [0, 0, 1, 0], [], []>} : vector<8x4xf32>, vector<8x4xf32>, vector<8x8xf32> -> vector<8x8xf32>
    %cst_254 = arith.constant dense<0xFF800000> : vector<8xf32>
    %382 = vector.multi_reduction <maximumf>, %381, %cst_254 [1] : vector<8x8xf32> to vector<8xf32>
    %383 = vector.shape_cast %382 : vector<8xf32> to vector<8x1xf32>
    %384 = vector.broadcast %383 : vector<8x1xf32> to vector<8x8xf32>
    %385 = arith.subf %381, %384 : vector<8x8xf32>
    %386 = math.exp %385 : vector<8x8xf32>
    %cst_255 = arith.constant dense<0.000000e+00> : vector<8xf32>
    %387 = vector.multi_reduction <add>, %386, %cst_255 [1] : vector<8x8xf32> to vector<8xf32>
    %388 = vector.shape_cast %387 : vector<8xf32> to vector<8x1xf32>
    %389 = tpu.reciprocal %388 {approx = true} : vector<8x1xf32> -> vector<8x1xf32>
    %390 = vector.broadcast %389 : vector<8x1xf32> to vector<8x8xf32>
    %391 = arith.mulf %386, %390 : vector<8x8xf32>
    %cst_256 = arith.constant dense<0.000000e+00> : vector<8x4xf32>
    %392 = tpu.matmul %391, %380, %cst_256 {dimension_numbers = #tpu.dot_dimension_numbers<[1], [0], [0], [1], [0, 0, 1, 1], [], []>} : vector<8x8xf32>, vector<8x4xf32>, vector<8x4xf32> -> vector<8x4xf32>
    %c0_257 = arith.constant 0 : index
    %c28_258 = arith.constant 28 : index
    %393 = vector.load %arg22[%c0_257, %c28_258] : memref<8x32xf32, #tpu.memory_space<vmem>>, vector<8x4xf32>
    tpu.vector_store %arg22[%c0_257, %c28_258], %392 {strides = array<i32>} : memref<8x32xf32, #tpu.memory_space<vmem>>, vector<8x4xf32>,
    %c0_259 = arith.constant 0 : index
    %c0_260 = arith.constant 0 : index
    %394 = vector.load %arg22[%c0_259, %c0_260] : memref<8x32xf32, #tpu.memory_space<vmem>>, vector<8x32xf32>
    %c1_261 = arith.constant 1 : index
    %c0_262 = arith.constant 0 : index
    %c0_263 = arith.constant 0 : index
    %395 = vector.load %arg8[%c1_261, %c0_262, %c0_263] : memref<3x32x32xf32, #tpu.memory_space<vmem>>, vector<1x32x32xf32>
    %396 = vector.shape_cast %395 : vector<1x32x32xf32> to vector<32x32xf32>
    %cst_264 = arith.constant dense<0.000000e+00> : vector<8x32xf32>
    %397 = tpu.matmul %394, %396, %cst_264 {dimension_numbers = #tpu.dot_dimension_numbers<[1], [0], [0], [1], [0, 0, 1, 1], [], []>} : vector<8x32xf32>, vector<32x32xf32>, vector<8x32xf32> -> vector<8x32xf32>
    %c1_265 = arith.constant 1 : index
    %c0_266 = arith.constant 0 : index
    %c0_267 = arith.constant 0 : index
    %398 = vector.load %arg9[%c1_265, %c0_266, %c0_267] : memref<3x1x32xf32, #tpu.memory_space<vmem>>, vector<1x1x32xf32>
    %399 = vector.shape_cast %398 : vector<1x1x32xf32> to vector<1x32xf32>
    %400 = vector.broadcast %399 : vector<1x32xf32> to vector<8x32xf32>
    %401 = arith.addf %397, %400 : vector<8x32xf32>
    %402 = arith.addf %401, %241 : vector<8x32xf32>
    %c1_268 = arith.constant 1 : index
    %c0_269 = arith.constant 0 : index
    %c0_270 = arith.constant 0 : index
    %403 = vector.load %arg10[%c1_268, %c0_269, %c0_270] : memref<3x1x32xf32, #tpu.memory_space<vmem>>, vector<1x1x32xf32>
    %404 = vector.shape_cast %403 : vector<1x1x32xf32> to vector<1x32xf32>
    %c1_271 = arith.constant 1 : index
    %c0_272 = arith.constant 0 : index
    %c0_273 = arith.constant 0 : index
    %405 = vector.load %arg11[%c1_271, %c0_272, %c0_273] : memref<3x1x32xf32, #tpu.memory_space<vmem>>, vector<1x1x32xf32>
    %406 = vector.shape_cast %405 : vector<1x1x32xf32> to vector<1x32xf32>
    %cst_274 = arith.constant dense<0.000000e+00> : vector<8xf32>
    %407 = vector.multi_reduction <add>, %402, %cst_274 [1] : vector<8x32xf32> to vector<8xf32>
    %408 = vector.shape_cast %407 : vector<8xf32> to vector<8x1xf32>
    %cst_275 = arith.constant 3.200000e+01 : f32
    %409 = vector.broadcast %cst_275 : f32 to vector<8x1xf32>
    %410 = arith.divf %408, %409 : vector<8x1xf32>
    %411 = vector.broadcast %410 : vector<8x1xf32> to vector<8x32xf32>
    %412 = arith.subf %402, %411 : vector<8x32xf32>
    %413 = arith.mulf %412, %412 : vector<8x32xf32>
    %cst_276 = arith.constant dense<0.000000e+00> : vector<8xf32>
    %414 = vector.multi_reduction <add>, %413, %cst_276 [1] : vector<8x32xf32> to vector<8xf32>
    %415 = vector.shape_cast %414 : vector<8xf32> to vector<8x1xf32>
    %cst_277 = arith.constant 3.200000e+01 : f32
    %416 = vector.broadcast %cst_277 : f32 to vector<8x1xf32>
    %417 = arith.divf %415, %416 : vector<8x1xf32>
    %418 = vector.broadcast %410 : vector<8x1xf32> to vector<8x32xf32>
    %419 = arith.subf %402, %418 : vector<8x32xf32>
    %cst_278 = arith.constant 9.99999974E-6 : f32
    %420 = vector.broadcast %cst_278 : f32 to vector<8x1xf32>
    %421 = arith.addf %417, %420 : vector<8x1xf32>
    %422 = math.rsqrt %421 : vector<8x1xf32>
    %423 = vector.broadcast %422 : vector<8x1xf32> to vector<8x32xf32>
    %424 = arith.mulf %419, %423 : vector<8x32xf32>
    %425 = vector.broadcast %404 : vector<1x32xf32> to vector<8x32xf32>
    %426 = arith.mulf %424, %425 : vector<8x32xf32>
    %427 = vector.broadcast %406 : vector<1x32xf32> to vector<8x32xf32>
    %428 = arith.addf %426, %427 : vector<8x32xf32>
    %c1_279 = arith.constant 1 : index
    %c0_280 = arith.constant 0 : index
    %c0_281 = arith.constant 0 : index
    %429 = vector.load %arg12[%c1_279, %c0_280, %c0_281] : memref<3x32x64xf32, #tpu.memory_space<vmem>>, vector<1x32x64xf32>
    %430 = vector.shape_cast %429 : vector<1x32x64xf32> to vector<32x64xf32>
    %cst_282 = arith.constant dense<0.000000e+00> : vector<8x64xf32>
    %431 = tpu.matmul %428, %430, %cst_282 {dimension_numbers = #tpu.dot_dimension_numbers<[1], [0], [0], [1], [0, 0, 1, 1], [], []>} : vector<8x32xf32>, vector<32x64xf32>, vector<8x64xf32> -> vector<8x64xf32>
    %c1_283 = arith.constant 1 : index
    %c0_284 = arith.constant 0 : index
    %c0_285 = arith.constant 0 : index
    %432 = vector.load %arg13[%c1_283, %c0_284, %c0_285] : memref<3x1x64xf32, #tpu.memory_space<vmem>>, vector<1x1x64xf32>
    %433 = vector.shape_cast %432 : vector<1x1x64xf32> to vector<1x64xf32>
    %434 = vector.broadcast %433 : vector<1x64xf32> to vector<8x64xf32>
    %435 = arith.addf %431, %434 : vector<8x64xf32>
    %cst_286 = arith.constant 0.000000e+00 : f32
    %436 = vector.broadcast %cst_286 : f32 to vector<8x64xf32>
    %437 = arith.maximumf %435, %436 : vector<8x64xf32>
    %c1_287 = arith.constant 1 : index
    %c0_288 = arith.constant 0 : index
    %c0_289 = arith.constant 0 : index
    %438 = vector.load %arg14[%c1_287, %c0_288, %c0_289] : memref<3x64x32xf32, #tpu.memory_space<vmem>>, vector<1x64x32xf32>
    %439 = vector.shape_cast %438 : vector<1x64x32xf32> to vector<64x32xf32>
    %cst_290 = arith.constant dense<0.000000e+00> : vector<8x32xf32>
    %440 = tpu.matmul %437, %439, %cst_290 {dimension_numbers = #tpu.dot_dimension_numbers<[1], [0], [0], [1], [0, 0, 1, 1], [], []>} : vector<8x64xf32>, vector<64x32xf32>, vector<8x32xf32> -> vector<8x32xf32>
    %c1_291 = arith.constant 1 : index
    %c0_292 = arith.constant 0 : index
    %c0_293 = arith.constant 0 : index
    %441 = vector.load %arg15[%c1_291, %c0_292, %c0_293] : memref<3x1x32xf32, #tpu.memory_space<vmem>>, vector<1x1x32xf32>
    %442 = vector.shape_cast %441 : vector<1x1x32xf32> to vector<1x32xf32>
    %443 = vector.broadcast %442 : vector<1x32xf32> to vector<8x32xf32>
    %444 = arith.addf %440, %443 : vector<8x32xf32>
    %445 = arith.addf %444, %428 : vector<8x32xf32>
    %c1_294 = arith.constant 1 : index
    %c0_295 = arith.constant 0 : index
    %c0_296 = arith.constant 0 : index
    %446 = vector.load %arg16[%c1_294, %c0_295, %c0_296] : memref<3x1x32xf32, #tpu.memory_space<vmem>>, vector<1x1x32xf32>
    %447 = vector.shape_cast %446 : vector<1x1x32xf32> to vector<1x32xf32>
    %c1_297 = arith.constant 1 : index
    %c0_298 = arith.constant 0 : index
    %c0_299 = arith.constant 0 : index
    %448 = vector.load %arg17[%c1_297, %c0_298, %c0_299] : memref<3x1x32xf32, #tpu.memory_space<vmem>>, vector<1x1x32xf32>
    %449 = vector.shape_cast %448 : vector<1x1x32xf32> to vector<1x32xf32>
    %cst_300 = arith.constant dense<0.000000e+00> : vector<8xf32>
    %450 = vector.multi_reduction <add>, %445, %cst_300 [1] : vector<8x32xf32> to vector<8xf32>
    %451 = vector.shape_cast %450 : vector<8xf32> to vector<8x1xf32>
    %cst_301 = arith.constant 3.200000e+01 : f32
    %452 = vector.broadcast %cst_301 : f32 to vector<8x1xf32>
    %453 = arith.divf %451, %452 : vector<8x1xf32>
    %454 = vector.broadcast %453 : vector<8x1xf32> to vector<8x32xf32>
    %455 = arith.subf %445, %454 : vector<8x32xf32>
    %456 = arith.mulf %455, %455 : vector<8x32xf32>
    %cst_302 = arith.constant dense<0.000000e+00> : vector<8xf32>
    %457 = vector.multi_reduction <add>, %456, %cst_302 [1] : vector<8x32xf32> to vector<8xf32>
    %458 = vector.shape_cast %457 : vector<8xf32> to vector<8x1xf32>
    %cst_303 = arith.constant 3.200000e+01 : f32
    %459 = vector.broadcast %cst_303 : f32 to vector<8x1xf32>
    %460 = arith.divf %458, %459 : vector<8x1xf32>
    %461 = vector.broadcast %453 : vector<8x1xf32> to vector<8x32xf32>
    %462 = arith.subf %445, %461 : vector<8x32xf32>
    %cst_304 = arith.constant 9.99999974E-6 : f32
    %463 = vector.broadcast %cst_304 : f32 to vector<8x1xf32>
    %464 = arith.addf %460, %463 : vector<8x1xf32>
    %465 = math.rsqrt %464 : vector<8x1xf32>
    %466 = vector.broadcast %465 : vector<8x1xf32> to vector<8x32xf32>
    %467 = arith.mulf %462, %466 : vector<8x32xf32>
    %468 = vector.broadcast %447 : vector<1x32xf32> to vector<8x32xf32>
    %469 = arith.mulf %467, %468 : vector<8x32xf32>
    %470 = vector.broadcast %449 : vector<1x32xf32> to vector<8x32xf32>
    %471 = arith.addf %469, %470 : vector<8x32xf32>
    %c2 = arith.constant 2 : index
    %c0_305 = arith.constant 0 : index
    %c0_306 = arith.constant 0 : index
    %472 = vector.load %arg6[%c2, %c0_305, %c0_306] : memref<3x32x96xf32, #tpu.memory_space<vmem>>, vector<1x32x96xf32>
    %473 = vector.shape_cast %472 : vector<1x32x96xf32> to vector<32x96xf32>
    %cst_307 = arith.constant dense<0.000000e+00> : vector<8x96xf32>
    %474 = tpu.matmul %471, %473, %cst_307 {dimension_numbers = #tpu.dot_dimension_numbers<[1], [0], [0], [1], [0, 0, 1, 1], [], []>} : vector<8x32xf32>, vector<32x96xf32>, vector<8x96xf32> -> vector<8x96xf32>
    %c2_308 = arith.constant 2 : index
    %c0_309 = arith.constant 0 : index
    %c0_310 = arith.constant 0 : index
    %475 = vector.load %arg7[%c2_308, %c0_309, %c0_310] : memref<3x1x96xf32, #tpu.memory_space<vmem>>, vector<1x1x96xf32>
    %476 = vector.shape_cast %475 : vector<1x1x96xf32> to vector<1x96xf32>
    %477 = vector.broadcast %476 : vector<1x96xf32> to vector<8x96xf32>
    %478 = arith.addf %474, %477 : vector<8x96xf32>
    %c0_311 = arith.constant 0 : index
    %c0_312 = arith.constant 0 : index
    %479 = vector.load %arg21[%c0_311, %c0_312] : memref<8x96xf32, #tpu.memory_space<vmem>>, vector<8x96xf32>
    tpu.vector_store %arg21[%c0_311, %c0_312], %478 {strides = array<i32>} : memref<8x96xf32, #tpu.memory_space<vmem>>, vector<8x96xf32>,
    %c0_313 = arith.constant 0 : index
    %c0_314 = arith.constant 0 : index
    %480 = vector.load %arg21[%c0_313, %c0_314] : memref<8x96xf32, #tpu.memory_space<vmem>>, vector<8x4xf32>
    %cst_315 = arith.constant 5.000000e-01 : f32
    %481 = vector.broadcast %cst_315 : f32 to vector<8x4xf32>
    %482 = arith.mulf %480, %481 : vector<8x4xf32>
    %c0_316 = arith.constant 0 : index
    %c32_317 = arith.constant 32 : index
    %483 = vector.load %arg21[%c0_316, %c32_317] : memref<8x96xf32, #tpu.memory_space<vmem>>, vector<8x4xf32>
    %c0_318 = arith.constant 0 : index
    %c64_319 = arith.constant 64 : index
    %484 = vector.load %arg21[%c0_318, %c64_319] : memref<8x96xf32, #tpu.memory_space<vmem>>, vector<8x4xf32>
    %cst_320 = arith.constant dense<0.000000e+00> : vector<8x8xf32>
    %485 = tpu.matmul %482, %483, %cst_320 {dimension_numbers = #tpu.dot_dimension_numbers<[1], [1], [0], [0], [0, 0, 1, 0], [], []>} : vector<8x4xf32>, vector<8x4xf32>, vector<8x8xf32> -> vector<8x8xf32>
    %cst_321 = arith.constant dense<0xFF800000> : vector<8xf32>
    %486 = vector.multi_reduction <maximumf>, %485, %cst_321 [1] : vector<8x8xf32> to vector<8xf32>
    %487 = vector.shape_cast %486 : vector<8xf32> to vector<8x1xf32>
    %488 = vector.broadcast %487 : vector<8x1xf32> to vector<8x8xf32>
    %489 = arith.subf %485, %488 : vector<8x8xf32>
    %490 = math.exp %489 : vector<8x8xf32>
    %cst_322 = arith.constant dense<0.000000e+00> : vector<8xf32>
    %491 = vector.multi_reduction <add>, %490, %cst_322 [1] : vector<8x8xf32> to vector<8xf32>
    %492 = vector.shape_cast %491 : vector<8xf32> to vector<8x1xf32>
    %493 = tpu.reciprocal %492 {approx = true} : vector<8x1xf32> -> vector<8x1xf32>
    %494 = vector.broadcast %493 : vector<8x1xf32> to vector<8x8xf32>
    %495 = arith.mulf %490, %494 : vector<8x8xf32>
    %cst_323 = arith.constant dense<0.000000e+00> : vector<8x4xf32>
    %496 = tpu.matmul %495, %484, %cst_323 {dimension_numbers = #tpu.dot_dimension_numbers<[1], [0], [0], [1], [0, 0, 1, 1], [], []>} : vector<8x8xf32>, vector<8x4xf32>, vector<8x4xf32> -> vector<8x4xf32>
    %c0_324 = arith.constant 0 : index
    %c0_325 = arith.constant 0 : index
    %497 = vector.load %arg22[%c0_324, %c0_325] : memref<8x32xf32, #tpu.memory_space<vmem>>, vector<8x4xf32>
    tpu.vector_store %arg22[%c0_324, %c0_325], %496 {strides = array<i32>} : memref<8x32xf32, #tpu.memory_space<vmem>>, vector<8x4xf32>,
    %c0_326 = arith.constant 0 : index
    %c4_327 = arith.constant 4 : index
    %498 = vector.load %arg21[%c0_326, %c4_327] : memref<8x96xf32, #tpu.memory_space<vmem>>, vector<8x4xf32>
    %cst_328 = arith.constant 5.000000e-01 : f32
    %499 = vector.broadcast %cst_328 : f32 to vector<8x4xf32>
    %500 = arith.mulf %498, %499 : vector<8x4xf32>
    %c0_329 = arith.constant 0 : index
    %c36_330 = arith.constant 36 : index
    %501 = vector.load %arg21[%c0_329, %c36_330] : memref<8x96xf32, #tpu.memory_space<vmem>>, vector<8x4xf32>
    %c0_331 = arith.constant 0 : index
    %c68_332 = arith.constant 68 : index
    %502 = vector.load %arg21[%c0_331, %c68_332] : memref<8x96xf32, #tpu.memory_space<vmem>>, vector<8x4xf32>
    %cst_333 = arith.constant dense<0.000000e+00> : vector<8x8xf32>
    %503 = tpu.matmul %500, %501, %cst_333 {dimension_numbers = #tpu.dot_dimension_numbers<[1], [1], [0], [0], [0, 0, 1, 0], [], []>} : vector<8x4xf32>, vector<8x4xf32>, vector<8x8xf32> -> vector<8x8xf32>
    %cst_334 = arith.constant dense<0xFF800000> : vector<8xf32>
    %504 = vector.multi_reduction <maximumf>, %503, %cst_334 [1] : vector<8x8xf32> to vector<8xf32>
    %505 = vector.shape_cast %504 : vector<8xf32> to vector<8x1xf32>
    %506 = vector.broadcast %505 : vector<8x1xf32> to vector<8x8xf32>
    %507 = arith.subf %503, %506 : vector<8x8xf32>
    %508 = math.exp %507 : vector<8x8xf32>
    %cst_335 = arith.constant dense<0.000000e+00> : vector<8xf32>
    %509 = vector.multi_reduction <add>, %508, %cst_335 [1] : vector<8x8xf32> to vector<8xf32>
    %510 = vector.shape_cast %509 : vector<8xf32> to vector<8x1xf32>
    %511 = tpu.reciprocal %510 {approx = true} : vector<8x1xf32> -> vector<8x1xf32>
    %512 = vector.broadcast %511 : vector<8x1xf32> to vector<8x8xf32>
    %513 = arith.mulf %508, %512 : vector<8x8xf32>
    %cst_336 = arith.constant dense<0.000000e+00> : vector<8x4xf32>
    %514 = tpu.matmul %513, %502, %cst_336 {dimension_numbers = #tpu.dot_dimension_numbers<[1], [0], [0], [1], [0, 0, 1, 1], [], []>} : vector<8x8xf32>, vector<8x4xf32>, vector<8x4xf32> -> vector<8x4xf32>
    %c0_337 = arith.constant 0 : index
    %c4_338 = arith.constant 4 : index
    %515 = vector.load %arg22[%c0_337, %c4_338] : memref<8x32xf32, #tpu.memory_space<vmem>>, vector<8x4xf32>
    tpu.vector_store %arg22[%c0_337, %c4_338], %514 {strides = array<i32>} : memref<8x32xf32, #tpu.memory_space<vmem>>, vector<8x4xf32>,
    %c0_339 = arith.constant 0 : index
    %c8_340 = arith.constant 8 : index
    %516 = vector.load %arg21[%c0_339, %c8_340] : memref<8x96xf32, #tpu.memory_space<vmem>>, vector<8x4xf32>
    %cst_341 = arith.constant 5.000000e-01 : f32
    %517 = vector.broadcast %cst_341 : f32 to vector<8x4xf32>
    %518 = arith.mulf %516, %517 : vector<8x4xf32>
    %c0_342 = arith.constant 0 : index
    %c40_343 = arith.constant 40 : index
    %519 = vector.load %arg21[%c0_342, %c40_343] : memref<8x96xf32, #tpu.memory_space<vmem>>, vector<8x4xf32>
    %c0_344 = arith.constant 0 : index
    %c72_345 = arith.constant 72 : index
    %520 = vector.load %arg21[%c0_344, %c72_345] : memref<8x96xf32, #tpu.memory_space<vmem>>, vector<8x4xf32>
    %cst_346 = arith.constant dense<0.000000e+00> : vector<8x8xf32>
    %521 = tpu.matmul %518, %519, %cst_346 {dimension_numbers = #tpu.dot_dimension_numbers<[1], [1], [0], [0], [0, 0, 1, 0], [], []>} : vector<8x4xf32>, vector<8x4xf32>, vector<8x8xf32> -> vector<8x8xf32>
    %cst_347 = arith.constant dense<0xFF800000> : vector<8xf32>
    %522 = vector.multi_reduction <maximumf>, %521, %cst_347 [1] : vector<8x8xf32> to vector<8xf32>
    %523 = vector.shape_cast %522 : vector<8xf32> to vector<8x1xf32>
    %524 = vector.broadcast %523 : vector<8x1xf32> to vector<8x8xf32>
    %525 = arith.subf %521, %524 : vector<8x8xf32>
    %526 = math.exp %525 : vector<8x8xf32>
    %cst_348 = arith.constant dense<0.000000e+00> : vector<8xf32>
    %527 = vector.multi_reduction <add>, %526, %cst_348 [1] : vector<8x8xf32> to vector<8xf32>
    %528 = vector.shape_cast %527 : vector<8xf32> to vector<8x1xf32>
    %529 = tpu.reciprocal %528 {approx = true} : vector<8x1xf32> -> vector<8x1xf32>
    %530 = vector.broadcast %529 : vector<8x1xf32> to vector<8x8xf32>
    %531 = arith.mulf %526, %530 : vector<8x8xf32>
    %cst_349 = arith.constant dense<0.000000e+00> : vector<8x4xf32>
    %532 = tpu.matmul %531, %520, %cst_349 {dimension_numbers = #tpu.dot_dimension_numbers<[1], [0], [0], [1], [0, 0, 1, 1], [], []>} : vector<8x8xf32>, vector<8x4xf32>, vector<8x4xf32> -> vector<8x4xf32>
    %c0_350 = arith.constant 0 : index
    %c8_351 = arith.constant 8 : index
    %533 = vector.load %arg22[%c0_350, %c8_351] : memref<8x32xf32, #tpu.memory_space<vmem>>, vector<8x4xf32>
    tpu.vector_store %arg22[%c0_350, %c8_351], %532 {strides = array<i32>} : memref<8x32xf32, #tpu.memory_space<vmem>>, vector<8x4xf32>,
    %c0_352 = arith.constant 0 : index
    %c12_353 = arith.constant 12 : index
    %534 = vector.load %arg21[%c0_352, %c12_353] : memref<8x96xf32, #tpu.memory_space<vmem>>, vector<8x4xf32>
    %cst_354 = arith.constant 5.000000e-01 : f32
    %535 = vector.broadcast %cst_354 : f32 to vector<8x4xf32>
    %536 = arith.mulf %534, %535 : vector<8x4xf32>
    %c0_355 = arith.constant 0 : index
    %c44_356 = arith.constant 44 : index
    %537 = vector.load %arg21[%c0_355, %c44_356] : memref<8x96xf32, #tpu.memory_space<vmem>>, vector<8x4xf32>
    %c0_357 = arith.constant 0 : index
    %c76_358 = arith.constant 76 : index
    %538 = vector.load %arg21[%c0_357, %c76_358] : memref<8x96xf32, #tpu.memory_space<vmem>>, vector<8x4xf32>
    %cst_359 = arith.constant dense<0.000000e+00> : vector<8x8xf32>
    %539 = tpu.matmul %536, %537, %cst_359 {dimension_numbers = #tpu.dot_dimension_numbers<[1], [1], [0], [0], [0, 0, 1, 0], [], []>} : vector<8x4xf32>, vector<8x4xf32>, vector<8x8xf32> -> vector<8x8xf32>
    %cst_360 = arith.constant dense<0xFF800000> : vector<8xf32>
    %540 = vector.multi_reduction <maximumf>, %539, %cst_360 [1] : vector<8x8xf32> to vector<8xf32>
    %541 = vector.shape_cast %540 : vector<8xf32> to vector<8x1xf32>
    %542 = vector.broadcast %541 : vector<8x1xf32> to vector<8x8xf32>
    %543 = arith.subf %539, %542 : vector<8x8xf32>
    %544 = math.exp %543 : vector<8x8xf32>
    %cst_361 = arith.constant dense<0.000000e+00> : vector<8xf32>
    %545 = vector.multi_reduction <add>, %544, %cst_361 [1] : vector<8x8xf32> to vector<8xf32>
    %546 = vector.shape_cast %545 : vector<8xf32> to vector<8x1xf32>
    %547 = tpu.reciprocal %546 {approx = true} : vector<8x1xf32> -> vector<8x1xf32>
    %548 = vector.broadcast %547 : vector<8x1xf32> to vector<8x8xf32>
    %549 = arith.mulf %544, %548 : vector<8x8xf32>
    %cst_362 = arith.constant dense<0.000000e+00> : vector<8x4xf32>
    %550 = tpu.matmul %549, %538, %cst_362 {dimension_numbers = #tpu.dot_dimension_numbers<[1], [0], [0], [1], [0, 0, 1, 1], [], []>} : vector<8x8xf32>, vector<8x4xf32>, vector<8x4xf32> -> vector<8x4xf32>
    %c0_363 = arith.constant 0 : index
    %c12_364 = arith.constant 12 : index
    %551 = vector.load %arg22[%c0_363, %c12_364] : memref<8x32xf32, #tpu.memory_space<vmem>>, vector<8x4xf32>
    tpu.vector_store %arg22[%c0_363, %c12_364], %550 {strides = array<i32>} : memref<8x32xf32, #tpu.memory_space<vmem>>, vector<8x4xf32>,
    %c0_365 = arith.constant 0 : index
    %c16_366 = arith.constant 16 : index
    %552 = vector.load %arg21[%c0_365, %c16_366] : memref<8x96xf32, #tpu.memory_space<vmem>>, vector<8x4xf32>
    %cst_367 = arith.constant 5.000000e-01 : f32
    %553 = vector.broadcast %cst_367 : f32 to vector<8x4xf32>
    %554 = arith.mulf %552, %553 : vector<8x4xf32>
    %c0_368 = arith.constant 0 : index
    %c48_369 = arith.constant 48 : index
    %555 = vector.load %arg21[%c0_368, %c48_369] : memref<8x96xf32, #tpu.memory_space<vmem>>, vector<8x4xf32>
    %c0_370 = arith.constant 0 : index
    %c80_371 = arith.constant 80 : index
    %556 = vector.load %arg21[%c0_370, %c80_371] : memref<8x96xf32, #tpu.memory_space<vmem>>, vector<8x4xf32>
    %cst_372 = arith.constant dense<0.000000e+00> : vector<8x8xf32>
    %557 = tpu.matmul %554, %555, %cst_372 {dimension_numbers = #tpu.dot_dimension_numbers<[1], [1], [0], [0], [0, 0, 1, 0], [], []>} : vector<8x4xf32>, vector<8x4xf32>, vector<8x8xf32> -> vector<8x8xf32>
    %cst_373 = arith.constant dense<0xFF800000> : vector<8xf32>
    %558 = vector.multi_reduction <maximumf>, %557, %cst_373 [1] : vector<8x8xf32> to vector<8xf32>
    %559 = vector.shape_cast %558 : vector<8xf32> to vector<8x1xf32>
    %560 = vector.broadcast %559 : vector<8x1xf32> to vector<8x8xf32>
    %561 = arith.subf %557, %560 : vector<8x8xf32>
    %562 = math.exp %561 : vector<8x8xf32>
    %cst_374 = arith.constant dense<0.000000e+00> : vector<8xf32>
    %563 = vector.multi_reduction <add>, %562, %cst_374 [1] : vector<8x8xf32> to vector<8xf32>
    %564 = vector.shape_cast %563 : vector<8xf32> to vector<8x1xf32>
    %565 = tpu.reciprocal %564 {approx = true} : vector<8x1xf32> -> vector<8x1xf32>
    %566 = vector.broadcast %565 : vector<8x1xf32> to vector<8x8xf32>
    %567 = arith.mulf %562, %566 : vector<8x8xf32>
    %cst_375 = arith.constant dense<0.000000e+00> : vector<8x4xf32>
    %568 = tpu.matmul %567, %556, %cst_375 {dimension_numbers = #tpu.dot_dimension_numbers<[1], [0], [0], [1], [0, 0, 1, 1], [], []>} : vector<8x8xf32>, vector<8x4xf32>, vector<8x4xf32> -> vector<8x4xf32>
    %c0_376 = arith.constant 0 : index
    %c16_377 = arith.constant 16 : index
    %569 = vector.load %arg22[%c0_376, %c16_377] : memref<8x32xf32, #tpu.memory_space<vmem>>, vector<8x4xf32>
    tpu.vector_store %arg22[%c0_376, %c16_377], %568 {strides = array<i32>} : memref<8x32xf32, #tpu.memory_space<vmem>>, vector<8x4xf32>,
    %c0_378 = arith.constant 0 : index
    %c20_379 = arith.constant 20 : index
    %570 = vector.load %arg21[%c0_378, %c20_379] : memref<8x96xf32, #tpu.memory_space<vmem>>, vector<8x4xf32>
    %cst_380 = arith.constant 5.000000e-01 : f32
    %571 = vector.broadcast %cst_380 : f32 to vector<8x4xf32>
    %572 = arith.mulf %570, %571 : vector<8x4xf32>
    %c0_381 = arith.constant 0 : index
    %c52_382 = arith.constant 52 : index
    %573 = vector.load %arg21[%c0_381, %c52_382] : memref<8x96xf32, #tpu.memory_space<vmem>>, vector<8x4xf32>
    %c0_383 = arith.constant 0 : index
    %c84_384 = arith.constant 84 : index
    %574 = vector.load %arg21[%c0_383, %c84_384] : memref<8x96xf32, #tpu.memory_space<vmem>>, vector<8x4xf32>
    %cst_385 = arith.constant dense<0.000000e+00> : vector<8x8xf32>
    %575 = tpu.matmul %572, %573, %cst_385 {dimension_numbers = #tpu.dot_dimension_numbers<[1], [1], [0], [0], [0, 0, 1, 0], [], []>} : vector<8x4xf32>, vector<8x4xf32>, vector<8x8xf32> -> vector<8x8xf32>
    %cst_386 = arith.constant dense<0xFF800000> : vector<8xf32>
    %576 = vector.multi_reduction <maximumf>, %575, %cst_386 [1] : vector<8x8xf32> to vector<8xf32>
    %577 = vector.shape_cast %576 : vector<8xf32> to vector<8x1xf32>
    %578 = vector.broadcast %577 : vector<8x1xf32> to vector<8x8xf32>
    %579 = arith.subf %575, %578 : vector<8x8xf32>
    %580 = math.exp %579 : vector<8x8xf32>
    %cst_387 = arith.constant dense<0.000000e+00> : vector<8xf32>
    %581 = vector.multi_reduction <add>, %580, %cst_387 [1] : vector<8x8xf32> to vector<8xf32>
    %582 = vector.shape_cast %581 : vector<8xf32> to vector<8x1xf32>
    %583 = tpu.reciprocal %582 {approx = true} : vector<8x1xf32> -> vector<8x1xf32>
    %584 = vector.broadcast %583 : vector<8x1xf32> to vector<8x8xf32>
    %585 = arith.mulf %580, %584 : vector<8x8xf32>
    %cst_388 = arith.constant dense<0.000000e+00> : vector<8x4xf32>
    %586 = tpu.matmul %585, %574, %cst_388 {dimension_numbers = #tpu.dot_dimension_numbers<[1], [0], [0], [1], [0, 0, 1, 1], [], []>} : vector<8x8xf32>, vector<8x4xf32>, vector<8x4xf32> -> vector<8x4xf32>
    %c0_389 = arith.constant 0 : index
    %c20_390 = arith.constant 20 : index
    %587 = vector.load %arg22[%c0_389, %c20_390] : memref<8x32xf32, #tpu.memory_space<vmem>>, vector<8x4xf32>
    tpu.vector_store %arg22[%c0_389, %c20_390], %586 {strides = array<i32>} : memref<8x32xf32, #tpu.memory_space<vmem>>, vector<8x4xf32>,
    %c0_391 = arith.constant 0 : index
    %c24_392 = arith.constant 24 : index
    %588 = vector.load %arg21[%c0_391, %c24_392] : memref<8x96xf32, #tpu.memory_space<vmem>>, vector<8x4xf32>
    %cst_393 = arith.constant 5.000000e-01 : f32
    %589 = vector.broadcast %cst_393 : f32 to vector<8x4xf32>
    %590 = arith.mulf %588, %589 : vector<8x4xf32>
    %c0_394 = arith.constant 0 : index
    %c56_395 = arith.constant 56 : index
    %591 = vector.load %arg21[%c0_394, %c56_395] : memref<8x96xf32, #tpu.memory_space<vmem>>, vector<8x4xf32>
    %c0_396 = arith.constant 0 : index
    %c88_397 = arith.constant 88 : index
    %592 = vector.load %arg21[%c0_396, %c88_397] : memref<8x96xf32, #tpu.memory_space<vmem>>, vector<8x4xf32>
    %cst_398 = arith.constant dense<0.000000e+00> : vector<8x8xf32>
    %593 = tpu.matmul %590, %591, %cst_398 {dimension_numbers = #tpu.dot_dimension_numbers<[1], [1], [0], [0], [0, 0, 1, 0], [], []>} : vector<8x4xf32>, vector<8x4xf32>, vector<8x8xf32> -> vector<8x8xf32>
    %cst_399 = arith.constant dense<0xFF800000> : vector<8xf32>
    %594 = vector.multi_reduction <maximumf>, %593, %cst_399 [1] : vector<8x8xf32> to vector<8xf32>
    %595 = vector.shape_cast %594 : vector<8xf32> to vector<8x1xf32>
    %596 = vector.broadcast %595 : vector<8x1xf32> to vector<8x8xf32>
    %597 = arith.subf %593, %596 : vector<8x8xf32>
    %598 = math.exp %597 : vector<8x8xf32>
    %cst_400 = arith.constant dense<0.000000e+00> : vector<8xf32>
    %599 = vector.multi_reduction <add>, %598, %cst_400 [1] : vector<8x8xf32> to vector<8xf32>
    %600 = vector.shape_cast %599 : vector<8xf32> to vector<8x1xf32>
    %601 = tpu.reciprocal %600 {approx = true} : vector<8x1xf32> -> vector<8x1xf32>
    %602 = vector.broadcast %601 : vector<8x1xf32> to vector<8x8xf32>
    %603 = arith.mulf %598, %602 : vector<8x8xf32>
    %cst_401 = arith.constant dense<0.000000e+00> : vector<8x4xf32>
    %604 = tpu.matmul %603, %592, %cst_401 {dimension_numbers = #tpu.dot_dimension_numbers<[1], [0], [0], [1], [0, 0, 1, 1], [], []>} : vector<8x8xf32>, vector<8x4xf32>, vector<8x4xf32> -> vector<8x4xf32>
    %c0_402 = arith.constant 0 : index
    %c24_403 = arith.constant 24 : index
    %605 = vector.load %arg22[%c0_402, %c24_403] : memref<8x32xf32, #tpu.memory_space<vmem>>, vector<8x4xf32>
    tpu.vector_store %arg22[%c0_402, %c24_403], %604 {strides = array<i32>} : memref<8x32xf32, #tpu.memory_space<vmem>>, vector<8x4xf32>,
    %c0_404 = arith.constant 0 : index
    %c28_405 = arith.constant 28 : index
    %606 = vector.load %arg21[%c0_404, %c28_405] : memref<8x96xf32, #tpu.memory_space<vmem>>, vector<8x4xf32>
    %cst_406 = arith.constant 5.000000e-01 : f32
    %607 = vector.broadcast %cst_406 : f32 to vector<8x4xf32>
    %608 = arith.mulf %606, %607 : vector<8x4xf32>
    %c0_407 = arith.constant 0 : index
    %c60_408 = arith.constant 60 : index
    %609 = vector.load %arg21[%c0_407, %c60_408] : memref<8x96xf32, #tpu.memory_space<vmem>>, vector<8x4xf32>
    %c0_409 = arith.constant 0 : index
    %c92_410 = arith.constant 92 : index
    %610 = vector.load %arg21[%c0_409, %c92_410] : memref<8x96xf32, #tpu.memory_space<vmem>>, vector<8x4xf32>
    %cst_411 = arith.constant dense<0.000000e+00> : vector<8x8xf32>
    %611 = tpu.matmul %608, %609, %cst_411 {dimension_numbers = #tpu.dot_dimension_numbers<[1], [1], [0], [0], [0, 0, 1, 0], [], []>} : vector<8x4xf32>, vector<8x4xf32>, vector<8x8xf32> -> vector<8x8xf32>
    %cst_412 = arith.constant dense<0xFF800000> : vector<8xf32>
    %612 = vector.multi_reduction <maximumf>, %611, %cst_412 [1] : vector<8x8xf32> to vector<8xf32>
    %613 = vector.shape_cast %612 : vector<8xf32> to vector<8x1xf32>
    %614 = vector.broadcast %613 : vector<8x1xf32> to vector<8x8xf32>
    %615 = arith.subf %611, %614 : vector<8x8xf32>
    %616 = math.exp %615 : vector<8x8xf32>
    %cst_413 = arith.constant dense<0.000000e+00> : vector<8xf32>
    %617 = vector.multi_reduction <add>, %616, %cst_413 [1] : vector<8x8xf32> to vector<8xf32>
    %618 = vector.shape_cast %617 : vector<8xf32> to vector<8x1xf32>
    %619 = tpu.reciprocal %618 {approx = true} : vector<8x1xf32> -> vector<8x1xf32>
    %620 = vector.broadcast %619 : vector<8x1xf32> to vector<8x8xf32>
    %621 = arith.mulf %616, %620 : vector<8x8xf32>
    %cst_414 = arith.constant dense<0.000000e+00> : vector<8x4xf32>
    %622 = tpu.matmul %621, %610, %cst_414 {dimension_numbers = #tpu.dot_dimension_numbers<[1], [0], [0], [1], [0, 0, 1, 1], [], []>} : vector<8x8xf32>, vector<8x4xf32>, vector<8x4xf32> -> vector<8x4xf32>
    %c0_415 = arith.constant 0 : index
    %c28_416 = arith.constant 28 : index
    %623 = vector.load %arg22[%c0_415, %c28_416] : memref<8x32xf32, #tpu.memory_space<vmem>>, vector<8x4xf32>
    tpu.vector_store %arg22[%c0_415, %c28_416], %622 {strides = array<i32>} : memref<8x32xf32, #tpu.memory_space<vmem>>, vector<8x4xf32>,
    %c0_417 = arith.constant 0 : index
    %c0_418 = arith.constant 0 : index
    %624 = vector.load %arg22[%c0_417, %c0_418] : memref<8x32xf32, #tpu.memory_space<vmem>>, vector<8x32xf32>
    %c2_419 = arith.constant 2 : index
    %c0_420 = arith.constant 0 : index
    %c0_421 = arith.constant 0 : index
    %625 = vector.load %arg8[%c2_419, %c0_420, %c0_421] : memref<3x32x32xf32, #tpu.memory_space<vmem>>, vector<1x32x32xf32>
    %626 = vector.shape_cast %625 : vector<1x32x32xf32> to vector<32x32xf32>
    %cst_422 = arith.constant dense<0.000000e+00> : vector<8x32xf32>
    %627 = tpu.matmul %624, %626, %cst_422 {dimension_numbers = #tpu.dot_dimension_numbers<[1], [0], [0], [1], [0, 0, 1, 1], [], []>} : vector<8x32xf32>, vector<32x32xf32>, vector<8x32xf32> -> vector<8x32xf32>
    %c2_423 = arith.constant 2 : index
    %c0_424 = arith.constant 0 : index
    %c0_425 = arith.constant 0 : index
    %628 = vector.load %arg9[%c2_423, %c0_424, %c0_425] : memref<3x1x32xf32, #tpu.memory_space<vmem>>, vector<1x1x32xf32>
    %629 = vector.shape_cast %628 : vector<1x1x32xf32> to vector<1x32xf32>
    %630 = vector.broadcast %629 : vector<1x32xf32> to vector<8x32xf32>
    %631 = arith.addf %627, %630 : vector<8x32xf32>
    %632 = arith.addf %631, %471 : vector<8x32xf32>
    %c2_426 = arith.constant 2 : index
    %c0_427 = arith.constant 0 : index
    %c0_428 = arith.constant 0 : index
    %633 = vector.load %arg10[%c2_426, %c0_427, %c0_428] : memref<3x1x32xf32, #tpu.memory_space<vmem>>, vector<1x1x32xf32>
    %634 = vector.shape_cast %633 : vector<1x1x32xf32> to vector<1x32xf32>
    %c2_429 = arith.constant 2 : index
    %c0_430 = arith.constant 0 : index
    %c0_431 = arith.constant 0 : index
    %635 = vector.load %arg11[%c2_429, %c0_430, %c0_431] : memref<3x1x32xf32, #tpu.memory_space<vmem>>, vector<1x1x32xf32>
    %636 = vector.shape_cast %635 : vector<1x1x32xf32> to vector<1x32xf32>
    %cst_432 = arith.constant dense<0.000000e+00> : vector<8xf32>
    %637 = vector.multi_reduction <add>, %632, %cst_432 [1] : vector<8x32xf32> to vector<8xf32>
    %638 = vector.shape_cast %637 : vector<8xf32> to vector<8x1xf32>
    %cst_433 = arith.constant 3.200000e+01 : f32
    %639 = vector.broadcast %cst_433 : f32 to vector<8x1xf32>
    %640 = arith.divf %638, %639 : vector<8x1xf32>
    %641 = vector.broadcast %640 : vector<8x1xf32> to vector<8x32xf32>
    %642 = arith.subf %632, %641 : vector<8x32xf32>
    %643 = arith.mulf %642, %642 : vector<8x32xf32>
    %cst_434 = arith.constant dense<0.000000e+00> : vector<8xf32>
    %644 = vector.multi_reduction <add>, %643, %cst_434 [1] : vector<8x32xf32> to vector<8xf32>
    %645 = vector.shape_cast %644 : vector<8xf32> to vector<8x1xf32>
    %cst_435 = arith.constant 3.200000e+01 : f32
    %646 = vector.broadcast %cst_435 : f32 to vector<8x1xf32>
    %647 = arith.divf %645, %646 : vector<8x1xf32>
    %648 = vector.broadcast %640 : vector<8x1xf32> to vector<8x32xf32>
    %649 = arith.subf %632, %648 : vector<8x32xf32>
    %cst_436 = arith.constant 9.99999974E-6 : f32
    %650 = vector.broadcast %cst_436 : f32 to vector<8x1xf32>
    %651 = arith.addf %647, %650 : vector<8x1xf32>
    %652 = math.rsqrt %651 : vector<8x1xf32>
    %653 = vector.broadcast %652 : vector<8x1xf32> to vector<8x32xf32>
    %654 = arith.mulf %649, %653 : vector<8x32xf32>
    %655 = vector.broadcast %634 : vector<1x32xf32> to vector<8x32xf32>
    %656 = arith.mulf %654, %655 : vector<8x32xf32>
    %657 = vector.broadcast %636 : vector<1x32xf32> to vector<8x32xf32>
    %658 = arith.addf %656, %657 : vector<8x32xf32>
    %c2_437 = arith.constant 2 : index
    %c0_438 = arith.constant 0 : index
    %c0_439 = arith.constant 0 : index
    %659 = vector.load %arg12[%c2_437, %c0_438, %c0_439] : memref<3x32x64xf32, #tpu.memory_space<vmem>>, vector<1x32x64xf32>
    %660 = vector.shape_cast %659 : vector<1x32x64xf32> to vector<32x64xf32>
    %cst_440 = arith.constant dense<0.000000e+00> : vector<8x64xf32>
    %661 = tpu.matmul %658, %660, %cst_440 {dimension_numbers = #tpu.dot_dimension_numbers<[1], [0], [0], [1], [0, 0, 1, 1], [], []>} : vector<8x32xf32>, vector<32x64xf32>, vector<8x64xf32> -> vector<8x64xf32>
    %c2_441 = arith.constant 2 : index
    %c0_442 = arith.constant 0 : index
    %c0_443 = arith.constant 0 : index
    %662 = vector.load %arg13[%c2_441, %c0_442, %c0_443] : memref<3x1x64xf32, #tpu.memory_space<vmem>>, vector<1x1x64xf32>
    %663 = vector.shape_cast %662 : vector<1x1x64xf32> to vector<1x64xf32>
    %664 = vector.broadcast %663 : vector<1x64xf32> to vector<8x64xf32>
    %665 = arith.addf %661, %664 : vector<8x64xf32>
    %cst_444 = arith.constant 0.000000e+00 : f32
    %666 = vector.broadcast %cst_444 : f32 to vector<8x64xf32>
    %667 = arith.maximumf %665, %666 : vector<8x64xf32>
    %c2_445 = arith.constant 2 : index
    %c0_446 = arith.constant 0 : index
    %c0_447 = arith.constant 0 : index
    %668 = vector.load %arg14[%c2_445, %c0_446, %c0_447] : memref<3x64x32xf32, #tpu.memory_space<vmem>>, vector<1x64x32xf32>
    %669 = vector.shape_cast %668 : vector<1x64x32xf32> to vector<64x32xf32>
    %cst_448 = arith.constant dense<0.000000e+00> : vector<8x32xf32>
    %670 = tpu.matmul %667, %669, %cst_448 {dimension_numbers = #tpu.dot_dimension_numbers<[1], [0], [0], [1], [0, 0, 1, 1], [], []>} : vector<8x64xf32>, vector<64x32xf32>, vector<8x32xf32> -> vector<8x32xf32>
    %c2_449 = arith.constant 2 : index
    %c0_450 = arith.constant 0 : index
    %c0_451 = arith.constant 0 : index
    %671 = vector.load %arg15[%c2_449, %c0_450, %c0_451] : memref<3x1x32xf32, #tpu.memory_space<vmem>>, vector<1x1x32xf32>
    %672 = vector.shape_cast %671 : vector<1x1x32xf32> to vector<1x32xf32>
    %673 = vector.broadcast %672 : vector<1x32xf32> to vector<8x32xf32>
    %674 = arith.addf %670, %673 : vector<8x32xf32>
    %675 = arith.addf %674, %658 : vector<8x32xf32>
    %c2_452 = arith.constant 2 : index
    %c0_453 = arith.constant 0 : index
    %c0_454 = arith.constant 0 : index
    %676 = vector.load %arg16[%c2_452, %c0_453, %c0_454] : memref<3x1x32xf32, #tpu.memory_space<vmem>>, vector<1x1x32xf32>
    %677 = vector.shape_cast %676 : vector<1x1x32xf32> to vector<1x32xf32>
    %c2_455 = arith.constant 2 : index
    %c0_456 = arith.constant 0 : index
    %c0_457 = arith.constant 0 : index
    %678 = vector.load %arg17[%c2_455, %c0_456, %c0_457] : memref<3x1x32xf32, #tpu.memory_space<vmem>>, vector<1x1x32xf32>
    %679 = vector.shape_cast %678 : vector<1x1x32xf32> to vector<1x32xf32>
    %cst_458 = arith.constant dense<0.000000e+00> : vector<8xf32>
    %680 = vector.multi_reduction <add>, %675, %cst_458 [1] : vector<8x32xf32> to vector<8xf32>
    %681 = vector.shape_cast %680 : vector<8xf32> to vector<8x1xf32>
    %cst_459 = arith.constant 3.200000e+01 : f32
    %682 = vector.broadcast %cst_459 : f32 to vector<8x1xf32>
    %683 = arith.divf %681, %682 : vector<8x1xf32>
    %684 = vector.broadcast %683 : vector<8x1xf32> to vector<8x32xf32>
    %685 = arith.subf %675, %684 : vector<8x32xf32>
    %686 = arith.mulf %685, %685 : vector<8x32xf32>
    %cst_460 = arith.constant dense<0.000000e+00> : vector<8xf32>
    %687 = vector.multi_reduction <add>, %686, %cst_460 [1] : vector<8x32xf32> to vector<8xf32>
    %688 = vector.shape_cast %687 : vector<8xf32> to vector<8x1xf32>
    %cst_461 = arith.constant 3.200000e+01 : f32
    %689 = vector.broadcast %cst_461 : f32 to vector<8x1xf32>
    %690 = arith.divf %688, %689 : vector<8x1xf32>
    %691 = vector.broadcast %683 : vector<8x1xf32> to vector<8x32xf32>
    %692 = arith.subf %675, %691 : vector<8x32xf32>
    %cst_462 = arith.constant 9.99999974E-6 : f32
    %693 = vector.broadcast %cst_462 : f32 to vector<8x1xf32>
    %694 = arith.addf %690, %693 : vector<8x1xf32>
    %695 = math.rsqrt %694 : vector<8x1xf32>
    %696 = vector.broadcast %695 : vector<8x1xf32> to vector<8x32xf32>
    %697 = arith.mulf %692, %696 : vector<8x32xf32>
    %698 = vector.broadcast %677 : vector<1x32xf32> to vector<8x32xf32>
    %699 = arith.mulf %697, %698 : vector<8x32xf32>
    %700 = vector.broadcast %679 : vector<1x32xf32> to vector<8x32xf32>
    %701 = arith.addf %699, %700 : vector<8x32xf32>
    %c0_463 = arith.constant 0 : index
    %c0_464 = arith.constant 0 : index
    %702 = vector.load %arg18[%c0_463, %c0_464] : memref<32x40xf32, #tpu.memory_space<vmem>>, vector<32x40xf32>
    %cst_465 = arith.constant dense<0.000000e+00> : vector<8x40xf32>
    %703 = tpu.matmul %701, %702, %cst_465 {dimension_numbers = #tpu.dot_dimension_numbers<[1], [0], [0], [1], [0, 0, 1, 1], [], []>} : vector<8x32xf32>, vector<32x40xf32>, vector<8x40xf32> -> vector<8x40xf32>
    %c0_466 = arith.constant 0 : index
    %c0_467 = arith.constant 0 : index
    %704 = vector.load %arg19[%c0_466, %c0_467] : memref<1x40xf32, #tpu.memory_space<vmem>>, vector<1x40xf32>
    %705 = vector.broadcast %704 : vector<1x40xf32> to vector<8x40xf32>
    %706 = arith.addf %703, %705 : vector<8x40xf32>
    %c0_468 = arith.constant 0 : index
    %c0_469 = arith.constant 0 : index
    %c0_470 = arith.constant 0 : index
    %707 = vector.load %arg20[%c0_468, %c0_469, %c0_470] : memref<1x8x40xf32, #tpu.memory_space<vmem>>, vector<1x8x40xf32>
    %708 = vector.shape_cast %707 : vector<1x8x40xf32> to vector<8x40xf32>
    %709 = vector.shape_cast %706 : vector<8x40xf32> to vector<1x8x40xf32>
    tpu.vector_store %arg20[%c0_468, %c0_469, %c0_470], %709 {strides = array<i32>} : memref<1x8x40xf32, #tpu.memory_space<vmem>>, vector<1x8x40xf32>,
    return
  }
  func.func @transform_0(%arg0: i32) -> (i32, i32, i32) {
    %c0_i32 = arith.constant 0 : i32
    %c0_i32_0 = arith.constant 0 : i32
    %c0_i32_1 = arith.constant 0 : i32
    return %arg0, %c0_i32, %c0_i32_0 : i32, i32, i32
  }
  func.func @transform_1(%arg0: i32) -> (i32, i32) {
    %c0_i32 = arith.constant 0 : i32
    %c0_i32_0 = arith.constant 0 : i32
    %c0_i32_1 = arith.constant 0 : i32
    return %c0_i32, %c0_i32_0 : i32, i32
  }
  func.func @transform_2(%arg0: i32) -> (i32, i32) {
    %c0_i32 = arith.constant 0 : i32
    %c0_i32_0 = arith.constant 0 : i32
    %c0_i32_1 = arith.constant 0 : i32
    return %c0_i32, %c0_i32_0 : i32, i32
  }
  func.func @transform_3(%arg0: i32) -> (i32, i32) {
    %c0_i32 = arith.constant 0 : i32
    %c0_i32_0 = arith.constant 0 : i32
    %c0_i32_1 = arith.constant 0 : i32
    return %c0_i32, %c0_i32_0 : i32, i32
  }
  func.func @transform_4(%arg0: i32) -> (i32, i32) {
    %c0_i32 = arith.constant 0 : i32
    %c0_i32_0 = arith.constant 0 : i32
    %c0_i32_1 = arith.constant 0 : i32
    return %c0_i32, %c0_i32_0 : i32, i32
  }
  func.func @transform_5(%arg0: i32) -> (i32, i32, i32) {
    %c0_i32 = arith.constant 0 : i32
    %c0_i32_0 = arith.constant 0 : i32
    %c0_i32_1 = arith.constant 0 : i32
    %c0_i32_2 = arith.constant 0 : i32
    return %c0_i32, %c0_i32_0, %c0_i32_1 : i32, i32, i32
  }
  func.func @transform_6(%arg0: i32) -> (i32, i32, i32) {
    %c0_i32 = arith.constant 0 : i32
    %c0_i32_0 = arith.constant 0 : i32
    %c0_i32_1 = arith.constant 0 : i32
    %c0_i32_2 = arith.constant 0 : i32
    return %c0_i32, %c0_i32_0, %c0_i32_1 : i32, i32, i32
  }
  func.func @transform_7(%arg0: i32) -> (i32, i32, i32) {
    %c0_i32 = arith.constant 0 : i32
    %c0_i32_0 = arith.constant 0 : i32
    %c0_i32_1 = arith.constant 0 : i32
    %c0_i32_2 = arith.constant 0 : i32
    return %c0_i32, %c0_i32_0, %c0_i32_1 : i32, i32, i32
  }
  func.func @transform_8(%arg0: i32) -> (i32, i32, i32) {
    %c0_i32 = arith.constant 0 : i32
    %c0_i32_0 = arith.constant 0 : i32
    %c0_i32_1 = arith.constant 0 : i32
    %c0_i32_2 = arith.constant 0 : i32
    return %c0_i32, %c0_i32_0, %c0_i32_1 : i32, i32, i32
  }
  func.func @transform_9(%arg0: i32) -> (i32, i32, i32) {
    %c0_i32 = arith.constant 0 : i32
    %c0_i32_0 = arith.constant 0 : i32
    %c0_i32_1 = arith.constant 0 : i32
    %c0_i32_2 = arith.constant 0 : i32
    return %c0_i32, %c0_i32_0, %c0_i32_1 : i32, i32, i32
  }
  func.func @transform_10(%arg0: i32) -> (i32, i32, i32) {
    %c0_i32 = arith.constant 0 : i32
    %c0_i32_0 = arith.constant 0 : i32
    %c0_i32_1 = arith.constant 0 : i32
    %c0_i32_2 = arith.constant 0 : i32
    return %c0_i32, %c0_i32_0, %c0_i32_1 : i32, i32, i32
  }
  func.func @transform_11(%arg0: i32) -> (i32, i32, i32) {
    %c0_i32 = arith.constant 0 : i32
    %c0_i32_0 = arith.constant 0 : i32
    %c0_i32_1 = arith.constant 0 : i32
    %c0_i32_2 = arith.constant 0 : i32
    return %c0_i32, %c0_i32_0, %c0_i32_1 : i32, i32, i32
  }
  func.func @transform_12(%arg0: i32) -> (i32, i32, i32) {
    %c0_i32 = arith.constant 0 : i32
    %c0_i32_0 = arith.constant 0 : i32
    %c0_i32_1 = arith.constant 0 : i32
    %c0_i32_2 = arith.constant 0 : i32
    return %c0_i32, %c0_i32_0, %c0_i32_1 : i32, i32, i32
  }
  func.func @transform_13(%arg0: i32) -> (i32, i32, i32) {
    %c0_i32 = arith.constant 0 : i32
    %c0_i32_0 = arith.constant 0 : i32
    %c0_i32_1 = arith.constant 0 : i32
    %c0_i32_2 = arith.constant 0 : i32
    return %c0_i32, %c0_i32_0, %c0_i32_1 : i32, i32, i32
  }
  func.func @transform_14(%arg0: i32) -> (i32, i32, i32) {
    %c0_i32 = arith.constant 0 : i32
    %c0_i32_0 = arith.constant 0 : i32
    %c0_i32_1 = arith.constant 0 : i32
    %c0_i32_2 = arith.constant 0 : i32
    return %c0_i32, %c0_i32_0, %c0_i32_1 : i32, i32, i32
  }
  func.func @transform_15(%arg0: i32) -> (i32, i32, i32) {
    %c0_i32 = arith.constant 0 : i32
    %c0_i32_0 = arith.constant 0 : i32
    %c0_i32_1 = arith.constant 0 : i32
    %c0_i32_2 = arith.constant 0 : i32
    return %c0_i32, %c0_i32_0, %c0_i32_1 : i32, i32, i32
  }
  func.func @transform_16(%arg0: i32) -> (i32, i32, i32) {
    %c0_i32 = arith.constant 0 : i32
    %c0_i32_0 = arith.constant 0 : i32
    %c0_i32_1 = arith.constant 0 : i32
    %c0_i32_2 = arith.constant 0 : i32
    return %c0_i32, %c0_i32_0, %c0_i32_1 : i32, i32, i32
  }
  func.func @transform_17(%arg0: i32) -> (i32, i32) {
    %c0_i32 = arith.constant 0 : i32
    %c0_i32_0 = arith.constant 0 : i32
    %c0_i32_1 = arith.constant 0 : i32
    return %c0_i32, %c0_i32_0 : i32, i32
  }
  func.func @transform_18(%arg0: i32) -> (i32, i32) {
    %c0_i32 = arith.constant 0 : i32
    %c0_i32_0 = arith.constant 0 : i32
    %c0_i32_1 = arith.constant 0 : i32
    return %c0_i32, %c0_i32_0 : i32, i32
  }
  func.func @transform_19(%arg0: i32) -> (i32, i32, i32) {
    %c0_i32 = arith.constant 0 : i32
    %c0_i32_0 = arith.constant 0 : i32
    %c0_i32_1 = arith.constant 0 : i32
    return %arg0, %c0_i32, %c0_i32_0 : i32, i32, i32
  }
}

</mosaic_0001>

<bundles_post_ra>
// kernel: nat_decoder_forward.1
= control target key start
LH: loop header
LB: loop body
LE: loop exit
PB: predicated region body
PF: predicated region fallthrough
CT: control target
= control target key end

     0   :  { %s9361_s0 = inlined_call_operand.hbm [shape: f32[2,16,32], index: 0, kind: input, shape index: {}]   ;;  %s9362_s1 = inlined_call_operand.vmem [shape: f32[32,32], index: 1, kind: input, shape index: {}]   ;;  %s9363_s2 = inlined_call_operand.vmem [shape: f32[1,32], index: 2, kind: input, shape index: {}]   ;;  %s9364_s3 = inlined_call_operand.hbm [shape: f32[8,16], index: 3, kind: input, shape index: {}]   ;;  %s9365_s4 = inlined_call_operand.vmem [shape: f32[8,1], index: 4, kind: input, shape index: {}]   ;;  %s9366_s5 = inlined_call_operand.vmem [shape: f32[3,32,96], index: 5, kind: input, shape index: {}]   ;;  %s9367_s6 = inlined_call_operand.hbm [shape: f32[3,1,96], index: 6, kind: input, shape index: {}]   ;;  %s9368_s7 = inlined_call_operand.vmem [shape: f32[3,32,32], index: 7, kind: input, shape index: {}]   ;;  %s9369_s8 = inlined_call_operand.hbm [shape: f32[3,1,32], index: 8, kind: input, shape index: {}]   ;;  %s9370_s9 = inlined_call_operand.hbm [shape: f32[3,1,32], index: 9, kind: input, shape index: {}]   ;;  %s9371_s10 = inlined_call_operand.hbm [shape: f32[3,1,32], index: 10, kind: input, shape index: {}]   ;;  %s9372_s11 = inlined_call_operand.vmem [shape: f32[3,32,64], index: 11, kind: input, shape index: {}]   ;;  %s9373_s12 = inlined_call_operand.hbm [shape: f32[3,1,64], index: 12, kind: input, shape index: {}]   ;;  %s9374_s13 = inlined_call_operand.vmem [shape: f32[3,64,32], index: 13, kind: input, shape index: {}]   ;;  %s9375_s14 = inlined_call_operand.hbm [shape: f32[3,1,32], index: 14, kind: input, shape index: {}]   ;;  %s9376_s15 = inlined_call_operand.hbm [shape: f32[3,1,32], index: 15, kind: input, shape index: {}]   ;;  %s9377_s16 = inlined_call_operand.hbm [shape: f32[3,1,32], index: 16, kind: input, shape index: {}]   ;;  %s9378_s17 = inlined_call_operand.hbm [shape: f32[32,40], index: 17, kind: input, shape index: {}]   ;;  %s9379_s18 = inlined_call_operand.vmem [shape: f32[1,40], index: 18, kind: input, shape index: {}]   ;;  %s9380_s19 = inlined_call_operand.hbm [shape: f32[2,8,40], index: 19, kind: output, shape index: {}]  }
   0x1   :  { %9461 = sst [smem:[#allocation40_spill]] %s9361_s0 }
   0x2   :  { %9462 = sst [smem:[#allocation41_spill]] %s9362_s1 }
   0x3   :  { %9463 = sst [smem:[#allocation42_spill]] %s9363_s2 }
   0x4   :  { %9464 = sst [smem:[#allocation43_spill]] %s9364_s3 }
   0x5   :  { %9465 = sst [smem:[#allocation44_spill]] %s9365_s4 }
   0x6   :  { %9466 = sst [smem:[#allocation45_spill]] %s9367_s6 }
   0x7   :  { %9467 = sst [smem:[#allocation46_spill]] %s9369_s8 }
   0x8   :  { %9468 = sst [smem:[#allocation47_spill]] %s9370_s9 }
   0x9   :  { %9469 = sst [smem:[#allocation48_spill]] %s9371_s10 }
   0xa   :  { %9470 = sst [smem:[#allocation49_spill]] %s9373_s12 }
   0xb   :  { %9471 = sst [smem:[#allocation50_spill]] %s9374_s13 }
   0xc   :  { %9472 = sst [smem:[#allocation51_spill]] %s9375_s14 }
   0xd   :  { %9473 = sst [smem:[#allocation52_spill]] %s9376_s15 }
   0xe   :  { %9474 = sst [smem:[#allocation53_spill]] %s9377_s16 }
   0xf   :  { %9475 = sst [smem:[#allocation54_spill]] %s9378_s17 }
  0x10   :  { %9476 = sst [smem:[#allocation55_spill]] %s9379_s18 }
  0x11   :  { %9477 = sst [smem:[#allocation56_spill]] %s9380_s19 }
  0x12   :  { %24 = vsyncpa [#allocation5], 0 }
  0x13   :  { %26 = vsyncpa [#allocation5 + $0x1], 0 }
  0x14   :  { %27 = vsyncpa [#allocation8], 0 }
  0x15   :  { %28 = vsyncpa [#allocation11], 0 }
  0x16   :  { %29 = vsyncpa [#allocation14], 0 }
  0x17   :  { %30 = vsyncpa [#allocation17], 0 }
  0x18   :  { %31 = vsyncpa [#allocation20], 0 }
  0x19   :  { %32 = vsyncpa [#allocation6], 0 }
  0x1a   :  { %34 = vsyncpa [#allocation6 + $0x1], 0  ;;  %s8219_s0 = smov 0   ;;  %s8221_s30 = smov 0  }
  0x1b   :  { %s8223_s20 = smov 0   ;;  %s8225_s21 = smov 0  }
  0x1c LB: > { %9478 = sst [smem:[#allocation30_spill]] %s8056_s0  ;;  %s8070_s1 = smov [#allocation7]   ;;  %s8068_s21 = sphi %s8225_s21, %s9573_s21   ;;  %s8064_s20 = sphi %s8223_s20, %s9576_s20   ;;  %s8060_s30 = sphi %s8221_s30, %s9575_s30   ;;  %s8056_s0 = sphi %s8219_s0, %s9574_s0  }
  0x1d   : > { %9479 = sst [smem:[#allocation31_spill]] %s8060_s30  ;;  %s494_s22 = sshll.u32 %s8070_s1, 4  ;;  %s495_s22 = int_to_ptr.vmem [resolvable:$true] %s494_s22 }
  0x1e   : > { %9480 = sst [smem:[#allocation32_spill]] %s8064_s20  ;;  %s8240_s2 = sadd.s32 4294967295, %s8068_s21  }
  0x1f   : > { %9481 = sst [smem:[#allocation33_spill]] %s8068_s21  ;;  %p6609_p0 = scmp.ge.s32.totalorder %s8068_s21, 1 }
  0x20   : > { %9482 = sst [smem:[#allocation34_spill]] %s8240_s2  ;;  %p9387_p1 = scmp.eq.s32.totalorder %s8240_s2, 0 }
  0x21   : > { %p475_p2 = scmp.lt.s32.totalorder %s8068_s21, 3  ;;  %s8071_s24 = smov [#allocation10]  }
  0x22   : > { %s526_s25 = sshll.u32 %s8071_s24, 4  ;;  %s8072_s26 = smov [#allocation13]   ;;  %s8258_s25 = int_to_ptr.vmem [resolvable:$true] %s526_s25 }
  0x23   : > { %p8245_p3 = pnand %p6609_p0, %p475_p2  ;;  %s552_s27 = sshll.u32 %s8072_s26, 4  ;;  %s8260_s27 = int_to_ptr.vmem [resolvable:$true] %s552_s27 }
  0x24   : > { %s7707_s29 = scalar_lea.vmem %s495_s22, 128  ;;  %p7715_p11 = scmp.lt.s32.totalorder %s495_s22, %s495_s22 }
  0x25   : > { %s9483_s23 = scalar_select %p8245_p3, 1, 0 }
  0x26   : > { %p7447_p5 = pneg %p8245_p3  ;;  %p7708_p8 = scmp.ne.s32.totalorder %s495_s22, %s7707_s29 }
  0x27   : > { %p7716_p12 = scmp.lt.s32.totalorder %s7707_s29, %s7707_s29 }
  0x28   : > { %p8254_p6 = pnand %p7447_p5, %p9387_p1 }
  0x29   : > { %p7717_p13 = por %p7716_p12, %p7715_p11 }
  0x2a   : > { %p8264_p7 = pneg %p8254_p6 }
  0x2c   : > { %p7710_p9 = pnand %p7708_p8, %p8264_p7 }
  0x2e   : > { %p7711_p10 = pneg %p7710_p9 }
  0x30   : > { %p7718_p0 = pnand %p7717_p13, %p7711_p10 }
  0x32   : > { %7721 = shalt.err (!%p7718_p0)
}
  0x33   : > { %s9486_s26 = sld [smem:[#allocation43_spill]]  ;;  %s7733_s19 = scalar_lea.vmem %s8258_s25, 48 }
  0x34   : > { %p7734_p2 = scmp.ne.s32.totalorder %s8258_s25, %s7733_s19  ;;  %s7740_s29 = scalar_lea.vmem %s8258_s25, 64 }
  0x35   : > { %p7741_p9 = scmp.lt.s32.totalorder %s8258_s25, %s8258_s25  ;;  %p7742_p10 = scmp.lt.s32.totalorder %s7740_s29, %s7733_s19 }
  0x36   : > { %p7736_p5 = pnand %p7734_p2, %p8264_p7 }
  0x37   : > { %p7743_p11 = por %p7742_p10, %p7741_p9 }
  0x38   : > { %p7737_p8 = pneg %p7736_p5 }
  0x39   : > { %7450 = dma.hbm_to_vmem [thread:$0]  (!%p8254_p6), %s9486_s26, 128, %s495_s22, [#allocation8]  }
  0x3a   : > { %p7744_p12 = pnand %p7743_p11, %p7737_p8 }
  0x3c   : > { %7747 = shalt.err (!%p7744_p12)
}
  0x3d   : > { %s8073_s18 = smov 16   ;;  %s8074_s22 = smov 1  }
  0x3e   : > { %s9487_s8 = sld [smem:[#allocation46_spill]]  ;;  %s7759_s19 = scalar_lea.vmem %s8260_s27, 48 }
  0x3f   : > { %p7760_p13 = scmp.ne.s32.totalorder %s8260_s27, %s7759_s19  ;;  %s7766_s26 = scalar_lea.vmem %s8260_s27, 64 }
  0x40   : > { %p7767_p5 = scmp.lt.s32.totalorder %s8260_s27, %s8260_s27  ;;  %p7768_p8 = scmp.lt.s32.totalorder %s7766_s26, %s7759_s19 }
  0x41   : > { %p7762_p0 = pnand %p7760_p13, %p8264_p7 }
  0x42   : > { %p7769_p9 = por %p7768_p8, %p7767_p5 }
  0x43   : > { %p7763_p2 = pneg %p7762_p0 }
  0x44   : > { %7456 = dma.hbm_to_vmem [thread:$0]  (!%p8254_p6), %s9487_s8, 48, %s8258_s25, [#allocation11], %s8073_s18, %s8073_s18, %s8074_s22  }
  0x45   : > { %p7770_p10 = pnand %p7769_p9, %p7763_p2 }
  0x47   : > { %7773 = shalt.err (!%p7770_p10)
}
  0x48   : > { %s9488_s10 = sld [smem:[#allocation48_spill]]  ;;  %s8075_s1 = smov [#allocation16]  }
  0x49   : > { %s584_s24 = sshll.u32 %s8075_s1, 4  ;;  %s8076_s8 = smov [#allocation19]   ;;  %s585_s24 = int_to_ptr.vmem [resolvable:$true] %s584_s24 }
  0x4a   : > { %s610_s13 = sshll.u32 %s8076_s8, 4  ;;  %s7785_s19 = scalar_lea.vmem %s585_s24, 48  ;;  %s611_s13 = int_to_ptr.vmem [resolvable:$true] %s610_s13 }
  0x4b   : > { %p7786_p11 = scmp.ne.s32.totalorder %s585_s24, %s7785_s19  ;;  %s7792_s26 = scalar_lea.vmem %s585_s24, 64 }
  0x4c   : > { %p7793_p0 = scmp.lt.s32.totalorder %s585_s24, %s585_s24  ;;  %p7794_p2 = scmp.lt.s32.totalorder %s7792_s26, %s7785_s19 }
  0x4d   : > { %p7788_p12 = pnand %p7786_p11, %p8264_p7 }
  0x4e   : > { %7462 = dma.hbm_to_vmem [thread:$0]  (!%p8254_p6), %s9488_s10, 48, %s8260_s27, [#allocation14], %s8073_s18, %s8073_s18, %s8074_s22  }
  0x4f   : > { %p7789_p13 = pneg %p7788_p12  ;;  %p7795_p5 = por %p7794_p2, %p7793_p0 }
  0x51   : > { %p7796_p8 = pnand %p7795_p5, %p7789_p13 }
  0x53   : > { %7799 = shalt.err (!%p7796_p8)
}
  0x54   : > { %s9489_s14 = sld [smem:[#allocation51_spill]]  ;;  %s7811_s8 = scalar_lea.vmem %s611_s13, 48 }
  0x55   : > { %p7812_p9 = scmp.ne.s32.totalorder %s611_s13, %s7811_s8  ;;  %s7818_s25 = scalar_lea.vmem %s611_s13, 64 }
  0x56   : > { %p7819_p12 = scmp.lt.s32.totalorder %s611_s13, %s611_s13  ;;  %p7820_p13 = scmp.lt.s32.totalorder %s7818_s25, %s7811_s8 }
  0x57   : > { %p7814_p10 = pnand %p7812_p9, %p8264_p7 }
  0x58   : > { %p7821_p0 = por %p7820_p13, %p7819_p12 }
  0x59   : > { %p7815_p11 = pneg %p7814_p10 }
  0x5a   : > { %7468 = dma.hbm_to_vmem [thread:$0]  (!%p8254_p6), %s9489_s14, 48, %s585_s24, [#allocation17], %s8073_s18, %s8073_s18, %s8074_s22  }
  0x5b   : > { %p7822_p2 = pnand %p7821_p0, %p7815_p11 }
  0x5d   : > { %7825 = shalt.err (!%p7822_p2)
}
  0x5e   : > { %s9490_s16 = sld [smem:[#allocation53_spill]]  ;;  %s8077_s24 = smov [#allocation9]  }
  0x5f   : > { %s510_s26 = sshll.u32 %s8077_s24, 4  ;;  %s8078_s27 = smov [#allocation12]   ;;  %s511_s26 = int_to_ptr.vmem [resolvable:$true] %s510_s26 }
  0x60   : > { %s539_s29 = sshll.u32 %s8078_s27, 4  ;;  %s7837_s10 = scalar_lea.vmem %s511_s26, 48  ;;  %s540_s29 = int_to_ptr.vmem [resolvable:$true] %s539_s29 }
  0x61   : > { %p7838_p5 = scmp.ne.s32.totalorder %s511_s26, %s7837_s10  ;;  %s7844_s8 = scalar_lea.vmem %s511_s26, 64 }
  0x62   : > { %p7845_p10 = scmp.lt.s32.totalorder %s511_s26, %s511_s26  ;;  %p7846_p11 = scmp.lt.s32.totalorder %s7844_s8, %s7837_s10 }
  0x63   : > { %p7840_p8 = pnand %p7838_p5, %p8264_p7 }
  0x64   : > { %7474 = dma.hbm_to_vmem [thread:$0]  (!%p8254_p6), %s9490_s16, 48, %s611_s13, [#allocation20], %s8073_s18, %s8073_s18, %s8074_s22  }
  0x65   : > { %p7841_p9 = pneg %p7840_p8  ;;  %p7847_p12 = por %p7846_p11, %p7845_p10 }
  0x67   : > { %p7848_p13 = pnand %p7847_p12, %p7841_p9 }
  0x69   : > { %7851 = shalt.err (!%p7848_p13)
}
  0x6a   : > { %s9491_s6 = sld [smem:[#allocation45_spill]]  ;;  %s7863_s1 = scalar_lea.vmem %s540_s29, 48 }
  0x6b   : > { %p7864_p0 = scmp.ne.s32.totalorder %s540_s29, %s7863_s1  ;;  %s7870_s10 = scalar_lea.vmem %s540_s29, 64 }
  0x6c   : > { %p7871_p8 = scmp.lt.s32.totalorder %s540_s29, %s540_s29  ;;  %p7872_p9 = scmp.lt.s32.totalorder %s7870_s10, %s7863_s1 }
  0x6d   : > { %p7866_p2 = pnand %p7864_p0, %p8264_p7 }
  0x6e   : > { %p7873_p10 = por %p7872_p9, %p7871_p8 }
  0x6f   : > { %p7867_p5 = pneg %p7866_p2 }
  0x70   : > { %7453 = dma.hbm_to_vmem [thread:$0]  (!%p8254_p6), %s9491_s6, 48, %s511_s26, [#allocation8], %s8073_s18, %s8073_s18, %s8074_s22  }
  0x71   : > { %p7874_p11 = pnand %p7873_p10, %p7867_p5 }
  0x73   : > { %7877 = shalt.err (!%p7874_p11)
}
  0x74   : > { %s9492_s9 = sld [smem:[#allocation47_spill]]  ;;  %s8079_s26 = smov [#allocation15]  }
  0x75   : > { %s568_s27 = sshll.u32 %s8079_s26, 4  ;;  %s8080_s8 = smov [#allocation18]   ;;  %s569_s27 = int_to_ptr.vmem [resolvable:$true] %s568_s27 }
  0x76   : > { %s597_s13 = sshll.u32 %s8080_s8, 4  ;;  %s7889_s25 = scalar_lea.vmem %s569_s27, 48  ;;  %s598_s13 = int_to_ptr.vmem [resolvable:$true] %s597_s13 }
  0x77   : > { %p7890_p12 = scmp.ne.s32.totalorder %s569_s27, %s7889_s25  ;;  %s7896_s1 = scalar_lea.vmem %s569_s27, 64 }
  0x78   : > { %p7897_p2 = scmp.lt.s32.totalorder %s569_s27, %s569_s27  ;;  %p7898_p5 = scmp.lt.s32.totalorder %s7896_s1, %s7889_s25 }
  0x79   : > { %p7892_p13 = pnand %p7890_p12, %p8264_p7 }
  0x7a   : > { %7459 = dma.hbm_to_vmem [thread:$0]  (!%p8254_p6), %s9492_s9, 48, %s540_s29, [#allocation11], %s8073_s18, %s8073_s18, %s8074_s22  }
  0x7b   : > { %p7893_p0 = pneg %p7892_p13  ;;  %p7899_p8 = por %p7898_p5, %p7897_p2 }
  0x7d   : > { %p7900_p9 = pnand %p7899_p8, %p7893_p0 }
  0x7f   : > { %7903 = shalt.err (!%p7900_p9)
}
  0x80   : > { %s9493_s12 = sld [smem:[#allocation49_spill]]  ;;  %s7915_s19 = scalar_lea.vmem %s598_s13, 48 }
  0x81   : > { %p7916_p10 = scmp.ne.s32.totalorder %s598_s13, %s7915_s19  ;;  %s7922_s24 = scalar_lea.vmem %s598_s13, 64 }
  0x82   : > { %p7923_p13 = scmp.lt.s32.totalorder %s598_s13, %s598_s13  ;;  %p7924_p0 = scmp.lt.s32.totalorder %s7922_s24, %s7915_s19 }
  0x83   : > { %p7918_p11 = pnand %p7916_p10, %p8264_p7 }
  0x84   : > { %p7925_p2 = por %p7924_p0, %p7923_p13 }
  0x85   : > { %p7919_p12 = pneg %p7918_p11 }
  0x86   : > { %7465 = dma.hbm_to_vmem [thread:$0]  (!%p8254_p6), %s9493_s12, 48, %s569_s27, [#allocation14], %s8073_s18, %s8073_s18, %s8074_s22  }
  0x87   : > { %p7926_p5 = pnand %p7925_p2, %p7919_p12 }
  0x89   : > { %7929 = shalt.err (!%p7926_p5)
}
  0x8a   : > { %s9494_s15 = sld [smem:[#allocation52_spill]]  ;;  %s8081_s27 = smov [#allocation21]  }
  0x8b   : > { %s623_s25 = sshll.u32 %s8081_s27, 4  ;;  %s624_s25 = int_to_ptr.vmem [resolvable:$true] %s623_s25 }
  0x8c   : > { %s7941_s1 = scalar_lea.vmem %s624_s25, 512  ;;  %p7949_p11 = scmp.lt.s32.totalorder %s624_s25, %s624_s25 }
  0x8d   : > { %p7942_p8 = scmp.ne.s32.totalorder %s624_s25, %s7941_s1  ;;  %p7950_p12 = scmp.lt.s32.totalorder %s7941_s1, %s7941_s1 }
  0x8f   : > { %p7944_p9 = pnand %p7942_p8, %p8264_p7  ;;  %p7951_p13 = por %p7950_p12, %p7949_p11 }
  0x90   : > { %7471 = dma.hbm_to_vmem [thread:$0]  (!%p8254_p6), %s9494_s15, 48, %s598_s13, [#allocation17], %s8073_s18, %s8073_s18, %s8074_s22  }
  0x91   : > { %p7945_p10 = pneg %p7944_p9 }
  0x93   : > { %p7952_p0 = pnand %p7951_p13, %p7945_p10 }
  0x95   : > { %7955 = shalt.err (!%p7952_p0)
}
  0x96   : > { %s9385_s29 = smov 128   ;;  %s9386_s18 = smov 8  }
  0x97   : > { %s9495_s17 = sld [smem:[#allocation54_spill]]  ;;  %s6608_s13 = sadd.s32 4294967294, %s8068_s21  }
  0x98   : > { %s8379_s10 = sadd.s32 1, %s8068_s21   ;;  %s47_s24 = sadd.s32 1, %s8064_s20 }
  0x99   : > { %9496 = sst [smem:[#allocation35_spill]] %s8379_s10  ;;  %s44_s19 = ssub.s32 %s8068_s21, %s8379_s10 }
  0x9a   : > { %p45_p7 = scmp.eq.s32.totalorder %s44_s19, 0  ;;  %p54_p2 = scmp.ne.s32.totalorder %s8064_s20, %s8060_s30 }
  0x9b   : > { %p55_p5 = scmp.eq.s32.totalorder %s8068_s21, 0  ;;  %p60_p8 = scmp.ne.s32.totalorder %s8060_s30, %s8056_s0 }
  0x9c   : > { %s8390_s3 = scalar_select %p45_p7, %s8064_s20, %s47_s24  }
  0x9d   : > { %7477 = dma.hbm_to_vmem [thread:$0]  (!%p8254_p6), %s9495_s17, 512, %s624_s25, [#allocation20], %s9385_s29, %s9385_s29, %s9386_s18  }
  0x9e   : > { %9497 = sst [smem:[#allocation36_spill]] %s8390_s3  ;;  %p8392_p9 = por %p55_p5, %p54_p2 }
  0x9f   : > { %p8398_p6 = por %p9387_p1, %p60_p8  ;;  %p462_p10 = scmp.eq.s32.totalorder %s8240_s2, 1 }
  0xa0   : > { %p468_p11 = scmp.eq.s32.totalorder %s6608_s13, 1  ;;  %p7496_p12 = scmp.lt.s32.totalorder %s8068_s21, 2 }
  0xa1   : > { %s9499_s8 = scalar_select %p8398_p6, 1, 0 }
  0xa2   : > { %s640_s27 = sand.u32 1, %s8064_s20   ;;  %p8405_p13 = por %p462_p10, %p54_p2 }
  0xa3   : > { %p8409_p0 = por %p468_p11, %p60_p8  ;;  %s6621_s28 = sshll.u32 %s640_s27, 4 }
  0xa4   : > { %s9500_s25 = scalar_select %p8405_p13, 1, 0 }
  0xa5   : > { %s9502_s1 = scalar_select %p8409_p0, 1, 0 }
  0xa6   : > { %9501 = sst [smem:[#allocation37_spill]] %s9500_s25  ;;  %s6795_s22 = sshll.u32 %s8068_s21, 8 }
  0xa7   : > { %9503 = sst [smem:[#allocation38_spill]] %s9502_s1  ;;  %s644_s13 = scalar_lea.vmem [#allocation4], %s6621_s28 }
  0xa8   : > { %s9504_s29 = sld [smem:[#allocation40_spill]]  ;;  %s651_s6 = sshll.u32 %s644_s13, 4  ;;  %s8419_s6 = int_to_ptr.vmem [resolvable:$true] %s651_s6 }
  0xa9   : > { %p8423_p7 = pnand %p7496_p12, %p8392_p9  ;;  %s8427_s12 = scalar_lea.sflag [#allocation5], %s640_s27 }
  0xab   : > { %p7958_p5 = pneg %p8423_p7 }
  0xae   : > { %s8417_s18 = scalar_lea.hbm %s9504_s29, %s6795_s22  ;;  %s7961_s28 = scalar_lea.hbm %s9504_s29, 512 }
  0xaf   : > { %s7956_s14 = scalar_lea.hbm %s8417_s18, 256  ;;  %p7962_p9 = scmp.lt.s32.totalorder %s8417_s18, %s9504_s29 }
  0xb0   : > { %p7957_p2 = scmp.ne.s32.totalorder %s8417_s18, %s7956_s14  ;;  %p7963_p11 = scmp.lt.s32.totalorder %s7961_s28, %s7956_s14 }
  0xb2   : > { %p7959_p8 = pnand %p7958_p5, %p7957_p2  ;;  %p7964_p12 = por %p7963_p11, %p7962_p9 }
  0xb4   : > { %p7960_p10 = pneg %p7959_p8 }
  0xb6   : > { %p7965_p4 = pnand %p7964_p12, %p7960_p10 }
  0xb8   : > { %7968 = shalt.err (!%p7965_p4)
}
  0xb9   : > { %s7969_s26 = scalar_lea.vmem %s8419_s6, 256  ;;  %s8084_s27 = smov [#allocation4]  }
  0xba   : > { %p7970_p1 = scmp.ne.s32.totalorder %s8419_s6, %s7969_s26  ;;  %s7974_s15 = sshll.u32 %s8084_s27, 4  ;;  %s7975_s15 = int_to_ptr.vmem [resolvable:$false] %s7974_s15 }
  0xbb   : > { %s7976_s22 = scalar_lea.vmem %s7975_s15, 512  ;;  %p7977_p8 = scmp.lt.s32.totalorder %s8419_s6, %s7975_s15 }
  0xbc   : > { %p7972_p0 = pnand %p7970_p1, %p7958_p5  ;;  %p7978_p13 = scmp.lt.s32.totalorder %s7976_s22, %s7969_s26 }
  0xbe   : > { %p7973_p2 = pneg %p7972_p0  ;;  %p7979_p6 = por %p7978_p13, %p7977_p8 }
  0xc0   : > { %p7980_p3 = pnand %p7979_p6, %p7973_p2 }
  0xc2   : > { %7983 = shalt.err (!%p7980_p3)
}
  0xc3   : > { %s9506_s14 = smov 8   ;;  %s9507_s19 = smov 128  }
  0xc4   : > { %7481 = dma.hbm_to_vmem [thread:$0]  (!%p8423_p7), %s8417_s18, 256, %s8419_s6, %s8427_s12, %s9507_s19, %s9507_s19, %s9506_s14  }
  0xc5   : > { %p9508_p1 = scmp.ne.s32.totalorder %s9483_s23, 0 }
  0xc7   : > { %663 = sbr.rel (%p9508_p1) target bundleno = 8097 (0x1fa1), region = 96 }
  0xcc   : > { %s8454_s28 = sand.u32 1, %s8060_s30   ;;  %p9510_p3 = scmp.ne.s32.totalorder %s9499_s8, 0 }
  0xcd   : > { %9509 = sst [smem:[#allocation39_spill]] %s8454_s28  ;;  %s6625_s15 = sshll.u32 %s8454_s28, 4 }
  0xce   : > { %s666_s24 = scalar_lea.sflag [#allocation5], %s8454_s28  ;;  %s669_s13 = scalar_lea.vmem [#allocation4], %s6625_s15 }
  0xcf   : > { %8027 = dma.done.wait (%p9510_p3), %s666_s24, 256  }
  0xd0   : > { %8029 = vsyncadd (%p9510_p3), %s666_s24, 4294967040  ;;  %p9511_p4 = scmp.eq.s32.totalorder %s8240_s2, 0 }
  0xd2   : > { %8031 = dma.done.wait (%p9511_p4), [#allocation8], 176   ;;  %p9512_p6 = pmov %p9511_p4 }
  0xd3   : > { %p9513_p13 = pmov %p9511_p4 }
  0xd4   : > { %8033 = vsyncadd (%p9512_p6), [#allocation8], 4294967120 }
  0xd5   : > { %8035 = dma.done.wait (%p9513_p13), [#allocation11], 96   ;;  %p9514_p0 = pmov %p9511_p4 }
  0xd7   : > { %8037 = vsyncadd (%p9514_p0), [#allocation11], 4294967200  ;;  %p9515_p7 = pmov %p9514_p0 }
  0xd8   : > { %p9516_p5 = pmov %p9514_p0 }
  0xd9   : > { %8039 = dma.done.wait (%p9515_p7), [#allocation14], 96  }
  0xda   : > { %8041 = vsyncadd (%p9516_p5), [#allocation14], 4294967200  ;;  %p9517_p10 = pmov %p9514_p0 }
  0xdb   : > { %p9518_p9 = pmov %p9514_p0 }
  0xdc   : > { %8043 = dma.done.wait (%p9517_p10), [#allocation17], 96  }
  0xdd   : > { %8045 = vsyncadd (%p9518_p9), [#allocation17], 4294967200  ;;  %p9519_p11 = pmov %p9514_p0 }
  0xde   : > { %p9520_p12 = pmov %p9514_p0 }
  0xdf   : > { %8047 = dma.done.wait (%p9519_p11), [#allocation20], 560  }
  0xe0   : > { %8049 = vsyncadd (%p9520_p12), [#allocation20], 4294966736  ;;  %vm777_vm0 = vcmask 261120   ;;  %s9521_s12 = sld [smem:[#allocation41_spill]]  ;;  %v764_v2 = vld [vmem:[%s669_s13] sm:$0xff]  ;;  %v765_v5 = vld [vmem:[%s669_s13 + $0x8] sm:$0xff] }
  0xe1   : > { %6986 = vmatprep.mubr.msk.f32.mxu0 %vm777_vm0, %v764_v2  ;;  %v8085_v6 = vmov 0.0   ;;  %vm8086_vm1 = vmmov 0   ;;  %s9522_s4 = sld [smem:[#allocation44_spill]]  ;;  %v8087_v8 = vmov 0   ;;  %v859_v14 = vld [vmem:[#allocation7] sm:$0xff]  ;;  %vm866_vm2 = vcmask 130048  }
  0xe2   : > { %6989 = vmatprep.subr.mxu1 %v8085_v6  ;;  %6993 = vmatprep.mubr.msk.f32.mxu1 %vm8086_vm1, %v8085_v6  ;;  %s9523_s13 = sld [smem:[#allocation42_spill]]  ;;  %v943_v15 = vld [vmem:[%s9366_s5 + $0x18] sm:$0xff]  ;;  %v942_v16 = vld [vmem:[%s9366_s5 + $0x10] sm:$0xff]  ;;  %v941_v17 = vld [vmem:[%s9366_s5 + $0x8] sm:$0xff]  ;;  %vm1024_vm3 = vcmask 785408   ;;  %s9446_s14 = smov 92  }
  0xe3   : > { %7587 = vset.pattern.permute.xlu0 %v8087_v8  ;;  %v940_v18 = vld [vmem:[%s9366_s5] sm:$0xff]  ;;  %v6641_v23 = vld [vmem:[#allocation9] ss:$0 sm:$0xff]  ;;  %s9445_s19 = smov 96   ;;  %s9444_s15 = smov 124   ;;  %vm1031_vm4 = vcmask 31744  }
  0xe4   : > { %s9443_s24 = smov 88   ;;  %s9429_s6 = smov 84   ;;  %vm1107_vm5 = vcmask 64512   ;;  %vm1369_vm6 = vcmask 64544   ;;  %vm1544_vm7 = vcmask 97344   ;;  %vm1719_vm8 = vcmask 130144  }
  0xe5   : > { %s9391_s9 = smov 116   ;;  %s9393_s23 = smov 80   ;;  %vm1894_vm9 = vcmask 162944   ;;  %vm2069_vm10 = vcmask 195744   ;;  %vm2244_vm11 = vcmask 228544   ;;  %vm2419_vm12 = vcmask 261344  }
  0xe6   : > { %v769_v0 = vld [vmem:[%s9521_s12 + $0x18] sm:$0xff]  ;;  %v768_v1 = vld [vmem:[%s9521_s12 + $0x10] sm:$0xff]  ;;  %v767_v3 = vld [vmem:[%s9521_s12 + $0x8] sm:$0xff]  ;;  %s9395_s18 = smov 112   ;;  %s9397_s8 = smov 76   ;;  %vm2637_vm13 = vcmask 523264  }
  0xe7   : > { %6978 = vmatprep.subr.mxu0 %v769_v0  ;;  %v766_v4 = vld [vmem:[%s9521_s12] sm:$0xff]  ;;  %s9425_s26 = smov 108   ;;  %s9421_s27 = smov 72   ;;  %vm6427_vm14 = vcmask 326656  }
  0xe8   : > { %6979 = vmatpush3.msra.mxu0 %v769_v0  ;;  %v860_v7 = vld [vmem:[%s9522_s4] sm:$0xff]  ;;  %s9419_s22 = smov 104   ;;  %s9537_s4 = smov 60  }
  0xe9   : > { %6980 = vmatprep.subr.mxu0 %v768_v1  ;;  %863 = vperm.xlu0 %7587, %v860_v7   ;;  %v6637_v9 = vld [vmem:[%s9523_s13] ss:$0 sm:$0xff]  ;;  %s9441_s13 = smov 120   ;;  %s9538_s12 = smov 52  }
  0xea   : > { %6981 = vmatpush3.msra.mxu0 %v768_v1  ;;  %s9539_s16 = smov 56   ;;  %s9540_s17 = smov 44  }
  0xeb   : > { %6982 = vmatprep.subr.mxu0 %v767_v3  ;;  %s9541_s29 = smov 48   ;;  %s9542_s3 = smov 36  }
  0xec   : > { %6983 = vmatpush3.msra.mxu0 %v767_v3  ;;  %s9543_s20 = smov 40   ;;  %s9544_s30 = smov 4  }
  0xed   : > { %6984 = vmatprep.subr.mxu0 %v766_v4  ;;  %s9545_s10 = smov 8   ;;  %s9546_s21 = smov 12  }
  0xee   : > { %6985 = vmatpush3.msra.mxu0 %v766_v4  ;;  %s9547_s1 = smov 16   ;;  %s9548_s0 = smov 20  }
  0xef   : > { %6987 = vmatmul.mubr.msk.f32.vlgmr.msra.gmra.mxu0 %vm777_vm0, %v765_v5  ;;  %7007 = vmatprep.subr.mxu0 %v8085_v6  ;;  %s9550_s2 = smov 28   ;;  %s9553_s25 = smov 124  }
  0xf0   : > { %7009 = vmatprep.mubr.msk.f32.mxu0 %vm8086_vm1, %v8085_v6 }
 0x164   : > { %v864_v19 = vpop.permute.xlu0 %863 }
 0x1af   : > { %v6988_v10 = vpop.f32.mrf.mxu0 }
 0x1b0   : > { %v856_v11 = vadd.f32 %v6988_v10, %v6637_v9 }
 0x1b1   : > { %v850_v12 = vpop.f32.mrf.mxu0 }
 0x1b2   : > { %v851_v13 = vadd.f32 %v6637_v9, %v850_v12  ;;  %6990 = vmatpush3.msra.mxu1 %v856_v11 }
 0x1b3   : > { %6991 = vmatprep.subr.mxu1 %v8085_v6 }
 0x1b4   : > { %6992 = vmatpush3.msra.mxu1 %v851_v13 }
 0x1b5   : > { %6994 = vmatmul.mubr.msk.f32.vlgmr.msra.gmra.mxu1 %vm866_vm2, %v859_v14  ;;  %6996 = vmatprep.subr.mxu1 %v8085_v6 }
 0x1b6   : > { %6997 = vmatpush3.msra.mxu1 %v943_v15  ;;  %7004 = vmatprep.mubr.msk.f32.mxu1 %vm8086_vm1, %v8085_v6 }
 0x1b7   : > { %6998 = vmatprep.subr.mxu1 %v8085_v6 }
 0x1b8   : > { %6999 = vmatpush3.msra.mxu1 %v942_v16 }
 0x1b9   : > { %7000 = vmatprep.subr.mxu1 %v8085_v6 }
 0x1ba   : > { %7001 = vmatpush3.msra.mxu1 %v941_v17 }
 0x1bb   : > { %7002 = vmatprep.subr.mxu1 %v8085_v6 }
 0x1bc   : > { %7003 = vmatpush3.msra.mxu1 %v940_v18 }
 0x1bd   : > { %7017 = vmatprep.subr.mxu1 %v8085_v6 }
 0x275   : > { %v936_v20 = vpop.f32.mrf.mxu1 }
 0x276   : > { %v8528_v21 = vadd.f32 %v936_v20, %v864_v19 }
 0x277   : > { %v6995_v22 = vpop.f32.mrf.mxu1 }
 0x278   : > { %7005 = vmatmul.mubr.msk.f32.vlgmr.msra.gmra.mxu1 %vm777_vm0, %v8528_v21 }
 0x279   : > { %7019 = vmatprep.mubr.msk.f32.mxu1 %vm8086_vm1, %v8085_v6 }
 0x338   : > { %v1020_v24 = vpop.f32.mrf.mxu1 }
 0x339   : > { %v1021_v25 = vadd.f32 %v6641_v23, %v1020_v24 }
 0x33a   : > { %v7006_v26 = vpop.f32.mrf.mxu1 }
 0x33b   : > { %1025 = vst.msk [vmem:[#allocation2] sm:$0xff] %vm1024_vm3, %v1021_v25 }
 0x342   : > { %v8535_v27 = vld [vmem:[#allocation2] sm:$0xff] }
 0x343   : > { %1202 = vrot.lane.b32.xlu1 %v8535_v27, %s9446_s14  ;;  %1029 = vrot.lane.b32.xlu0 %v8535_v27, %s9445_s19  ;;  %v1027_v28 = vmul.f32 0.5, %v8535_v27 }
 0x347   : > { %1199 = vrot.lane.b32.xlu1 %v1027_v28, %s9444_s15  ;;  %1377 = vrot.lane.b32.xlu0 %v8535_v27, %s9443_s24 }
 0x34b   : > { %1374 = vrot.lane.b32.xlu1 %v1027_v28, %s9441_s13  ;;  %1552 = vrot.lane.b32.xlu0 %v8535_v27, %s9429_s6  ;;  %s9437_s6 = smov 24   ;;  %s9527_s13 = smov 116  }
 0x34f   : > { %1549 = vrot.lane.b32.xlu1 %v1027_v28, %s9391_s9  ;;  %1727 = vrot.lane.b32.xlu0 %v8535_v27, %s9393_s23  ;;  %s9417_s9 = smov 68   ;;  %s9415_s23 = smov 100  }
 0x353   : > { %1724 = vrot.lane.b32.xlu1 %v1027_v28, %s9395_s18  ;;  %1902 = vrot.lane.b32.xlu0 %v8535_v27, %s9397_s8  ;;  %s9401_s18 = smov 64   ;;  %s9399_s8 = smov 60  }
 0x357   : > { %1899 = vrot.lane.b32.xlu1 %v1027_v28, %s9425_s26  ;;  %2077 = vrot.lane.b32.xlu0 %v8535_v27, %s9421_s27  ;;  %s9439_s27 = smov 20   ;;  %s9528_s26 = smov 80  }
 0x35b   : > { %2074 = vrot.lane.b32.xlu1 %v1027_v28, %s9419_s22  ;;  %2252 = vrot.lane.b32.xlu0 %v8535_v27, %s9417_s9  ;;  %s9431_s9 = smov 16   ;;  %s9530_s22 = smov 76  }
 0x35f   : > { %2249 = vrot.lane.b32.xlu1 %v1027_v28, %s9415_s23  ;;  %1119 = vrot.lane.b32.xlu0 %v8535_v27, %s9401_s18  ;;  %s9403_s18 = smov 56   ;;  %s9433_s23 = smov 12  }
 0x363   : > { %1289 = vrot.lane.b32.xlu1 %v8535_v27, %s9399_s8  ;;  %s9405_s8 = smov 52  }
 0x3b5   : > { %v1203_v29 = vpop.permute.xlu1 %1202  ;;  %v1030_v30 = vpop.permute.xlu0 %1029 }
 0x3b6   : > { %7008 = vmatpush3.xpose.msk.msra.mxu0 %vm1031_vm4, %v1030_v30  ;;  %7018 = vmatpush3.xpose.msk.msra.mxu1 %vm1031_vm4, %v1203_v29 }
 0x3b7   : > { %7027 = vmatprep.subr.mxu1 %v8085_v6  ;;  %7012 = vmatprep.subr.mxu0 %v8085_v6 }
 0x3b9   : > { %v1200_v31 = vpop.permute.xlu1 %1199  ;;  %v1378_v32 = vpop.permute.xlu0 %1377  ;;  %7010 = vmatmul.mubr.msk.f32.vlgmr.msra.gmra.mxu0 %vm1031_vm4, %v1027_v28 }
 0x3ba   : > { %7020 = vmatmul.mubr.msk.f32.vlgmr.msra.gmra.mxu1 %vm1031_vm4, %v1200_v31  ;;  %7014 = vmatprep.mubr.msk.f32.mxu0 %vm8086_vm1, %v8085_v6 }
 0x3bb   : > { %7028 = vmatpush3.xpose.msk.msra.mxu1 %vm1031_vm4, %v1378_v32  ;;  %7029 = vmatprep.mubr.msk.f32.mxu1 %vm8086_vm1, %v8085_v6 }
 0x3bc   : > { %7037 = vmatprep.subr.mxu1 %v8085_v6 }
 0x3bd   : > { %v1375_v33 = vpop.permute.xlu1 %1374  ;;  %v1553_v34 = vpop.permute.xlu0 %1552 }
 0x3be   : > { %7030 = vmatmul.mubr.msk.f32.vlgmr.msra.gmra.mxu1 %vm1031_vm4, %v1375_v33 }
 0x3bf   : > { %7038 = vmatpush3.xpose.msk.msra.mxu1 %vm1031_vm4, %v1553_v34  ;;  %7039 = vmatprep.mubr.msk.f32.mxu1 %vm8086_vm1, %v8085_v6 }
 0x3c0   : > { %7047 = vmatprep.subr.mxu1 %v8085_v6 }
 0x3c1   : > { %v1550_v35 = vpop.permute.xlu1 %1549  ;;  %v1728_v36 = vpop.permute.xlu0 %1727 }
 0x3c2   : > { %7040 = vmatmul.mubr.msk.f32.vlgmr.msra.gmra.mxu1 %vm1031_vm4, %v1550_v35 }
 0x3c3   : > { %7048 = vmatpush3.xpose.msk.msra.mxu1 %vm1031_vm4, %v1728_v36  ;;  %7049 = vmatprep.mubr.msk.f32.mxu1 %vm8086_vm1, %v8085_v6 }
 0x3c4   : > { %7057 = vmatprep.subr.mxu1 %v8085_v6 }
 0x3c5   : > { %v1725_v37 = vpop.permute.xlu1 %1724  ;;  %v1903_v38 = vpop.permute.xlu0 %1902 }
 0x3c6   : > { %7050 = vmatmul.mubr.msk.f32.vlgmr.msra.gmra.mxu1 %vm1031_vm4, %v1725_v37 }
 0x3c7   : > { %7058 = vmatpush3.xpose.msk.msra.mxu1 %vm1031_vm4, %v1903_v38  ;;  %7059 = vmatprep.mubr.msk.f32.mxu1 %vm8086_vm1, %v8085_v6 }
 0x3c8   : > { %7067 = vmatprep.subr.mxu1 %v8085_v6 }
 0x3c9   : > { %v1900_v39 = vpop.permute.xlu1 %1899  ;;  %v2078_v40 = vpop.permute.xlu0 %2077 }
 0x3ca   : > { %7060 = vmatmul.mubr.msk.f32.vlgmr.msra.gmra.mxu1 %vm1031_vm4, %v1900_v39 }
 0x3cb   : > { %7068 = vmatpush3.xpose.msk.msra.mxu1 %vm1031_vm4, %v2078_v40  ;;  %7069 = vmatprep.mubr.msk.f32.mxu1 %vm8086_vm1, %v8085_v6 }
 0x3cc   : > { %7077 = vmatprep.subr.mxu1 %v8085_v6 }
 0x3cd   : > { %v2075_v41 = vpop.permute.xlu1 %2074  ;;  %v2253_v42 = vpop.permute.xlu0 %2252 }
 0x3ce   : > { %7070 = vmatmul.mubr.msk.f32.vlgmr.msra.gmra.mxu1 %vm1031_vm4, %v2075_v41 }
 0x3cf   : > { %7078 = vmatpush3.xpose.msk.msra.mxu1 %vm1031_vm4, %v2253_v42  ;;  %7079 = vmatprep.mubr.msk.f32.mxu1 %vm8086_vm1, %v8085_v6 }
 0x3d0   : > { %7087 = vmatprep.subr.mxu1 %v8085_v6 }
 0x3d1   : > { %v2250_v43 = vpop.permute.xlu1 %2249  ;;  %v1120_v44 = vpop.permute.xlu0 %1119 }
 0x3d2   : > { %7013 = vmatpush3.msra.mxu0 %v1120_v44  ;;  %7080 = vmatmul.mubr.msk.f32.vlgmr.msra.gmra.mxu1 %vm1031_vm4, %v2250_v43 }
 0x3d3   : > { %7022 = vmatprep.subr.mxu0 %v8085_v6  ;;  %7095 = vmatprep.mubr.msk.f32.mxu1 %vm8086_vm1, %v8085_v6 }
 0x3d5   : > { %v8618_v5 = vpop.permute.xlu1 %1289 }
 0x479   : > { %v1103_v45 = vpop.f32.mrf.mxu0 }
 0x47a   : > { %v1274_v46 = vpop.f32.mrf.mxu1  ;;  %v1108_v47 = vsel %vm1107_vm5, %v1103_v45, -inf }
 0x47b   : > { %1109 = vmax.xlane.f32.xlu0 %v1108_v47  ;;  %v7011_v48 = vpop.f32.mrf.mxu0  ;;  %v1278_v49 = vsel %vm1107_vm5, %v1274_v46, -inf }
 0x47c   : > { %1279 = vmax.xlane.f32.xlu1 %v1278_v49  ;;  %v7021_v50 = vpop.f32.mrf.mxu1 }
 0x47e   : > { %v1449_v51 = vpop.f32.mrf.mxu1 }
 0x47f   : > { %v1453_v52 = vsel %vm1107_vm5, %v1449_v51, -inf }
 0x480   : > { %1454 = vmax.xlane.f32.xlu0 %v1453_v52  ;;  %v7031_v53 = vpop.f32.mrf.mxu1 }
 0x482   : > { %v1624_v54 = vpop.f32.mrf.mxu1 }
 0x483   : > { %v1628_v55 = vsel %vm1107_vm5, %v1624_v54, -inf }
 0x484   : > { %1629 = vmax.xlane.f32.xlu0 %v1628_v55  ;;  %v7041_v56 = vpop.f32.mrf.mxu1 }
 0x486   : > { %v1799_v57 = vpop.f32.mrf.mxu1 }
 0x487   : > { %v1803_v58 = vsel %vm1107_vm5, %v1799_v57, -inf }
 0x488   : > { %1804 = vmax.xlane.f32.xlu1 %v1803_v58  ;;  %v7051_v59 = vpop.f32.mrf.mxu1 }
 0x48a   : > { %v1974_v60 = vpop.f32.mrf.mxu1 }
 0x48b   : > { %v1978_v61 = vsel %vm1107_vm5, %v1974_v60, -inf }
 0x48c   : > { %1979 = vmax.xlane.f32.xlu0 %v1978_v61  ;;  %v7061_v62 = vpop.f32.mrf.mxu1 }
 0x48e   : > { %v2149_v63 = vpop.f32.mrf.mxu1 }
 0x48f   : > { %v2153_v0 = vsel %vm1107_vm5, %v2149_v63, -inf }
 0x490   : > { %2154 = vmax.xlane.f32.xlu1 %v2153_v0  ;;  %v7071_v1 = vpop.f32.mrf.mxu1 }
 0x492   : > { %v2324_v2 = vpop.f32.mrf.mxu1 }
 0x493   : > { %v2328_v3 = vsel %vm1107_vm5, %v2324_v2, -inf }
 0x494   : > { %2329 = vmax.xlane.f32.xlu0 %v2328_v3  ;;  %v7081_v4 = vpop.f32.mrf.mxu1 }
 0x4a1   : > { %1639 = vrot.lane.b32.xlu1 %v8535_v27, %s9405_s8  ;;  %s9407_s8 = smov 48  }
 0x4aa   : > { %1464 = vrot.lane.b32.xlu0 %v8535_v27, %s9403_s18  ;;  %s9409_s18 = smov 44  }
 0x504   : > { %v1110_v7 = vpop.xlane.xlu0 %1109 }
 0x505   : > { %v1111_v8 = vsub.f32 %v1103_v45, %v1110_v7  ;;  %v1280_v9 = vpop.xlane.xlu1 %1279 }
 0x506   : > { %v1281_v10 = vsub.f32 %v1274_v46, %v1280_v9 }
 0x507   : > { %v1112_v11 = vmul.f32 1.442695, %v1111_v8 }
 0x508   : > { %v1282_v12 = vmul.f32 1.442695, %v1281_v10 }
 0x509   : > { %7588 = vpow2.f32 %v1112_v11  ;;  %v1455_v13 = vpop.xlane.xlu0 %1454 }
 0x50a   : > { %7590 = vpow2.f32 %v1282_v12  ;;  %v1456_v14 = vsub.f32 %v1449_v51, %v1455_v13 }
 0x50c   : > { %v1457_v15 = vmul.f32 1.442695, %v1456_v14 }
 0x50d   : > { %v1630_v16 = vpop.xlane.xlu0 %1629 }
 0x50e   : > { %7592 = vpow2.f32 %v1457_v15  ;;  %v1631_v17 = vsub.f32 %v1624_v54, %v1630_v16 }
 0x510   : > { %v1632_v18 = vmul.f32 1.442695, %v1631_v17 }
 0x511   : > { %v1805_v29 = vpop.xlane.xlu1 %1804 }
 0x512   : > { %7594 = vpow2.f32 %v1632_v18  ;;  %v1806_v30 = vsub.f32 %v1799_v57, %v1805_v29  ;;  %v2423_v29 = vld [vmem:[%s9368_s7 + $0x8] sm:$0xff] }
 0x514   : > { %v1807_v34 = vmul.f32 1.442695, %v1806_v30 }
 0x515   : > { %v1980_v31 = vpop.xlane.xlu0 %1979 }
 0x516   : > { %v7589_v19 = vpop.eup %7588  ;;  %v1981_v33 = vsub.f32 %v1974_v60, %v1980_v31  ;;  %7596 = vpow2.f32 %v1807_v34  ;;  %v2422_v31 = vld [vmem:[%s9368_s7] sm:$0xff] }
 0x517   : > { %v8620_v20 = vpop.eup %7590  ;;  %v1114_v22 = vsel %vm1107_vm5, %v7589_v19, 0.0 }
 0x518   : > { %1115 = vadd.xlane.f32.xlu1 %v1114_v22  ;;  %v1284_v23 = vsel %vm1107_vm5, %v8620_v20, 0.0  ;;  %v1982_v37 = vmul.f32 1.442695, %v1981_v33 }
 0x519   : > { %1285 = vadd.xlane.f32.xlu0 %v1284_v23  ;;  %v2155_v32 = vpop.xlane.xlu1 %2154 }
 0x51a   : > { %v2156_v35 = vsub.f32 %v2149_v63, %v2155_v32  ;;  %7598 = vpow2.f32 %v1982_v37 }
 0x51b   : > { %v8625_v24 = vpop.eup %7592 }
 0x51c   : > { %v1459_v25 = vsel %vm1107_vm5, %v8625_v24, 0.0  ;;  %v2157_v38 = vmul.f32 1.442695, %v2156_v35 }
 0x51d   : > { %1460 = vadd.xlane.f32.xlu1 %v1459_v25  ;;  %v2330_v36 = vpop.xlane.xlu0 %2329  ;;  %v1640_v49 = vpop.permute.xlu1 %1639  ;;  %v2425_v25 = vld [vmem:[%s9368_s7 + $0x18] sm:$0xff] }
 0x51e   : > { %v2331_v39 = vsub.f32 %v2324_v2, %v2330_v36  ;;  %7600 = vpow2.f32 %v2157_v38  ;;  %7088 = vmatpush3.msra.mxu1 %v2425_v25 }
 0x51f   : > { %v8629_v26 = vpop.eup %7594  ;;  %7089 = vmatprep.subr.mxu1 %v8085_v6 }
 0x520   : > { %v1634_v28 = vsel %vm1107_vm5, %v8629_v26, 0.0  ;;  %v2332_v40 = vmul.f32 1.442695, %v2331_v39 }
 0x521   : > { %1635 = vadd.xlane.f32.xlu0 %v1634_v28  ;;  %v1465_v50 = vpop.permute.xlu0 %1464 }
 0x522   : > { %7602 = vpow2.f32 %v2332_v40 }
 0x523   : > { %v7597_v41 = vpop.eup %7596 }
 0x524   : > { %v1809_v43 = vsel %vm1107_vm5, %v7597_v41, 0.0 }
 0x527   : > { %v8637_v42 = vpop.eup %7598 }
 0x528   : > { %v1984_v46 = vsel %vm1107_vm5, %v8637_v42, 0.0 }
 0x52b   : > { %v8640_v44 = vpop.eup %7600 }
 0x52c   : > { %v2159_v45 = vsel %vm1107_vm5, %v8640_v44, 0.0 }
 0x52e   : > { %1989 = vrot.lane.b32.xlu1 %v8535_v27, %s9409_s18  ;;  %s9411_s18 = smov 40  }
 0x52f   : > { %v8646_v47 = vpop.eup %7602 }
 0x530   : > { %v2334_v48 = vsel %vm1107_vm5, %v8646_v47, 0.0 }
 0x537   : > { %1814 = vrot.lane.b32.xlu0 %v8535_v27, %s9407_s8  ;;  %s9413_s8 = smov 36  }
 0x552   : > { %1810 = vadd.xlane.f32.xlu1 %v1809_v43 }
 0x556   : > { %2160 = vadd.xlane.f32.xlu1 %v2159_v45  ;;  %1985 = vadd.xlane.f32.xlu0 %v1984_v46  ;;  %v6667_v45 = vld [vmem:[#allocation10] ss:$0 sm:$0xff] }
 0x55a   : > { %2335 = vadd.xlane.f32.xlu1 %v2334_v48 }
 0x56b   : > { %2339 = vrot.lane.b32.xlu1 %v8535_v27, %s9413_s8  ;;  %s9427_s8 = smov 8  }
 0x56c   : > { %2164 = vrot.lane.b32.xlu0 %v8535_v27, %s9411_s18  ;;  %s9423_s18 = smov 4  }
 0x5a1   : > { %v1116_v51 = vpop.xlane.xlu1 %1115 }
 0x5a2   : > { %7604 = vrcp.f32 %v1116_v51  ;;  %v1286_v52 = vpop.xlane.xlu0 %1285 }
 0x5a3   : > { %7606 = vrcp.f32 %v1286_v52 }
 0x5a6   : > { %v1461_v53 = vpop.xlane.xlu1 %1460 }
 0x5a7   : > { %7608 = vrcp.f32 %v1461_v53 }
 0x5aa   : > { %v1636_v54 = vpop.xlane.xlu0 %1635  ;;  %v1990_v63 = vpop.permute.xlu1 %1989 }
 0x5ab   : > { %7610 = vrcp.f32 %v1636_v54 }
 0x5ae   : > { %v1815_v62 = vpop.permute.xlu0 %1814 }
 0x5af   : > { %v7605_v55 = vpop.eup %7604 }
 0x5b0   : > { %v1118_v56 = vmul.f32 %v7605_v55, %v7589_v19  ;;  %v7607_v57 = vpop.eup %7606 }
 0x5b1   : > { %v1288_v27 = vmul.f32 %v7607_v57, %v8620_v20  ;;  %v2539_v57 = vld [vmem:[%s9372_s11 + $0x10] sm:$0xff] }
 0x5b2   : > { %7015 = vmatmul.mubr.msk.f32.vlgmr.msra.gmra.mxu0 %vm1107_vm5, %v1118_v56  ;;  %v2540_v56 = vld [vmem:[%s9372_s11 + $0x18] sm:$0xff] }
 0x5b3   : > { %7023 = vmatpush3.msra.mxu0 %v8618_v5  ;;  %7024 = vmatprep.mubr.msk.f32.mxu0 %vm8086_vm1, %v8085_v6 }
 0x5b4   : > { %7032 = vmatprep.subr.mxu0 %v8085_v6  ;;  %v7609_v58 = vpop.eup %7608 }
 0x5b5   : > { %v1463_v59 = vmul.f32 %v7609_v58, %v8625_v24 }
 0x5b6   : > { %7025 = vmatmul.mubr.msk.f32.vlgmr.msra.gmra.mxu0 %vm1107_vm5, %v1288_v27  ;;  %v2537_v27 = vld [vmem:[%s9372_s11] sm:$0xff] }
 0x5b7   : > { %7033 = vmatpush3.msra.mxu0 %v1465_v50  ;;  %7034 = vmatprep.mubr.msk.f32.mxu0 %vm8086_vm1, %v8085_v6 }
 0x5b8   : > { %7042 = vmatprep.subr.mxu0 %v8085_v6  ;;  %v7611_v60 = vpop.eup %7610 }
 0x5b9   : > { %v1638_v61 = vmul.f32 %v7611_v60, %v8629_v26  ;;  %v2424_v26 = vld [vmem:[%s9368_s7 + $0x10] sm:$0xff] }
 0x5ba   : > { %7035 = vmatmul.mubr.msk.f32.vlgmr.msra.gmra.mxu0 %vm1107_vm5, %v1463_v59  ;;  %7090 = vmatpush3.msra.mxu1 %v2424_v26 }
 0x5bb   : > { %7043 = vmatpush3.msra.mxu0 %v1640_v49  ;;  %7044 = vmatprep.mubr.msk.f32.mxu0 %vm8086_vm1, %v8085_v6 }
 0x5bc   : > { %7052 = vmatprep.subr.mxu0 %v8085_v6  ;;  %7091 = vmatprep.subr.mxu1 %v8085_v6 }
 0x5bd   : > { %7092 = vmatpush3.msra.mxu1 %v2423_v29 }
 0x5be   : > { %7045 = vmatmul.mubr.msk.f32.vlgmr.msra.gmra.mxu0 %vm1107_vm5, %v1638_v61  ;;  %7093 = vmatprep.subr.mxu1 %v8085_v6 }
 0x5bf   : > { %7053 = vmatpush3.msra.mxu0 %v1815_v62  ;;  %7054 = vmatprep.mubr.msk.f32.mxu0 %vm8086_vm1, %v8085_v6 }
 0x5c0   : > { %7062 = vmatprep.subr.mxu0 %v8085_v6  ;;  %7094 = vmatpush3.msra.mxu1 %v2422_v31  ;;  %v6679_v31 = vld [vmem:[%s9366_s5 + $0x30] sm:$0xff] }
 0x5c1   : > { %7109 = vmatprep.subr.mxu1 %v8085_v6 }
 0x5db   : > { %v1811_v0 = vpop.xlane.xlu1 %1810 }
 0x5dc   : > { %7612 = vrcp.f32 %v1811_v0 }
 0x5df   : > { %v2161_v1 = vpop.xlane.xlu1 %2160  ;;  %v1986_v2 = vpop.xlane.xlu0 %1985 }
 0x5e0   : > { %7614 = vrcp.f32 %v1986_v2 }
 0x5e1   : > { %7616 = vrcp.f32 %v2161_v1 }
 0x5e3   : > { %v2336_v3 = vpop.xlane.xlu1 %2335  ;;  %v2165_v10 = vpop.permute.xlu0 %2164 }
 0x5e4   : > { %7618 = vrcp.f32 %v2336_v3  ;;  %v6669_v3 = vld [vmem:[#allocation12] ss:$0 sm:$0xff] }
 0x5e7   : > { %v2340_v13 = vpop.permute.xlu1 %2339 }
 0x5e9   : > { %v7613_v4 = vpop.eup %7612 }
 0x5ea   : > { %v1813_v5 = vmul.f32 %v7613_v4, %v7597_v41 }
 0x5ec   : > { %7055 = vmatmul.mubr.msk.f32.vlgmr.msra.gmra.mxu0 %vm1107_vm5, %v1813_v5  ;;  %v6670_v5 = vld [vmem:[#allocation13] ss:$0 sm:$0xff] }
 0x5ed   : > { %7063 = vmatpush3.msra.mxu0 %v1990_v63  ;;  %7064 = vmatprep.mubr.msk.f32.mxu0 %vm8086_vm1, %v8085_v6  ;;  %v7615_v7 = vpop.eup %7614 }
 0x5ee   : > { %7072 = vmatprep.subr.mxu0 %v8085_v6  ;;  %v1988_v8 = vmul.f32 %v7615_v7, %v8637_v42  ;;  %v7617_v9 = vpop.eup %7616 }
 0x5ef   : > { %v2163_v11 = vmul.f32 %v7617_v9, %v8640_v44 }
 0x5f0   : > { %7065 = vmatmul.mubr.msk.f32.vlgmr.msra.gmra.mxu0 %vm1107_vm5, %v1988_v8 }
 0x5f1   : > { %7073 = vmatpush3.msra.mxu0 %v2165_v10  ;;  %7074 = vmatprep.mubr.msk.f32.mxu0 %vm8086_vm1, %v8085_v6  ;;  %v7619_v12 = vpop.eup %7618 }
 0x5f2   : > { %7082 = vmatprep.subr.mxu0 %v8085_v6  ;;  %v2338_v14 = vmul.f32 %v7619_v12, %v8646_v47  ;;  %v6671_v12 = vld [vmem:[#allocation15] ss:$0 sm:$0xff] }
 0x5f4   : > { %7075 = vmatmul.mubr.msk.f32.vlgmr.msra.gmra.mxu0 %vm1107_vm5, %v2163_v11 }
 0x5f5   : > { %7083 = vmatpush3.msra.mxu0 %v2340_v13  ;;  %7084 = vmatprep.mubr.msk.f32.mxu0 %vm8086_vm1, %v8085_v6 }
 0x5f6   : > { %7098 = vmatprep.subr.mxu0 %v8085_v6 }
 0x5f8   : > { %7085 = vmatmul.mubr.msk.f32.vlgmr.msra.gmra.mxu0 %vm1107_vm5, %v2338_v14 }
 0x5f9   : > { %7106 = vmatprep.mubr.msk.f32.mxu0 %vm8086_vm1, %v8085_v6  ;;  %7099 = vmatpush3.msra.mxu0 %v2540_v56 }
 0x5fa   : > { %7100 = vmatprep.subr.mxu0 %v8085_v6 }
 0x5fb   : > { %7101 = vmatpush3.msra.mxu0 %v2539_v57 }
 0x5fc   : > { %7102 = vmatprep.subr.mxu0 %v8085_v6 }
 0x672   : > { %v1191_v15 = vpop.f32.mrf.mxu0 }
 0x673   : > { %1195 = vst.msk [vmem:[#allocation3] sm:$0xff] %vm1031_vm4, %v1191_v15 }
 0x674   : > { %v7016_v16 = vpop.f32.mrf.mxu0 }
 0x676   : > { %v1361_v17 = vpop.f32.mrf.mxu0 }
 0x677   : > { %1366 = vrot.lane.b32.xlu0 %v1361_v17, %s9423_s18  ;;  %s9435_s18 = smov 28   ;;  %v6673_v17 = vld [vmem:[#allocation16] ss:$0 sm:$0xff] }
 0x678   : > { %v7026_v18 = vpop.f32.mrf.mxu0 }
 0x67a   : > { %v1536_v19 = vpop.f32.mrf.mxu0 }
 0x67b   : > { %1541 = vrot.lane.b32.xlu1 %v1536_v19, %s9427_s8  ;;  %s9524_s8 = sld [smem:[#allocation50_spill]] }
 0x67c   : > { %v7036_v20 = vpop.f32.mrf.mxu0 }
 0x67e   : > { %v1711_v22 = vpop.f32.mrf.mxu0 }
 0x67f   : > { %1716 = vrot.lane.b32.xlu0 %v1711_v22, %s9433_s23  ;;  %s9526_s23 = smov 84  }
 0x680   : > { %v7046_v23 = vpop.f32.mrf.mxu0 }
 0x681   : > { %v2629_v58 = vld [vmem:[%s9524_s8 + $0x38] sm:$0xff]  ;;  %v2628_v59 = vld [vmem:[%s9524_s8 + $0x30] sm:$0xff]  ;;  %v2627_v60 = vld [vmem:[%s9524_s8 + $0x28] sm:$0xff] }
 0x682   : > { %v2626_v61 = vld [vmem:[%s9524_s8 + $0x20] sm:$0xff]  ;;  %v2625_v62 = vld [vmem:[%s9524_s8 + $0x18] sm:$0xff]  ;;  %v2624_v9 = vld [vmem:[%s9524_s8 + $0x10] sm:$0xff] }
 0x683   : > { %v2623_v10 = vld [vmem:[%s9524_s8 + $0x8] sm:$0xff]  ;;  %v2622_v11 = vld [vmem:[%s9524_s8] sm:$0xff] }
 0x6ac   : > { %v1886_v24 = vpop.f32.mrf.mxu0 }
 0x6ad   : > { %1891 = vrot.lane.b32.xlu1 %v1886_v24, %s9431_s9  ;;  %s9525_s9 = smov 120  }
 0x6ae   : > { %v7056_v28 = vpop.f32.mrf.mxu0 }
 0x6b0   : > { %v2061_v30 = vpop.f32.mrf.mxu0 }
 0x6b1   : > { %2066 = vrot.lane.b32.xlu0 %v2061_v30, %s9439_s27  ;;  %v6680_v30 = vld [vmem:[%s9366_s5 + $0x38] sm:$0xff]  ;;  %s9531_s27 = smov 108  }
 0x6b2   : > { %v7066_v32 = vpop.f32.mrf.mxu0 }
 0x6b3   : > { %v6678_v32 = vld [vmem:[%s9366_s5 + $0x28] sm:$0xff] }
 0x6b4   : > { %v2236_v33 = vpop.f32.mrf.mxu0 }
 0x6b5   : > { %2241 = vrot.lane.b32.xlu1 %v2236_v33, %s9437_s6  ;;  %v6677_v33 = vld [vmem:[%s9366_s5 + $0x20] sm:$0xff]  ;;  %s9532_s6 = smov 72  }
 0x6b6   : > { %v7076_v34 = vpop.f32.mrf.mxu0 }
 0x6b8   : > { %v2411_v35 = vpop.f32.mrf.mxu0 }
 0x6b9   : > { %2416 = vrot.lane.b32.xlu0 %v2411_v35, %s9435_s18  ;;  %s9529_s18 = smov 112  }
 0x6ba   : > { %v7086_v36 = vpop.f32.mrf.mxu0 }
 0x6e9   : > { %v1367_v37 = vpop.permute.xlu0 %1366 }
 0x6ea   : > { %1370 = vst.msk [vmem:[#allocation3] sm:$0xff] %vm1369_vm6, %v1367_v37 }
 0x6ed   : > { %v1542_v38 = vpop.permute.xlu1 %1541 }
 0x6ee   : > { %1545 = vst.msk [vmem:[#allocation3] sm:$0xff] %vm1544_vm7, %v1542_v38  ;;  %v6675_v38 = vld [vmem:[#allocation18] ss:$0 sm:$0xff] }
 0x6f1   : > { %v1717_v39 = vpop.permute.xlu0 %1716 }
 0x6f2   : > { %1720 = vst.msk [vmem:[#allocation3] sm:$0xff] %vm1719_vm8, %v1717_v39 }
 0x71f   : > { %v1892_v40 = vpop.permute.xlu1 %1891 }
 0x720   : > { %1895 = vst.msk [vmem:[#allocation3] sm:$0xff] %vm1894_vm9, %v1892_v40  ;;  %v6676_v40 = vld [vmem:[#allocation19] ss:$0 sm:$0xff] }
 0x723   : > { %v2067_v41 = vpop.permute.xlu0 %2066 }
 0x724   : > { %2070 = vst.msk [vmem:[#allocation3] sm:$0xff] %vm2069_vm10, %v2067_v41 }
 0x727   : > { %v2242_v42 = vpop.permute.xlu1 %2241 }
 0x728   : > { %2245 = vst.msk [vmem:[#allocation3] sm:$0xff] %vm2244_vm11, %v2242_v42 }
 0x72b   : > { %v2417_v43 = vpop.permute.xlu0 %2416 }
 0x72c   : > { %2420 = vst.msk [vmem:[#allocation3] sm:$0xff] %vm2419_vm12, %v2417_v43  ;;  %v6681_v43 = vld [vmem:[#allocation9 + $0x1] ss:$0 sm:$0xff] }
 0x733   : > { %v2421_v44 = vld [vmem:[#allocation3] sm:$0xff] }
 0x734   : > { %7096 = vmatmul.mubr.msk.f32.vlgmr.msra.gmra.mxu1 %vm777_vm0, %v2421_v44 }
 0x735   : > { %7125 = vmatprep.mubr.msk.f32.mxu1 %vm8086_vm1, %v8085_v6  ;;  %7110 = vmatpush3.msra.mxu1 %v2629_v58 }
 0x736   : > { %7111 = vmatprep.subr.mxu1 %v8085_v6 }
 0x737   : > { %7112 = vmatpush3.msra.mxu1 %v2628_v59 }
 0x738   : > { %7113 = vmatprep.subr.mxu1 %v8085_v6 }
 0x739   : > { %7114 = vmatpush3.msra.mxu1 %v2627_v60 }
 0x73a   : > { %7115 = vmatprep.subr.mxu1 %v8085_v6 }
 0x73b   : > { %7116 = vmatpush3.msra.mxu1 %v2626_v61 }
 0x73c   : > { %7117 = vmatprep.subr.mxu1 %v8085_v6 }
 0x73d   : > { %7118 = vmatpush3.msra.mxu1 %v2625_v62 }
 0x73e   : > { %7119 = vmatprep.subr.mxu1 %v8085_v6 }
 0x73f   : > { %7120 = vmatpush3.msra.mxu1 %v2624_v9 }
 0x740   : > { %7121 = vmatprep.subr.mxu1 %v8085_v6 }
 0x741   : > { %7122 = vmatpush3.msra.mxu1 %v2623_v10 }
 0x742   : > { %7123 = vmatprep.subr.mxu1 %v8085_v6 }
 0x743   : > { %7124 = vmatpush3.msra.mxu1 %v2622_v11 }
 0x744   : > { %7149 = vmatprep.subr.mxu1 %v8085_v6 }
 0x7f4   : > { %v2502_v46 = vpop.f32.mrf.mxu1 }
 0x7f5   : > { %v2503_v47 = vadd.f32 %v6667_v45, %v2502_v46 }
 0x7f6   : > { %v7097_v48 = vpop.f32.mrf.mxu1 }
 0x7f7   : > { %v2506_v49 = vadd.f32 %v2503_v47, %v8528_v21  ;;  %v2538_v21 = vld [vmem:[%s9372_s11 + $0x8] sm:$0xff] }
 0x7f8   : > { %7103 = vmatpush3.msra.mxu0 %v2538_v21 }
 0x7f9   : > { %v2509_v50 = vsel %vm777_vm0, %v2506_v49, 0.0  ;;  %7104 = vmatprep.subr.mxu0 %v8085_v6 }
 0x7fa   : > { %2510 = vadd.xlane.f32.xlu1 %v2509_v50  ;;  %7105 = vmatpush3.msra.mxu0 %v2537_v27 }
 0x7fb   : > { %7128 = vmatprep.subr.mxu0 %v8085_v6 }
 0x883   : > { %v2511_v51 = vpop.xlane.xlu1 %2510 }
 0x884   : > { %v2513_v52 = vmul.f32 0.03125, %v2511_v51 }
 0x886   : > { %v2514_v53 = vsub.f32 %v2506_v49, %v2513_v52 }
 0x888   : > { %v2515_v54 = vmul.f32 %v2514_v53, %v2514_v53 }
 0x88a   : > { %v2516_v55 = vsel %vm777_vm0, %v2515_v54, 0.0 }
 0x88b   : > { %2517 = vadd.xlane.f32.xlu0 %v2516_v55 }
 0x914   : > { %v2518_v63 = vpop.xlane.xlu0 %2517 }
 0x915   : > { %v2519_v0 = vmul.f32 0.03125, %v2518_v63 }
 0x917   : > { %v2520_v1 = vadd.f32 1e-05, %v2519_v0 }
 0x919   : > { %7620 = vrsqrt.f32 %v2520_v1 }
 0x926   : > { %v7621_v2 = vpop.eup %7620 }
 0x927   : > { %v2522_v4 = vmul.f32 %v7621_v2, %v2514_v53 }
 0x929   : > { %v2529_v7 = vmul.f32 %v6669_v3, %v2522_v4 }
 0x92b   : > { %v2536_v8 = vadd.f32 %v6670_v5, %v2529_v7 }
 0x92d   : > { %7107 = vmatmul.mubr.msk.f32.vlgmr.msra.gmra.mxu0 %vm777_vm0, %v2536_v8 }
 0x92e   : > { %7136 = vmatprep.mubr.msk.f32.mxu0 %vm8086_vm1, %v8085_v6  ;;  %7129 = vmatpush3.msra.mxu0 %v6680_v30 }
 0x92f   : > { %7130 = vmatprep.subr.mxu0 %v8085_v6 }
 0x930   : > { %7131 = vmatpush3.msra.mxu0 %v6679_v31 }
 0x931   : > { %7132 = vmatprep.subr.mxu0 %v8085_v6 }
 0x932   : > { %7133 = vmatpush3.msra.mxu0 %v6678_v32 }
 0x933   : > { %7134 = vmatprep.subr.mxu0 %v8085_v6 }
 0x934   : > { %7135 = vmatpush3.msra.mxu0 %v6677_v33 }
 0x935   : > { %7139 = vmatprep.subr.mxu0 %v8085_v6 }
 0x9ed   : > { %v2617_v13 = vpop.f32.mrf.mxu0 }
 0x9ee   : > { %v2618_v14 = vadd.f32 %v6671_v12, %v2617_v13 }
 0x9ef   : > { %v7108_v15 = vpop.f32.mrf.mxu0 }
 0x9f0   : > { %v2621_v16 = vmax.f32 %v2618_v14, 0.0 }
 0x9f2   : > { %7126 = vmatmul.mubr.msk.f32.vlgmr.msra.gmra.mxu1 %vm2637_vm13, %v2621_v16 }
 0x9f3   : > { %7151 = vmatprep.mubr.msk.f32.mxu1 %vm8086_vm1, %v8085_v6 }
 0xab2   : > { %v2707_v18 = vpop.f32.mrf.mxu1 }
 0xab3   : > { %v2708_v19 = vadd.f32 %v6673_v17, %v2707_v18 }
 0xab4   : > { %v7127_v20 = vpop.f32.mrf.mxu1 }
 0xab5   : > { %v2711_v22 = vadd.f32 %v2708_v19, %v2536_v8 }
 0xab7   : > { %v2714_v23 = vsel %vm777_vm0, %v2711_v22, 0.0 }
 0xab8   : > { %2715 = vadd.xlane.f32.xlu0 %v2714_v23 }
 0xb41   : > { %v2716_v24 = vpop.xlane.xlu0 %2715 }
 0xb42   : > { %v2717_v25 = vmul.f32 0.03125, %v2716_v24 }
 0xb44   : > { %v2718_v26 = vsub.f32 %v2711_v22, %v2717_v25 }
 0xb46   : > { %v2719_v28 = vmul.f32 %v2718_v26, %v2718_v26 }
 0xb48   : > { %v2720_v29 = vsel %vm777_vm0, %v2719_v28, 0.0 }
 0xb49   : > { %2721 = vadd.xlane.f32.xlu1 %v2720_v29 }
 0xbd2   : > { %v2722_v34 = vpop.xlane.xlu1 %2721 }
 0xbd3   : > { %v2723_v35 = vmul.f32 0.03125, %v2722_v34 }
 0xbd5   : > { %v2724_v36 = vadd.f32 1e-05, %v2723_v35 }
 0xbd7   : > { %7622 = vrsqrt.f32 %v2724_v36 }
 0xbe4   : > { %v7623_v37 = vpop.eup %7622 }
 0xbe5   : > { %v2726_v39 = vmul.f32 %v7623_v37, %v2718_v26 }
 0xbe7   : > { %v2733_v41 = vmul.f32 %v6675_v38, %v2726_v39 }
 0xbe9   : > { %v8801_v42 = vadd.f32 %v6676_v40, %v2733_v41 }
 0xbeb   : > { %7137 = vmatmul.mubr.msk.f32.vlgmr.msra.gmra.mxu0 %vm777_vm0, %v8801_v42 }
 0xbec   : > { %7141 = vmatprep.mubr.msk.f32.mxu0 %vm8086_vm1, %v8085_v6 }
 0xcab   : > { %v2823_v44 = vpop.f32.mrf.mxu0 }
 0xcac   : > { %v2824_v45 = vadd.f32 %v6681_v43, %v2823_v44 }
 0xcad   : > { %v7138_v46 = vpop.f32.mrf.mxu0 }
 0xcae   : > { %2827 = vst.msk [vmem:[#allocation2] sm:$0xff] %vm1024_vm3, %v2824_v45 }
 0xcb5   : > { %v8808_v47 = vld [vmem:[#allocation2] sm:$0xff] }
 0xcb6   : > { %3002 = vrot.lane.b32.xlu1 %v8808_v47, %s9446_s14  ;;  %2831 = vrot.lane.b32.xlu0 %v8808_v47, %s9445_s19  ;;  %v2829_v48 = vmul.f32 0.5, %v8808_v47  ;;  %s9535_s19 = smov 100   ;;  %s9536_s14 = smov 64  }
 0xcba   : > { %2999 = vrot.lane.b32.xlu1 %v2829_v48, %s9444_s15  ;;  %3176 = vrot.lane.b32.xlu0 %v8808_v47, %s9443_s24  ;;  %s9533_s24 = smov 104   ;;  %s9534_s15 = smov 68  }
 0xcbe   : > { %3173 = vrot.lane.b32.xlu1 %v2829_v48, %s9525_s9  ;;  %3350 = vrot.lane.b32.xlu0 %v8808_v47, %s9526_s23 }
 0xcc2   : > { %3347 = vrot.lane.b32.xlu1 %v2829_v48, %s9527_s13  ;;  %3524 = vrot.lane.b32.xlu0 %v8808_v47, %s9528_s26 }
 0xcc6   : > { %3521 = vrot.lane.b32.xlu1 %v2829_v48, %s9529_s18  ;;  %3698 = vrot.lane.b32.xlu0 %v8808_v47, %s9530_s22 }
 0xcca   : > { %3695 = vrot.lane.b32.xlu1 %v2829_v48, %s9531_s27  ;;  %3872 = vrot.lane.b32.xlu0 %v8808_v47, %s9532_s6 }
 0xcce   : > { %3869 = vrot.lane.b32.xlu1 %v2829_v48, %s9533_s24  ;;  %4046 = vrot.lane.b32.xlu0 %v8808_v47, %s9534_s15 }
 0xcd2   : > { %4043 = vrot.lane.b32.xlu1 %v2829_v48, %s9535_s19  ;;  %2919 = vrot.lane.b32.xlu0 %v8808_v47, %s9536_s14 }
 0xcd6   : > { %3089 = vrot.lane.b32.xlu1 %v8808_v47, %s9537_s4 }
 0xd28   : > { %v3003_v49 = vpop.permute.xlu1 %3002  ;;  %v2832_v50 = vpop.permute.xlu0 %2831 }
 0xd29   : > { %7140 = vmatpush3.xpose.msk.msra.mxu0 %vm1031_vm4, %v2832_v50  ;;  %7150 = vmatpush3.xpose.msk.msra.mxu1 %vm1031_vm4, %v3003_v49 }
 0xd2a   : > { %7159 = vmatprep.subr.mxu1 %v8085_v6  ;;  %7144 = vmatprep.subr.mxu0 %v8085_v6 }
 0xd2c   : > { %v3000_v51 = vpop.permute.xlu1 %2999  ;;  %v3177_v52 = vpop.permute.xlu0 %3176  ;;  %7142 = vmatmul.mubr.msk.f32.vlgmr.msra.gmra.mxu0 %vm1031_vm4, %v2829_v48 }
 0xd2d   : > { %7152 = vmatmul.mubr.msk.f32.vlgmr.msra.gmra.mxu1 %vm1031_vm4, %v3000_v51  ;;  %7146 = vmatprep.mubr.msk.f32.mxu0 %vm8086_vm1, %v8085_v6 }
 0xd2e   : > { %7160 = vmatpush3.xpose.msk.msra.mxu1 %vm1031_vm4, %v3177_v52  ;;  %7161 = vmatprep.mubr.msk.f32.mxu1 %vm8086_vm1, %v8085_v6 }
 0xd2f   : > { %7169 = vmatprep.subr.mxu1 %v8085_v6 }
 0xd30   : > { %v3174_v53 = vpop.permute.xlu1 %3173  ;;  %v3351_v54 = vpop.permute.xlu0 %3350 }
 0xd31   : > { %7162 = vmatmul.mubr.msk.f32.vlgmr.msra.gmra.mxu1 %vm1031_vm4, %v3174_v53 }
 0xd32   : > { %7170 = vmatpush3.xpose.msk.msra.mxu1 %vm1031_vm4, %v3351_v54  ;;  %7171 = vmatprep.mubr.msk.f32.mxu1 %vm8086_vm1, %v8085_v6 }
 0xd33   : > { %7179 = vmatprep.subr.mxu1 %v8085_v6 }
 0xd34   : > { %v3348_v55 = vpop.permute.xlu1 %3347  ;;  %v3525_v56 = vpop.permute.xlu0 %3524 }
 0xd35   : > { %7172 = vmatmul.mubr.msk.f32.vlgmr.msra.gmra.mxu1 %vm1031_vm4, %v3348_v55 }
 0xd36   : > { %7180 = vmatpush3.xpose.msk.msra.mxu1 %vm1031_vm4, %v3525_v56  ;;  %7181 = vmatprep.mubr.msk.f32.mxu1 %vm8086_vm1, %v8085_v6 }
 0xd37   : > { %7189 = vmatprep.subr.mxu1 %v8085_v6 }
 0xd38   : > { %v3522_v57 = vpop.permute.xlu1 %3521  ;;  %v3699_v21 = vpop.permute.xlu0 %3698 }
 0xd39   : > { %7182 = vmatmul.mubr.msk.f32.vlgmr.msra.gmra.mxu1 %vm1031_vm4, %v3522_v57 }
 0xd3a   : > { %7190 = vmatpush3.xpose.msk.msra.mxu1 %vm1031_vm4, %v3699_v21  ;;  %7191 = vmatprep.mubr.msk.f32.mxu1 %vm8086_vm1, %v8085_v6 }
 0xd3b   : > { %7199 = vmatprep.subr.mxu1 %v8085_v6 }
 0xd3c   : > { %v3696_v27 = vpop.permute.xlu1 %3695  ;;  %v3873_v58 = vpop.permute.xlu0 %3872 }
 0xd3d   : > { %7192 = vmatmul.mubr.msk.f32.vlgmr.msra.gmra.mxu1 %vm1031_vm4, %v3696_v27 }
 0xd3e   : > { %7200 = vmatpush3.xpose.msk.msra.mxu1 %vm1031_vm4, %v3873_v58  ;;  %7201 = vmatprep.mubr.msk.f32.mxu1 %vm8086_vm1, %v8085_v6 }
 0xd3f   : > { %7209 = vmatprep.subr.mxu1 %v8085_v6 }
 0xd40   : > { %v3870_v59 = vpop.permute.xlu1 %3869  ;;  %v4047_v60 = vpop.permute.xlu0 %4046 }
 0xd41   : > { %7202 = vmatmul.mubr.msk.f32.vlgmr.msra.gmra.mxu1 %vm1031_vm4, %v3870_v59 }
 0xd42   : > { %7210 = vmatpush3.xpose.msk.msra.mxu1 %vm1031_vm4, %v4047_v60  ;;  %7211 = vmatprep.mubr.msk.f32.mxu1 %vm8086_vm1, %v8085_v6 }
 0xd43   : > { %7219 = vmatprep.subr.mxu1 %v8085_v6 }
 0xd44   : > { %v4044_v61 = vpop.permute.xlu1 %4043  ;;  %v2920_v62 = vpop.permute.xlu0 %2919 }
 0xd45   : > { %7145 = vmatpush3.msra.mxu0 %v2920_v62  ;;  %7212 = vmatmul.mubr.msk.f32.vlgmr.msra.gmra.mxu1 %vm1031_vm4, %v4044_v61 }
 0xd46   : > { %7154 = vmatprep.subr.mxu0 %v8085_v6  ;;  %7227 = vmatprep.mubr.msk.f32.mxu1 %vm8086_vm1, %v8085_v6 }
 0xd48   : > { %v8891_v25 = vpop.permute.xlu1 %3089 }
 0xdec   : > { %v2904_v63 = vpop.f32.mrf.mxu0 }
 0xded   : > { %v3074_v0 = vpop.f32.mrf.mxu1  ;;  %v2908_v1 = vsel %vm1107_vm5, %v2904_v63, -inf }
 0xdee   : > { %2909 = vmax.xlane.f32.xlu0 %v2908_v1  ;;  %v7143_v2 = vpop.f32.mrf.mxu0  ;;  %v3078_v3 = vsel %vm1107_vm5, %v3074_v0, -inf }
 0xdef   : > { %3079 = vmax.xlane.f32.xlu1 %v3078_v3  ;;  %v7153_v4 = vpop.f32.mrf.mxu1 }
 0xdf1   : > { %v3248_v5 = vpop.f32.mrf.mxu1 }
 0xdf2   : > { %v3252_v7 = vsel %vm1107_vm5, %v3248_v5, -inf }
 0xdf3   : > { %3253 = vmax.xlane.f32.xlu0 %v3252_v7  ;;  %v7163_v8 = vpop.f32.mrf.mxu1 }
 0xdf5   : > { %v3422_v9 = vpop.f32.mrf.mxu1 }
 0xdf6   : > { %v3426_v10 = vsel %vm1107_vm5, %v3422_v9, -inf }
 0xdf7   : > { %3427 = vmax.xlane.f32.xlu0 %v3426_v10  ;;  %v7173_v11 = vpop.f32.mrf.mxu1 }
 0xdf9   : > { %v3596_v12 = vpop.f32.mrf.mxu1 }
 0xdfa   : > { %v3600_v13 = vsel %vm1107_vm5, %v3596_v12, -inf }
 0xdfb   : > { %3601 = vmax.xlane.f32.xlu1 %v3600_v13  ;;  %v7183_v14 = vpop.f32.mrf.mxu1 }
 0xdfd   : > { %v3770_v15 = vpop.f32.mrf.mxu1 }
 0xdfe   : > { %v3774_v16 = vsel %vm1107_vm5, %v3770_v15, -inf }
 0xdff   : > { %3775 = vmax.xlane.f32.xlu0 %v3774_v16  ;;  %v7193_v17 = vpop.f32.mrf.mxu1 }
 0xe01   : > { %v3944_v18 = vpop.f32.mrf.mxu1 }
 0xe02   : > { %v3948_v19 = vsel %vm1107_vm5, %v3944_v18, -inf }
 0xe03   : > { %3949 = vmax.xlane.f32.xlu1 %v3948_v19  ;;  %v7203_v20 = vpop.f32.mrf.mxu1 }
 0xe05   : > { %v4118_v22 = vpop.f32.mrf.mxu1 }
 0xe06   : > { %v4122_v23 = vsel %vm1107_vm5, %v4118_v22, -inf }
 0xe07   : > { %4123 = vmax.xlane.f32.xlu0 %v4122_v23  ;;  %v7213_v24 = vpop.f32.mrf.mxu1 }
 0xe14   : > { %3437 = vrot.lane.b32.xlu1 %v8808_v47, %s9538_s12 }
 0xe1d   : > { %3263 = vrot.lane.b32.xlu0 %v8808_v47, %s9539_s16 }
 0xe77   : > { %v2910_v26 = vpop.xlane.xlu0 %2909 }
 0xe78   : > { %v2911_v28 = vsub.f32 %v2904_v63, %v2910_v26  ;;  %v3080_v29 = vpop.xlane.xlu1 %3079 }
 0xe79   : > { %v3081_v30 = vsub.f32 %v3074_v0, %v3080_v29 }
 0xe7a   : > { %v2912_v31 = vmul.f32 1.442695, %v2911_v28 }
 0xe7b   : > { %v3082_v32 = vmul.f32 1.442695, %v3081_v30 }
 0xe7c   : > { %7624 = vpow2.f32 %v2912_v31  ;;  %v3254_v33 = vpop.xlane.xlu0 %3253 }
 0xe7d   : > { %7626 = vpow2.f32 %v3082_v32  ;;  %v3255_v34 = vsub.f32 %v3248_v5, %v3254_v33 }
 0xe7f   : > { %v3256_v35 = vmul.f32 1.442695, %v3255_v34 }
 0xe80   : > { %v3428_v36 = vpop.xlane.xlu0 %3427 }
 0xe81   : > { %7628 = vpow2.f32 %v3256_v35  ;;  %v3429_v37 = vsub.f32 %v3422_v9, %v3428_v36 }
 0xe83   : > { %v3430_v38 = vmul.f32 1.442695, %v3429_v37 }
 0xe84   : > { %v3602_v49 = vpop.xlane.xlu1 %3601 }
 0xe85   : > { %7630 = vpow2.f32 %v3430_v38  ;;  %v3603_v50 = vsub.f32 %v3596_v12, %v3602_v49  ;;  %v6708_v49 = vld [vmem:[%s9368_s7 + $0x28] sm:$0xff] }
 0xe87   : > { %v3604_v54 = vmul.f32 1.442695, %v3603_v50 }
 0xe88   : > { %v3776_v51 = vpop.xlane.xlu0 %3775 }
 0xe89   : > { %v7625_v39 = vpop.eup %7624  ;;  %v3777_v53 = vsub.f32 %v3770_v15, %v3776_v51  ;;  %7632 = vpow2.f32 %v3604_v54  ;;  %v6707_v51 = vld [vmem:[%s9368_s7 + $0x20] sm:$0xff] }
 0xe8a   : > { %v7627_v40 = vpop.eup %7626  ;;  %v2914_v41 = vsel %vm1107_vm5, %v7625_v39, 0.0 }
 0xe8b   : > { %2915 = vadd.xlane.f32.xlu1 %v2914_v41  ;;  %v3084_v43 = vsel %vm1107_vm5, %v7627_v40, 0.0  ;;  %v3778_v57 = vmul.f32 1.442695, %v3777_v53 }
 0xe8c   : > { %3085 = vadd.xlane.f32.xlu0 %v3084_v43  ;;  %v3950_v52 = vpop.xlane.xlu1 %3949 }
 0xe8d   : > { %v3951_v55 = vsub.f32 %v3944_v18, %v3950_v52  ;;  %7634 = vpow2.f32 %v3778_v57 }
 0xe8e   : > { %v7629_v44 = vpop.eup %7628 }
 0xe8f   : > { %v3258_v45 = vsel %vm1107_vm5, %v7629_v44, 0.0  ;;  %v3952_v21 = vmul.f32 1.442695, %v3951_v55 }
 0xe90   : > { %3259 = vadd.xlane.f32.xlu1 %v3258_v45  ;;  %v4124_v56 = vpop.xlane.xlu0 %4123  ;;  %v3438_v3 = vpop.permute.xlu1 %3437  ;;  %v6710_v45 = vld [vmem:[%s9368_s7 + $0x38] sm:$0xff] }
 0xe91   : > { %v4125_v27 = vsub.f32 %v4118_v22, %v4124_v56  ;;  %7636 = vpow2.f32 %v3952_v21  ;;  %7220 = vmatpush3.msra.mxu1 %v6710_v45 }
 0xe92   : > { %v8896_v46 = vpop.eup %7630  ;;  %7221 = vmatprep.subr.mxu1 %v8085_v6 }
 0xe93   : > { %v3432_v48 = vsel %vm1107_vm5, %v8896_v46, 0.0  ;;  %v4126_v58 = vmul.f32 1.442695, %v4125_v27 }
 0xe94   : > { %3433 = vadd.xlane.f32.xlu0 %v3432_v48  ;;  %v3264_v4 = vpop.permute.xlu0 %3263 }
 0xe95   : > { %7638 = vpow2.f32 %v4126_v58 }
 0xe96   : > { %v7633_v59 = vpop.eup %7632 }
 0xe97   : > { %v3606_v61 = vsel %vm1107_vm5, %v7633_v59, 0.0 }
 0xe9a   : > { %v8904_v60 = vpop.eup %7634 }
 0xe9b   : > { %v3780_v0 = vsel %vm1107_vm5, %v8904_v60, 0.0 }
 0xe9e   : > { %v8907_v62 = vpop.eup %7636 }
 0xe9f   : > { %v3954_v63 = vsel %vm1107_vm5, %v8907_v62, 0.0 }
 0xea1   : > { %3785 = vrot.lane.b32.xlu1 %v8808_v47, %s9540_s17 }
 0xea2   : > { %v8913_v1 = vpop.eup %7638 }
 0xea3   : > { %v4128_v2 = vsel %vm1107_vm5, %v8913_v1, 0.0 }
 0xeaa   : > { %3611 = vrot.lane.b32.xlu0 %v8808_v47, %s9541_s29 }
 0xec5   : > { %3607 = vadd.xlane.f32.xlu1 %v3606_v61 }
 0xec9   : > { %3955 = vadd.xlane.f32.xlu1 %v3954_v63  ;;  %3781 = vadd.xlane.f32.xlu0 %v3780_v0  ;;  %v6711_v63 = vld [vmem:[#allocation10 + $0x1] ss:$0 sm:$0xff] }
 0xecd   : > { %4129 = vadd.xlane.f32.xlu1 %v4128_v2 }
 0xede   : > { %4133 = vrot.lane.b32.xlu1 %v8808_v47, %s9542_s3 }
 0xedf   : > { %3959 = vrot.lane.b32.xlu0 %v8808_v47, %s9543_s20 }
 0xf14   : > { %v2916_v5 = vpop.xlane.xlu1 %2915 }
 0xf15   : > { %7640 = vrcp.f32 %v2916_v5  ;;  %v3086_v7 = vpop.xlane.xlu0 %3085 }
 0xf16   : > { %7642 = vrcp.f32 %v3086_v7 }
 0xf19   : > { %v3260_v8 = vpop.xlane.xlu1 %3259 }
 0xf1a   : > { %7644 = vrcp.f32 %v3260_v8 }
 0xf1d   : > { %v3434_v9 = vpop.xlane.xlu0 %3433  ;;  %v3786_v18 = vpop.permute.xlu1 %3785 }
 0xf1e   : > { %7646 = vrcp.f32 %v3434_v9 }
 0xf21   : > { %v3612_v17 = vpop.permute.xlu0 %3611 }
 0xf22   : > { %v7641_v10 = vpop.eup %7640 }
 0xf23   : > { %v2918_v11 = vmul.f32 %v7641_v10, %v7625_v39  ;;  %v7643_v12 = vpop.eup %7642 }
 0xf24   : > { %v3088_v47 = vmul.f32 %v7643_v12, %v7627_v40  ;;  %v6717_v12 = vld [vmem:[%s9372_s11 + $0x30] sm:$0xff] }
 0xf25   : > { %7147 = vmatmul.mubr.msk.f32.vlgmr.msra.gmra.mxu0 %vm1107_vm5, %v2918_v11  ;;  %v6718_v11 = vld [vmem:[%s9372_s11 + $0x38] sm:$0xff] }
 0xf26   : > { %7155 = vmatpush3.msra.mxu0 %v8891_v25  ;;  %7156 = vmatprep.mubr.msk.f32.mxu0 %vm8086_vm1, %v8085_v6 }
 0xf27   : > { %7164 = vmatprep.subr.mxu0 %v8085_v6  ;;  %v7645_v13 = vpop.eup %7644 }
 0xf28   : > { %v3262_v14 = vmul.f32 %v7645_v13, %v7629_v44  ;;  %v6728_v13 = vld [vmem:[%s9524_s8 + $0x78] sm:$0xff] }
 0xf29   : > { %7157 = vmatmul.mubr.msk.f32.vlgmr.msra.gmra.mxu0 %vm1107_vm5, %v3088_v47  ;;  %v6715_v47 = vld [vmem:[%s9372_s11 + $0x20] sm:$0xff] }
 0xf2a   : > { %7165 = vmatpush3.msra.mxu0 %v3264_v4  ;;  %7166 = vmatprep.mubr.msk.f32.mxu0 %vm8086_vm1, %v8085_v6 }
 0xf2b   : > { %7174 = vmatprep.subr.mxu0 %v8085_v6  ;;  %v7647_v15 = vpop.eup %7646 }
 0xf2c   : > { %v3436_v16 = vmul.f32 %v7647_v15, %v8896_v46  ;;  %v6709_v46 = vld [vmem:[%s9368_s7 + $0x30] sm:$0xff]  ;;  %v6726_v15 = vld [vmem:[%s9524_s8 + $0x68] sm:$0xff] }
 0xf2d   : > { %7167 = vmatmul.mubr.msk.f32.vlgmr.msra.gmra.mxu0 %vm1107_vm5, %v3262_v14  ;;  %7222 = vmatpush3.msra.mxu1 %v6709_v46  ;;  %v6727_v14 = vld [vmem:[%s9524_s8 + $0x70] sm:$0xff] }
 0xf2e   : > { %7175 = vmatpush3.msra.mxu0 %v3438_v3  ;;  %7176 = vmatprep.mubr.msk.f32.mxu0 %vm8086_vm1, %v8085_v6 }
 0xf2f   : > { %7184 = vmatprep.subr.mxu0 %v8085_v6  ;;  %7223 = vmatprep.subr.mxu1 %v8085_v6 }
 0xf30   : > { %7224 = vmatpush3.msra.mxu1 %v6708_v49 }
 0xf31   : > { %7177 = vmatmul.mubr.msk.f32.vlgmr.msra.gmra.mxu0 %vm1107_vm5, %v3436_v16  ;;  %7225 = vmatprep.subr.mxu1 %v8085_v6  ;;  %v6725_v16 = vld [vmem:[%s9524_s8 + $0x60] sm:$0xff] }
 0xf32   : > { %7185 = vmatpush3.msra.mxu0 %v3612_v17  ;;  %7186 = vmatprep.mubr.msk.f32.mxu0 %vm8086_vm1, %v8085_v6  ;;  %v6724_v17 = vld [vmem:[%s9524_s8 + $0x58] sm:$0xff] }
 0xf33   : > { %7194 = vmatprep.subr.mxu0 %v8085_v6  ;;  %7226 = vmatpush3.msra.mxu1 %v6707_v51  ;;  %v6735_v51 = vld [vmem:[%s9366_s5 + $0x50] sm:$0xff] }
 0xf34   : > { %7241 = vmatprep.subr.mxu1 %v8085_v6 }
 0xf4e   : > { %v3608_v19 = vpop.xlane.xlu1 %3607 }
 0xf4f   : > { %7648 = vrcp.f32 %v3608_v19 }
 0xf52   : > { %v3956_v20 = vpop.xlane.xlu1 %3955  ;;  %v3782_v22 = vpop.xlane.xlu0 %3781 }
 0xf53   : > { %7650 = vrcp.f32 %v3782_v22 }
 0xf54   : > { %7652 = vrcp.f32 %v3956_v20 }
 0xf56   : > { %v4130_v23 = vpop.xlane.xlu1 %4129  ;;  %v3960_v30 = vpop.permute.xlu0 %3959 }
 0xf57   : > { %7654 = vrcp.f32 %v4130_v23  ;;  %v6713_v23 = vld [vmem:[#allocation12 + $0x1] ss:$0 sm:$0xff] }
 0xf5a   : > { %v4134_v33 = vpop.permute.xlu1 %4133 }
 0xf5c   : > { %v7649_v24 = vpop.eup %7648 }
 0xf5d   : > { %v3610_v25 = vmul.f32 %v7649_v24, %v7633_v59 }
 0xf5f   : > { %7187 = vmatmul.mubr.msk.f32.vlgmr.msra.gmra.mxu0 %vm1107_vm5, %v3610_v25  ;;  %v6714_v25 = vld [vmem:[#allocation13 + $0x1] ss:$0 sm:$0xff] }
 0xf60   : > { %7195 = vmatpush3.msra.mxu0 %v3786_v18  ;;  %7196 = vmatprep.mubr.msk.f32.mxu0 %vm8086_vm1, %v8085_v6  ;;  %v7651_v26 = vpop.eup %7650 }
 0xf61   : > { %7204 = vmatprep.subr.mxu0 %v8085_v6  ;;  %v3784_v28 = vmul.f32 %v7651_v26, %v8904_v60  ;;  %v7653_v29 = vpop.eup %7652 }
 0xf62   : > { %v3958_v31 = vmul.f32 %v7653_v29, %v8907_v62  ;;  %v6723_v29 = vld [vmem:[%s9524_s8 + $0x50] sm:$0xff] }
 0xf63   : > { %7197 = vmatmul.mubr.msk.f32.vlgmr.msra.gmra.mxu0 %vm1107_vm5, %v3784_v28 }
 0xf64   : > { %7205 = vmatpush3.msra.mxu0 %v3960_v30  ;;  %7206 = vmatprep.mubr.msk.f32.mxu0 %vm8086_vm1, %v8085_v6  ;;  %v7655_v32 = vpop.eup %7654  ;;  %v6722_v30 = vld [vmem:[%s9524_s8 + $0x48] sm:$0xff] }
 0xf65   : > { %7214 = vmatprep.subr.mxu0 %v8085_v6  ;;  %v4132_v34 = vmul.f32 %v7655_v32, %v8913_v1  ;;  %v6719_v32 = vld [vmem:[#allocation15 + $0x1] ss:$0 sm:$0xff] }
 0xf67   : > { %7207 = vmatmul.mubr.msk.f32.vlgmr.msra.gmra.mxu0 %vm1107_vm5, %v3958_v31  ;;  %v6721_v31 = vld [vmem:[%s9524_s8 + $0x40] sm:$0xff] }
 0xf68   : > { %7215 = vmatpush3.msra.mxu0 %v4134_v33  ;;  %7216 = vmatprep.mubr.msk.f32.mxu0 %vm8086_vm1, %v8085_v6 }
 0xf69   : > { %7230 = vmatprep.subr.mxu0 %v8085_v6 }
 0xf6b   : > { %7217 = vmatmul.mubr.msk.f32.vlgmr.msra.gmra.mxu0 %vm1107_vm5, %v4132_v34 }
 0xf6c   : > { %7238 = vmatprep.mubr.msk.f32.mxu0 %vm8086_vm1, %v8085_v6  ;;  %7231 = vmatpush3.msra.mxu0 %v6718_v11 }
 0xf6d   : > { %7232 = vmatprep.subr.mxu0 %v8085_v6 }
 0xf6e   : > { %7233 = vmatpush3.msra.mxu0 %v6717_v12 }
 0xf6f   : > { %7234 = vmatprep.subr.mxu0 %v8085_v6 }
 0xfe5   : > { %v2991_v35 = vpop.f32.mrf.mxu0 }
 0xfe6   : > { %2995 = vst.msk [vmem:[#allocation3] sm:$0xff] %vm1031_vm4, %v2991_v35 }
 0xfe7   : > { %v7148_v36 = vpop.f32.mrf.mxu0 }
 0xfe9   : > { %v3161_v37 = vpop.f32.mrf.mxu0 }
 0xfea   : > { %3166 = vrot.lane.b32.xlu0 %v3161_v37, %s9544_s30  ;;  %s9549_s30 = smov 24   ;;  %v6729_v37 = vld [vmem:[#allocation16 + $0x1] ss:$0 sm:$0xff] }
 0xfeb   : > { %v7158_v38 = vpop.f32.mrf.mxu0 }
 0xfed   : > { %v3335_v39 = vpop.f32.mrf.mxu0 }
 0xfee   : > { %3340 = vrot.lane.b32.xlu1 %v3335_v39, %s9545_s10  ;;  %s9552_s10 = smov 96  }
 0xfef   : > { %v7168_v40 = vpop.f32.mrf.mxu0 }
 0xff1   : > { %v3509_v41 = vpop.f32.mrf.mxu0 }
 0xff2   : > { %3514 = vrot.lane.b32.xlu0 %v3509_v41, %s9546_s21  ;;  %s9551_s21 = smov 92  }
 0xff3   : > { %v7178_v43 = vpop.f32.mrf.mxu0 }
0x101f   : > { %v3683_v44 = vpop.f32.mrf.mxu0 }
0x1020   : > { %3688 = vrot.lane.b32.xlu1 %v3683_v44, %s9547_s1  ;;  %s9554_s1 = smov 88  }
0x1021   : > { %v7188_v48 = vpop.f32.mrf.mxu0 }
0x1023   : > { %v3857_v50 = vpop.f32.mrf.mxu0 }
0x1024   : > { %3862 = vrot.lane.b32.xlu0 %v3857_v50, %s9548_s0  ;;  %v6736_v50 = vld [vmem:[%s9366_s5 + $0x58] sm:$0xff] }
0x1025   : > { %v7198_v52 = vpop.f32.mrf.mxu0 }
0x1026   : > { %v6734_v52 = vld [vmem:[%s9366_s5 + $0x48] sm:$0xff] }
0x1027   : > { %v4031_v53 = vpop.f32.mrf.mxu0 }
0x1028   : > { %4036 = vrot.lane.b32.xlu1 %v4031_v53, %s9549_s30  ;;  %v6733_v53 = vld [vmem:[%s9366_s5 + $0x40] sm:$0xff] }
0x1029   : > { %v7208_v54 = vpop.f32.mrf.mxu0 }
0x102b   : > { %v4205_v55 = vpop.f32.mrf.mxu0 }
0x102c   : > { %4210 = vrot.lane.b32.xlu0 %v4205_v55, %s9550_s2 }
0x102d   : > { %v7218_v56 = vpop.f32.mrf.mxu0 }
0x105c   : > { %v3167_v57 = vpop.permute.xlu0 %3166 }
0x105d   : > { %3169 = vst.msk [vmem:[#allocation3] sm:$0xff] %vm1369_vm6, %v3167_v57 }
0x1060   : > { %v3341_v21 = vpop.permute.xlu1 %3340 }
0x1061   : > { %3343 = vst.msk [vmem:[#allocation3] sm:$0xff] %vm1544_vm7, %v3341_v21  ;;  %v6731_v21 = vld [vmem:[#allocation18 + $0x1] ss:$0 sm:$0xff] }
0x1064   : > { %v3515_v27 = vpop.permute.xlu0 %3514 }
0x1065   : > { %3517 = vst.msk [vmem:[#allocation3] sm:$0xff] %vm1719_vm8, %v3515_v27 }
0x1092   : > { %v3689_v58 = vpop.permute.xlu1 %3688 }
0x1093   : > { %3691 = vst.msk [vmem:[#allocation3] sm:$0xff] %vm1894_vm9, %v3689_v58  ;;  %v6732_v58 = vld [vmem:[#allocation19 + $0x1] ss:$0 sm:$0xff] }
0x1096   : > { %v3863_v59 = vpop.permute.xlu0 %3862 }
0x1097   : > { %3865 = vst.msk [vmem:[#allocation3] sm:$0xff] %vm2069_vm10, %v3863_v59 }
0x109a   : > { %v4037_v60 = vpop.permute.xlu1 %4036 }
0x109b   : > { %4039 = vst.msk [vmem:[#allocation3] sm:$0xff] %vm2244_vm11, %v4037_v60 }
0x109e   : > { %v4211_v61 = vpop.permute.xlu0 %4210 }
0x109f   : > { %4213 = vst.msk [vmem:[#allocation3] sm:$0xff] %vm2419_vm12, %v4211_v61  ;;  %v6737_v61 = vld [vmem:[#allocation9 + $0x2] ss:$0 sm:$0xff] }
0x10a6   : > { %v4214_v62 = vld [vmem:[#allocation3] sm:$0xff] }
0x10a7   : > { %7228 = vmatmul.mubr.msk.f32.vlgmr.msra.gmra.mxu1 %vm777_vm0, %v4214_v62 }
0x10a8   : > { %7257 = vmatprep.mubr.msk.f32.mxu1 %vm8086_vm1, %v8085_v6  ;;  %7242 = vmatpush3.msra.mxu1 %v6728_v13 }
0x10a9   : > { %7243 = vmatprep.subr.mxu1 %v8085_v6 }
0x10aa   : > { %7244 = vmatpush3.msra.mxu1 %v6727_v14 }
0x10ab   : > { %7245 = vmatprep.subr.mxu1 %v8085_v6 }
0x10ac   : > { %7246 = vmatpush3.msra.mxu1 %v6726_v15 }
0x10ad   : > { %7247 = vmatprep.subr.mxu1 %v8085_v6 }
0x10ae   : > { %7248 = vmatpush3.msra.mxu1 %v6725_v16 }
0x10af   : > { %7249 = vmatprep.subr.mxu1 %v8085_v6 }
0x10b0   : > { %7250 = vmatpush3.msra.mxu1 %v6724_v17 }
0x10b1   : > { %7251 = vmatprep.subr.mxu1 %v8085_v6 }
0x10b2   : > { %7252 = vmatpush3.msra.mxu1 %v6723_v29 }
0x10b3   : > { %7253 = vmatprep.subr.mxu1 %v8085_v6 }
0x10b4   : > { %7254 = vmatpush3.msra.mxu1 %v6722_v30 }
0x10b5   : > { %7255 = vmatprep.subr.mxu1 %v8085_v6 }
0x10b6   : > { %7256 = vmatpush3.msra.mxu1 %v6721_v31 }
0x10b7   : > { %7281 = vmatprep.subr.mxu1 %v8085_v6 }
0x1167   : > { %v4297_v0 = vpop.f32.mrf.mxu1 }
0x1168   : > { %v4298_v1 = vadd.f32 %v6711_v63, %v4297_v0 }
0x1169   : > { %v7229_v2 = vpop.f32.mrf.mxu1 }
0x116a   : > { %v4301_v3 = vadd.f32 %v4298_v1, %v8801_v42  ;;  %v6716_v42 = vld [vmem:[%s9372_s11 + $0x28] sm:$0xff] }
0x116b   : > { %7235 = vmatpush3.msra.mxu0 %v6716_v42 }
0x116c   : > { %v4306_v4 = vsel %vm777_vm0, %v4301_v3, 0.0  ;;  %7236 = vmatprep.subr.mxu0 %v8085_v6 }
0x116d   : > { %4307 = vadd.xlane.f32.xlu1 %v4306_v4  ;;  %7237 = vmatpush3.msra.mxu0 %v6715_v47 }
0x116e   : > { %7260 = vmatprep.subr.mxu0 %v8085_v6 }
0x11f6   : > { %v4308_v5 = vpop.xlane.xlu1 %4307 }
0x11f7   : > { %v4309_v7 = vmul.f32 0.03125, %v4308_v5 }
0x11f9   : > { %v4310_v8 = vsub.f32 %v4301_v3, %v4309_v7 }
0x11fb   : > { %v4311_v9 = vmul.f32 %v4310_v8, %v4310_v8 }
0x11fd   : > { %v4312_v10 = vsel %vm777_vm0, %v4311_v9, 0.0 }
0x11fe   : > { %4313 = vadd.xlane.f32.xlu0 %v4312_v10 }
0x1287   : > { %v4314_v18 = vpop.xlane.xlu0 %4313 }
0x1288   : > { %v4315_v19 = vmul.f32 0.03125, %v4314_v18 }
0x128a   : > { %v4316_v20 = vadd.f32 1e-05, %v4315_v19 }
0x128c   : > { %7656 = vrsqrt.f32 %v4316_v20 }
0x1299   : > { %v7657_v22 = vpop.eup %7656 }
0x129a   : > { %v4318_v24 = vmul.f32 %v7657_v22, %v4310_v8 }
0x129c   : > { %v4325_v26 = vmul.f32 %v6713_v23, %v4318_v24 }
0x129e   : > { %v4332_v28 = vadd.f32 %v6714_v25, %v4325_v26 }
0x12a0   : > { %7239 = vmatmul.mubr.msk.f32.vlgmr.msra.gmra.mxu0 %vm777_vm0, %v4332_v28 }
0x12a1   : > { %7268 = vmatprep.mubr.msk.f32.mxu0 %vm8086_vm1, %v8085_v6  ;;  %7261 = vmatpush3.msra.mxu0 %v6736_v50 }
0x12a2   : > { %7262 = vmatprep.subr.mxu0 %v8085_v6 }
0x12a3   : > { %7263 = vmatpush3.msra.mxu0 %v6735_v51 }
0x12a4   : > { %7264 = vmatprep.subr.mxu0 %v8085_v6 }
0x12a5   : > { %7265 = vmatpush3.msra.mxu0 %v6734_v52 }
0x12a6   : > { %7266 = vmatprep.subr.mxu0 %v8085_v6 }
0x12a7   : > { %7267 = vmatpush3.msra.mxu0 %v6733_v53 }
0x12a8   : > { %7271 = vmatprep.subr.mxu0 %v8085_v6 }
0x1360   : > { %v4415_v33 = vpop.f32.mrf.mxu0 }
0x1361   : > { %v4416_v34 = vadd.f32 %v6719_v32, %v4415_v33 }
0x1362   : > { %v7240_v35 = vpop.f32.mrf.mxu0 }
0x1363   : > { %v4419_v36 = vmax.f32 %v4416_v34, 0.0 }
0x1365   : > { %7258 = vmatmul.mubr.msk.f32.vlgmr.msra.gmra.mxu1 %vm2637_vm13, %v4419_v36 }
0x1366   : > { %7283 = vmatprep.mubr.msk.f32.mxu1 %vm8086_vm1, %v8085_v6 }
0x1425   : > { %v4506_v38 = vpop.f32.mrf.mxu1 }
0x1426   : > { %v4507_v39 = vadd.f32 %v6729_v37, %v4506_v38 }
0x1427   : > { %v7259_v40 = vpop.f32.mrf.mxu1 }
0x1428   : > { %v4510_v41 = vadd.f32 %v4507_v39, %v4332_v28 }
0x142a   : > { %v4515_v43 = vsel %vm777_vm0, %v4510_v41, 0.0 }
0x142b   : > { %4516 = vadd.xlane.f32.xlu0 %v4515_v43 }
0x14b4   : > { %v4517_v44 = vpop.xlane.xlu0 %4516 }
0x14b5   : > { %v4518_v45 = vmul.f32 0.03125, %v4517_v44 }
0x14b7   : > { %v4519_v46 = vsub.f32 %v4510_v41, %v4518_v45 }
0x14b9   : > { %v4520_v48 = vmul.f32 %v4519_v46, %v4519_v46 }
0x14bb   : > { %v4521_v49 = vsel %vm777_vm0, %v4520_v48, 0.0 }
0x14bc   : > { %4522 = vadd.xlane.f32.xlu1 %v4521_v49 }
0x1545   : > { %v4523_v54 = vpop.xlane.xlu1 %4522 }
0x1546   : > { %v4524_v55 = vmul.f32 0.03125, %v4523_v54 }
0x1548   : > { %v4525_v56 = vadd.f32 1e-05, %v4524_v55 }
0x154a   : > { %7658 = vrsqrt.f32 %v4525_v56 }
0x1557   : > { %v7659_v57 = vpop.eup %7658 }
0x1558   : > { %v4527_v27 = vmul.f32 %v7659_v57, %v4519_v46 }
0x155a   : > { %v4534_v59 = vmul.f32 %v6731_v21, %v4527_v27 }
0x155c   : > { %v9066_v60 = vadd.f32 %v6732_v58, %v4534_v59 }
0x155e   : > { %7269 = vmatmul.mubr.msk.f32.vlgmr.msra.gmra.mxu0 %vm777_vm0, %v9066_v60 }
0x155f   : > { %7273 = vmatprep.mubr.msk.f32.mxu0 %vm8086_vm1, %v8085_v6 }
0x161e   : > { %v4624_v62 = vpop.f32.mrf.mxu0 }
0x161f   : > { %v4625_v63 = vadd.f32 %v6737_v61, %v4624_v62 }
0x1620   : > { %v7270_v0 = vpop.f32.mrf.mxu0 }
0x1621   : > { %4628 = vst.msk [vmem:[#allocation2] sm:$0xff] %vm1024_vm3, %v4625_v63 }
0x1628   : > { %v9073_v1 = vld [vmem:[#allocation2] sm:$0xff] }
0x1629   : > { %4803 = vrot.lane.b32.xlu1 %v9073_v1, %s9551_s21  ;;  %4632 = vrot.lane.b32.xlu0 %v9073_v1, %s9552_s10  ;;  %v4798_v2 = vmul.f32 0.5, %v9073_v1  ;;  %s9566_s10 = sld [smem:[#allocation56_spill]] }
0x162d   : > { %4800 = vrot.lane.b32.xlu1 %v4798_v2, %s9553_s25  ;;  %4977 = vrot.lane.b32.xlu0 %v9073_v1, %s9554_s1 }
0x1631   : > { %4974 = vrot.lane.b32.xlu1 %v4798_v2, %s9525_s9  ;;  %5151 = vrot.lane.b32.xlu0 %v9073_v1, %s9526_s23  ;;  %s9559_s23 = smov 20  }
0x1635   : > { %5148 = vrot.lane.b32.xlu1 %v4798_v2, %s9527_s13  ;;  %5325 = vrot.lane.b32.xlu0 %v9073_v1, %s9528_s26  ;;  %s9560_s13 = smov 24   ;;  %s9561_s26 = smov 28  }
0x1639   : > { %5322 = vrot.lane.b32.xlu1 %v4798_v2, %s9529_s18  ;;  %5499 = vrot.lane.b32.xlu0 %v9073_v1, %s9530_s22 }
0x163d   : > { %5496 = vrot.lane.b32.xlu1 %v4798_v2, %s9531_s27  ;;  %5673 = vrot.lane.b32.xlu0 %v9073_v1, %s9532_s6  ;;  %s9565_s6 = sld [smem:[#allocation55_spill]] }
0x1641   : > { %5670 = vrot.lane.b32.xlu1 %v4798_v2, %s9533_s24  ;;  %5847 = vrot.lane.b32.xlu0 %v9073_v1, %s9534_s15 }
0x1645   : > { %5844 = vrot.lane.b32.xlu1 %v4798_v2, %s9535_s19  ;;  %4720 = vrot.lane.b32.xlu0 %v9073_v1, %s9536_s14 }
0x1649   : > { %4890 = vrot.lane.b32.xlu1 %v9073_v1, %s9537_s4  ;;  %s9555_s4 = smov 4  }
0x169b   : > { %v4804_v3 = vpop.permute.xlu1 %4803  ;;  %v4633_v4 = vpop.permute.xlu0 %4632 }
0x169c   : > { %7272 = vmatpush3.xpose.msk.msra.mxu0 %vm1031_vm4, %v4633_v4  ;;  %7282 = vmatpush3.xpose.msk.msra.mxu1 %vm1031_vm4, %v4804_v3 }
0x169d   : > { %7291 = vmatprep.subr.mxu1 %v8085_v6  ;;  %7276 = vmatprep.subr.mxu0 %v8085_v6 }
0x169f   : > { %v4801_v5 = vpop.permute.xlu1 %4800  ;;  %v4978_v7 = vpop.permute.xlu0 %4977  ;;  %7274 = vmatmul.mubr.msk.f32.vlgmr.msra.gmra.mxu0 %vm1031_vm4, %v4798_v2 }
0x16a0   : > { %7284 = vmatmul.mubr.msk.f32.vlgmr.msra.gmra.mxu1 %vm1031_vm4, %v4801_v5  ;;  %7278 = vmatprep.mubr.msk.f32.mxu0 %vm8086_vm1, %v8085_v6 }
0x16a1   : > { %7292 = vmatpush3.xpose.msk.msra.mxu1 %vm1031_vm4, %v4978_v7  ;;  %7293 = vmatprep.mubr.msk.f32.mxu1 %vm8086_vm1, %v8085_v6 }
0x16a2   : > { %7301 = vmatprep.subr.mxu1 %v8085_v6 }
0x16a3   : > { %v4975_v8 = vpop.permute.xlu1 %4974  ;;  %v5152_v9 = vpop.permute.xlu0 %5151 }
0x16a4   : > { %7294 = vmatmul.mubr.msk.f32.vlgmr.msra.gmra.mxu1 %vm1031_vm4, %v4975_v8 }
0x16a5   : > { %7302 = vmatpush3.xpose.msk.msra.mxu1 %vm1031_vm4, %v5152_v9  ;;  %7303 = vmatprep.mubr.msk.f32.mxu1 %vm8086_vm1, %v8085_v6 }
0x16a6   : > { %7311 = vmatprep.subr.mxu1 %v8085_v6 }
0x16a7   : > { %v5149_v10 = vpop.permute.xlu1 %5148  ;;  %v5326_v11 = vpop.permute.xlu0 %5325 }
0x16a8   : > { %7304 = vmatmul.mubr.msk.f32.vlgmr.msra.gmra.mxu1 %vm1031_vm4, %v5149_v10 }
0x16a9   : > { %7312 = vmatpush3.xpose.msk.msra.mxu1 %vm1031_vm4, %v5326_v11  ;;  %7313 = vmatprep.mubr.msk.f32.mxu1 %vm8086_vm1, %v8085_v6 }
0x16aa   : > { %7321 = vmatprep.subr.mxu1 %v8085_v6 }
0x16ab   : > { %v5323_v12 = vpop.permute.xlu1 %5322  ;;  %v5500_v42 = vpop.permute.xlu0 %5499 }
0x16ac   : > { %7314 = vmatmul.mubr.msk.f32.vlgmr.msra.gmra.mxu1 %vm1031_vm4, %v5323_v12 }
0x16ad   : > { %7322 = vmatpush3.xpose.msk.msra.mxu1 %vm1031_vm4, %v5500_v42  ;;  %7323 = vmatprep.mubr.msk.f32.mxu1 %vm8086_vm1, %v8085_v6 }
0x16ae   : > { %7331 = vmatprep.subr.mxu1 %v8085_v6 }
0x16af   : > { %v5497_v47 = vpop.permute.xlu1 %5496  ;;  %v5674_v13 = vpop.permute.xlu0 %5673 }
0x16b0   : > { %7324 = vmatmul.mubr.msk.f32.vlgmr.msra.gmra.mxu1 %vm1031_vm4, %v5497_v47 }
0x16b1   : > { %7332 = vmatpush3.xpose.msk.msra.mxu1 %vm1031_vm4, %v5674_v13  ;;  %7333 = vmatprep.mubr.msk.f32.mxu1 %vm8086_vm1, %v8085_v6 }
0x16b2   : > { %7341 = vmatprep.subr.mxu1 %v8085_v6 }
0x16b3   : > { %v5671_v14 = vpop.permute.xlu1 %5670  ;;  %v5848_v15 = vpop.permute.xlu0 %5847 }
0x16b4   : > { %7334 = vmatmul.mubr.msk.f32.vlgmr.msra.gmra.mxu1 %vm1031_vm4, %v5671_v14 }
0x16b5   : > { %7342 = vmatpush3.xpose.msk.msra.mxu1 %vm1031_vm4, %v5848_v15  ;;  %7343 = vmatprep.mubr.msk.f32.mxu1 %vm8086_vm1, %v8085_v6 }
0x16b6   : > { %7351 = vmatprep.subr.mxu1 %v8085_v6 }
0x16b7   : > { %v5845_v16 = vpop.permute.xlu1 %5844  ;;  %v4721_v17 = vpop.permute.xlu0 %4720 }
0x16b8   : > { %7277 = vmatpush3.msra.mxu0 %v4721_v17  ;;  %7344 = vmatmul.mubr.msk.f32.vlgmr.msra.gmra.mxu1 %vm1031_vm4, %v5845_v16 }
0x16b9   : > { %7286 = vmatprep.subr.mxu0 %v8085_v6  ;;  %7359 = vmatprep.mubr.msk.f32.mxu1 %vm8086_vm1, %v8085_v6 }
0x16bb   : > { %v9156_v45 = vpop.permute.xlu1 %4890 }
0x175f   : > { %v4705_v18 = vpop.f32.mrf.mxu0 }
0x1760   : > { %v4875_v19 = vpop.f32.mrf.mxu1  ;;  %v4709_v20 = vsel %vm1107_vm5, %v4705_v18, -inf }
0x1761   : > { %4710 = vmax.xlane.f32.xlu0 %v4709_v20  ;;  %v7275_v22 = vpop.f32.mrf.mxu0  ;;  %v4879_v23 = vsel %vm1107_vm5, %v4875_v19, -inf }
0x1762   : > { %4880 = vmax.xlane.f32.xlu1 %v4879_v23  ;;  %v7285_v24 = vpop.f32.mrf.mxu1 }
0x1764   : > { %v5049_v25 = vpop.f32.mrf.mxu1 }
0x1765   : > { %v5053_v26 = vsel %vm1107_vm5, %v5049_v25, -inf }
0x1766   : > { %5054 = vmax.xlane.f32.xlu0 %v5053_v26  ;;  %v7295_v28 = vpop.f32.mrf.mxu1 }
0x1768   : > { %v5223_v29 = vpop.f32.mrf.mxu1 }
0x1769   : > { %v5227_v30 = vsel %vm1107_vm5, %v5223_v29, -inf }
0x176a   : > { %5228 = vmax.xlane.f32.xlu0 %v5227_v30  ;;  %v7305_v31 = vpop.f32.mrf.mxu1 }
0x176c   : > { %v5397_v32 = vpop.f32.mrf.mxu1 }
0x176d   : > { %v5401_v33 = vsel %vm1107_vm5, %v5397_v32, -inf }
0x176e   : > { %5402 = vmax.xlane.f32.xlu1 %v5401_v33  ;;  %v7315_v34 = vpop.f32.mrf.mxu1 }
0x1770   : > { %v5571_v35 = vpop.f32.mrf.mxu1 }
0x1771   : > { %v5575_v36 = vsel %vm1107_vm5, %v5571_v35, -inf }
0x1772   : > { %5576 = vmax.xlane.f32.xlu0 %v5575_v36  ;;  %v7325_v37 = vpop.f32.mrf.mxu1 }
0x1774   : > { %v5745_v38 = vpop.f32.mrf.mxu1 }
0x1775   : > { %v5749_v39 = vsel %vm1107_vm5, %v5745_v38, -inf }
0x1776   : > { %5750 = vmax.xlane.f32.xlu1 %v5749_v39  ;;  %v7335_v40 = vpop.f32.mrf.mxu1 }
0x1778   : > { %v5919_v41 = vpop.f32.mrf.mxu1 }
0x1779   : > { %v5923_v43 = vsel %vm1107_vm5, %v5919_v41, -inf }
0x177a   : > { %5924 = vmax.xlane.f32.xlu0 %v5923_v43  ;;  %v7345_v44 = vpop.f32.mrf.mxu1 }
0x1787   : > { %5238 = vrot.lane.b32.xlu1 %v9073_v1, %s9538_s12 }
0x1790   : > { %5064 = vrot.lane.b32.xlu0 %v9073_v1, %s9539_s16  ;;  %s9556_s16 = smov 8  }
0x17ea   : > { %v4711_v46 = vpop.xlane.xlu0 %4710 }
0x17eb   : > { %v4712_v48 = vsub.f32 %v4705_v18, %v4711_v46  ;;  %v4881_v49 = vpop.xlane.xlu1 %4880 }
0x17ec   : > { %v4882_v50 = vsub.f32 %v4875_v19, %v4881_v49 }
0x17ed   : > { %v4713_v51 = vmul.f32 1.442695, %v4712_v48 }
0x17ee   : > { %v4883_v52 = vmul.f32 1.442695, %v4882_v50 }
0x17ef   : > { %7660 = vpow2.f32 %v4713_v51  ;;  %v5055_v53 = vpop.xlane.xlu0 %5054 }
0x17f0   : > { %7662 = vpow2.f32 %v4883_v52  ;;  %v5056_v54 = vsub.f32 %v5049_v25, %v5055_v53 }
0x17f2   : > { %v5057_v55 = vmul.f32 1.442695, %v5056_v54 }
0x17f3   : > { %v5229_v56 = vpop.xlane.xlu0 %5228 }
0x17f4   : > { %7664 = vpow2.f32 %v5057_v55  ;;  %v5230_v57 = vsub.f32 %v5223_v29, %v5229_v56 }
0x17f6   : > { %v5231_v21 = vmul.f32 1.442695, %v5230_v57 }
0x17f7   : > { %v5403_v3 = vpop.xlane.xlu1 %5402 }
0x17f8   : > { %7666 = vpow2.f32 %v5231_v21  ;;  %v5404_v4 = vsub.f32 %v5397_v32, %v5403_v3  ;;  %v6764_v3 = vld [vmem:[%s9368_s7 + $0x48] sm:$0xff] }
0x17fa   : > { %v5405_v9 = vmul.f32 1.442695, %v5404_v4 }
0x17fb   : > { %v5577_v5 = vpop.xlane.xlu0 %5576 }
0x17fc   : > { %v7661_v27 = vpop.eup %7660  ;;  %v5578_v8 = vsub.f32 %v5571_v35, %v5577_v5  ;;  %7668 = vpow2.f32 %v5405_v9  ;;  %v6763_v5 = vld [vmem:[%s9368_s7 + $0x40] sm:$0xff] }
0x17fd   : > { %v7663_v58 = vpop.eup %7662  ;;  %v4715_v59 = vsel %vm1107_vm5, %v7661_v27, 0.0 }
0x17fe   : > { %4716 = vadd.xlane.f32.xlu1 %v4715_v59  ;;  %v4885_v61 = vsel %vm1107_vm5, %v7663_v58, 0.0  ;;  %v5579_v12 = vmul.f32 1.442695, %v5578_v8 }
0x17ff   : > { %4886 = vadd.xlane.f32.xlu0 %v4885_v61  ;;  %v5751_v7 = vpop.xlane.xlu1 %5750 }
0x1800   : > { %v5752_v10 = vsub.f32 %v5745_v38, %v5751_v7  ;;  %7670 = vpow2.f32 %v5579_v12 }
0x1801   : > { %v7665_v62 = vpop.eup %7664 }
0x1802   : > { %v5059_v63 = vsel %vm1107_vm5, %v7665_v62, 0.0  ;;  %v5753_v42 = vmul.f32 1.442695, %v5752_v10 }
0x1803   : > { %5060 = vadd.xlane.f32.xlu1 %v5059_v63  ;;  %v5925_v11 = vpop.xlane.xlu0 %5924  ;;  %v5239_v23 = vpop.permute.xlu1 %5238  ;;  %v6766_v63 = vld [vmem:[%s9368_s7 + $0x58] sm:$0xff] }
0x1804   : > { %v5926_v47 = vsub.f32 %v5919_v41, %v5925_v11  ;;  %7672 = vpow2.f32 %v5753_v42  ;;  %7352 = vmatpush3.msra.mxu1 %v6766_v63 }
0x1805   : > { %v9161_v0 = vpop.eup %7666  ;;  %7353 = vmatprep.subr.mxu1 %v8085_v6 }
0x1806   : > { %v5233_v2 = vsel %vm1107_vm5, %v9161_v0, 0.0  ;;  %v5927_v13 = vmul.f32 1.442695, %v5926_v47 }
0x1807   : > { %5234 = vadd.xlane.f32.xlu0 %v5233_v2  ;;  %v5065_v24 = vpop.permute.xlu0 %5064 }
0x1808   : > { %7674 = vpow2.f32 %v5927_v13 }
0x1809   : > { %v7669_v14 = vpop.eup %7668 }
0x180a   : > { %v5407_v16 = vsel %vm1107_vm5, %v7669_v14, 0.0 }
0x180d   : > { %v9169_v15 = vpop.eup %7670 }
0x180e   : > { %v5581_v19 = vsel %vm1107_vm5, %v9169_v15, 0.0 }
0x1811   : > { %v9172_v17 = vpop.eup %7672 }
0x1812   : > { %v5755_v18 = vsel %vm1107_vm5, %v9172_v17, 0.0 }
0x1814   : > { %5586 = vrot.lane.b32.xlu1 %v9073_v1, %s9540_s17  ;;  %s9557_s17 = smov 12  }
0x1815   : > { %v9178_v20 = vpop.eup %7674 }
0x1816   : > { %v5929_v22 = vsel %vm1107_vm5, %v9178_v20, 0.0 }
0x181d   : > { %5412 = vrot.lane.b32.xlu0 %v9073_v1, %s9541_s29 }
0x1838   : > { %5408 = vadd.xlane.f32.xlu1 %v5407_v16 }
0x183c   : > { %5756 = vadd.xlane.f32.xlu1 %v5755_v18  ;;  %5582 = vadd.xlane.f32.xlu0 %v5581_v19  ;;  %v6767_v18 = vld [vmem:[#allocation10 + $0x2] ss:$0 sm:$0xff] }
0x1840   : > { %5930 = vadd.xlane.f32.xlu1 %v5929_v22 }
0x1851   : > { %5934 = vrot.lane.b32.xlu1 %v9073_v1, %s9542_s3 }
0x1852   : > { %5760 = vrot.lane.b32.xlu0 %v9073_v1, %s9543_s20  ;;  %s9558_s20 = smov 16  }
0x1887   : > { %v4717_v25 = vpop.xlane.xlu1 %4716 }
0x1888   : > { %7676 = vrcp.f32 %v4717_v25  ;;  %v4887_v26 = vpop.xlane.xlu0 %4886 }
0x1889   : > { %7678 = vrcp.f32 %v4887_v26 }
0x188c   : > { %v5061_v28 = vpop.xlane.xlu1 %5060 }
0x188d   : > { %7680 = vrcp.f32 %v5061_v28 }
0x1890   : > { %v5235_v29 = vpop.xlane.xlu0 %5234  ;;  %v5587_v38 = vpop.permute.xlu1 %5586 }
0x1891   : > { %7682 = vrcp.f32 %v5235_v29 }
0x1894   : > { %v5413_v37 = vpop.permute.xlu0 %5412 }
0x1895   : > { %v7677_v30 = vpop.eup %7676 }
0x1896   : > { %v4719_v31 = vmul.f32 %v7677_v30, %v7661_v27  ;;  %v7679_v32 = vpop.eup %7678 }
0x1897   : > { %v4889_v1 = vmul.f32 %v7679_v32, %v7663_v58  ;;  %v6773_v32 = vld [vmem:[%s9372_s11 + $0x50] sm:$0xff] }
0x1898   : > { %7279 = vmatmul.mubr.msk.f32.vlgmr.msra.gmra.mxu0 %vm1107_vm5, %v4719_v31  ;;  %v6774_v31 = vld [vmem:[%s9372_s11 + $0x58] sm:$0xff] }
0x1899   : > { %7287 = vmatpush3.msra.mxu0 %v9156_v45  ;;  %7288 = vmatprep.mubr.msk.f32.mxu0 %vm8086_vm1, %v8085_v6 }
0x189a   : > { %7296 = vmatprep.subr.mxu0 %v8085_v6  ;;  %v7681_v33 = vpop.eup %7680 }
0x189b   : > { %v5063_v34 = vmul.f32 %v7681_v33, %v7665_v62  ;;  %v6784_v33 = vld [vmem:[%s9524_s8 + $0xb8] sm:$0xff] }
0x189c   : > { %7289 = vmatmul.mubr.msk.f32.vlgmr.msra.gmra.mxu0 %vm1107_vm5, %v4889_v1  ;;  %v6771_v1 = vld [vmem:[%s9372_s11 + $0x40] sm:$0xff] }
0x189d   : > { %7297 = vmatpush3.msra.mxu0 %v5065_v24  ;;  %7298 = vmatprep.mubr.msk.f32.mxu0 %vm8086_vm1, %v8085_v6 }
0x189e   : > { %7306 = vmatprep.subr.mxu0 %v8085_v6  ;;  %v7683_v35 = vpop.eup %7682 }
0x189f   : > { %v5237_v36 = vmul.f32 %v7683_v35, %v9161_v0  ;;  %v6765_v0 = vld [vmem:[%s9368_s7 + $0x50] sm:$0xff]  ;;  %v6782_v35 = vld [vmem:[%s9524_s8 + $0xa8] sm:$0xff] }
0x18a0   : > { %7299 = vmatmul.mubr.msk.f32.vlgmr.msra.gmra.mxu0 %vm1107_vm5, %v5063_v34  ;;  %7354 = vmatpush3.msra.mxu1 %v6765_v0  ;;  %v6783_v34 = vld [vmem:[%s9524_s8 + $0xb0] sm:$0xff] }
0x18a1   : > { %7307 = vmatpush3.msra.mxu0 %v5239_v23  ;;  %7308 = vmatprep.mubr.msk.f32.mxu0 %vm8086_vm1, %v8085_v6 }
0x18a2   : > { %7316 = vmatprep.subr.mxu0 %v8085_v6  ;;  %7355 = vmatprep.subr.mxu1 %v8085_v6 }
0x18a3   : > { %7356 = vmatpush3.msra.mxu1 %v6764_v3 }
0x18a4   : > { %7309 = vmatmul.mubr.msk.f32.vlgmr.msra.gmra.mxu0 %vm1107_vm5, %v5237_v36  ;;  %7357 = vmatprep.subr.mxu1 %v8085_v6  ;;  %v6781_v36 = vld [vmem:[%s9524_s8 + $0xa0] sm:$0xff] }
0x18a5   : > { %7317 = vmatpush3.msra.mxu0 %v5413_v37  ;;  %7318 = vmatprep.mubr.msk.f32.mxu0 %vm8086_vm1, %v8085_v6  ;;  %v6780_v37 = vld [vmem:[%s9524_s8 + $0x98] sm:$0xff] }
0x18a6   : > { %7326 = vmatprep.subr.mxu0 %v8085_v6  ;;  %7358 = vmatpush3.msra.mxu1 %v6763_v5  ;;  %v6345_v5 = vld [vmem:[#allocation21 + $0x10] sm:$0xff] }
0x18a7   : > { %7373 = vmatprep.subr.mxu1 %v8085_v6 }
0x18c1   : > { %v5409_v39 = vpop.xlane.xlu1 %5408 }
0x18c2   : > { %7684 = vrcp.f32 %v5409_v39 }
0x18c5   : > { %v5757_v40 = vpop.xlane.xlu1 %5756  ;;  %v5583_v41 = vpop.xlane.xlu0 %5582 }
0x18c6   : > { %7686 = vrcp.f32 %v5583_v41 }
0x18c7   : > { %7688 = vrcp.f32 %v5757_v40 }
0x18c9   : > { %v5931_v43 = vpop.xlane.xlu1 %5930  ;;  %v5761_v50 = vpop.permute.xlu0 %5760 }
0x18ca   : > { %7690 = vrcp.f32 %v5931_v43  ;;  %v6769_v43 = vld [vmem:[#allocation12 + $0x2] ss:$0 sm:$0xff] }
0x18cd   : > { %v5935_v53 = vpop.permute.xlu1 %5934 }
0x18cf   : > { %v7685_v44 = vpop.eup %7684 }
0x18d0   : > { %v5411_v45 = vmul.f32 %v7685_v44, %v7669_v14 }
0x18d2   : > { %7319 = vmatmul.mubr.msk.f32.vlgmr.msra.gmra.mxu0 %vm1107_vm5, %v5411_v45  ;;  %v6770_v45 = vld [vmem:[#allocation13 + $0x2] ss:$0 sm:$0xff] }
0x18d3   : > { %7327 = vmatpush3.msra.mxu0 %v5587_v38  ;;  %7328 = vmatprep.mubr.msk.f32.mxu0 %vm8086_vm1, %v8085_v6  ;;  %v7687_v46 = vpop.eup %7686 }
0x18d4   : > { %7336 = vmatprep.subr.mxu0 %v8085_v6  ;;  %v5585_v48 = vmul.f32 %v7687_v46, %v9169_v15  ;;  %v7689_v49 = vpop.eup %7688 }
0x18d5   : > { %v5759_v51 = vmul.f32 %v7689_v49, %v9172_v17  ;;  %v6779_v49 = vld [vmem:[%s9524_s8 + $0x90] sm:$0xff] }
0x18d6   : > { %7329 = vmatmul.mubr.msk.f32.vlgmr.msra.gmra.mxu0 %vm1107_vm5, %v5585_v48 }
0x18d7   : > { %7337 = vmatpush3.msra.mxu0 %v5761_v50  ;;  %7338 = vmatprep.mubr.msk.f32.mxu0 %vm8086_vm1, %v8085_v6  ;;  %v7691_v52 = vpop.eup %7690  ;;  %v6778_v50 = vld [vmem:[%s9524_s8 + $0x88] sm:$0xff] }
0x18d8   : > { %7346 = vmatprep.subr.mxu0 %v8085_v6  ;;  %v5933_v54 = vmul.f32 %v7691_v52, %v9178_v20  ;;  %v6775_v52 = vld [vmem:[#allocation15 + $0x2] ss:$0 sm:$0xff] }
0x18da   : > { %7339 = vmatmul.mubr.msk.f32.vlgmr.msra.gmra.mxu0 %vm1107_vm5, %v5759_v51  ;;  %v6777_v51 = vld [vmem:[%s9524_s8 + $0x80] sm:$0xff] }
0x18db   : > { %7347 = vmatpush3.msra.mxu0 %v5935_v53  ;;  %7348 = vmatprep.mubr.msk.f32.mxu0 %vm8086_vm1, %v8085_v6 }
0x18dc   : > { %7362 = vmatprep.subr.mxu0 %v8085_v6 }
0x18de   : > { %7349 = vmatmul.mubr.msk.f32.vlgmr.msra.gmra.mxu0 %vm1107_vm5, %v5933_v54 }
0x18df   : > { %7370 = vmatprep.mubr.msk.f32.mxu0 %vm8086_vm1, %v8085_v6  ;;  %7363 = vmatpush3.msra.mxu0 %v6774_v31 }
0x18e0   : > { %7364 = vmatprep.subr.mxu0 %v8085_v6 }
0x18e1   : > { %7365 = vmatpush3.msra.mxu0 %v6773_v32 }
0x18e2   : > { %7366 = vmatprep.subr.mxu0 %v8085_v6 }
0x1958   : > { %v4792_v55 = vpop.f32.mrf.mxu0 }
0x1959   : > { %4796 = vst.msk [vmem:[#allocation3] sm:$0xff] %vm1031_vm4, %v4792_v55 }
0x195a   : > { %v7280_v56 = vpop.f32.mrf.mxu0 }
0x195c   : > { %v4962_v57 = vpop.f32.mrf.mxu0 }
0x195d   : > { %4967 = vrot.lane.b32.xlu0 %v4962_v57, %s9555_s4  ;;  %v6785_v57 = vld [vmem:[#allocation16 + $0x2] ss:$0 sm:$0xff] }
0x195e   : > { %v7290_v21 = vpop.f32.mrf.mxu0 }
0x1960   : > { %v5136_v27 = vpop.f32.mrf.mxu0 }
0x1961   : > { %5141 = vrot.lane.b32.xlu1 %v5136_v27, %s9556_s16  ;;  %s8118_s16 = smov [#allocation22]  }
0x1962   : > { %v7300_v58 = vpop.f32.mrf.mxu0 }
0x1964   : > { %v5310_v59 = vpop.f32.mrf.mxu0 }
0x1965   : > { %5315 = vrot.lane.b32.xlu0 %v5310_v59, %s9557_s17  ;;  %s7988_s17 = sshll.u32 %s8118_s16, 4  ;;  %s7989_s17 = int_to_ptr.vmem [resolvable:$false] %s7988_s17 }
0x1966   : > { %v7310_v61 = vpop.f32.mrf.mxu0 }
0x1992   : > { %v5484_v62 = vpop.f32.mrf.mxu0 }
0x1993   : > { %5489 = vrot.lane.b32.xlu1 %v5484_v62, %s9558_s20  ;;  %s7990_s20 = scalar_lea.vmem %s7989_s17, 256 }
0x1994   : > { %v7320_v2 = vpop.f32.mrf.mxu0 }
0x1996   : > { %v5658_v4 = vpop.f32.mrf.mxu0 }
0x1997   : > { %5663 = vrot.lane.b32.xlu0 %v5658_v4, %s9559_s23  ;;  %v6346_v4 = vld [vmem:[#allocation21 + $0x18] sm:$0xff]  ;;  %s9562_s23 = sld [smem:[#allocation39_spill]] }
0x1998   : > { %v7330_v7 = vpop.f32.mrf.mxu0 }
0x1999   : > { %v6344_v7 = vld [vmem:[#allocation21 + $0x8] sm:$0xff] }
0x199a   : > { %v5832_v8 = vpop.f32.mrf.mxu0 }
0x199b   : > { %5837 = vrot.lane.b32.xlu1 %v5832_v8, %s9560_s13  ;;  %v6343_v8 = vld [vmem:[#allocation21] sm:$0xff]  ;;  %s9563_s13 = sld [smem:[#allocation34_spill]] }
0x199c   : > { %v7340_v9 = vpop.f32.mrf.mxu0 }
0x199d   : > { %s6636_s18 = sshll.u32 %s9562_s23, 3  ;;  %s6430_s1 = scalar_lea.sflag [#allocation6], %s9562_s23 }
0x199e   : > { %v6006_v10 = vpop.f32.mrf.mxu0  ;;  %s763_s0 = scalar_lea.vmem [#allocation22], %s6636_s18 }
0x199f   : > { %6011 = vrot.lane.b32.xlu0 %v6006_v10, %s9561_s26  ;;  %s9564_s26 = sld [smem:[#allocation37_spill]]  ;;  %s6443_s30 = sshll.u32 %s763_s0, 4  ;;  %s6444_s30 = int_to_ptr.vmem [resolvable:$true] %s6443_s30 }
0x19a0   : > { %v7350_v11 = vpop.f32.mrf.mxu0  ;;  %s7984_s4 = scalar_lea.vmem %s6444_s30, 128  ;;  %p7991_p4 = scmp.lt.s32.totalorder %s6444_s30, %s7989_s17 }
0x19a1   : > { %s6792_s2 = sshll.u32 %s9563_s13, 7  ;;  %p7985_p2 = scmp.ne.s32.totalorder %s6444_s30, %s7984_s4 }
0x19a2   : > { %s9324_s25 = scalar_lea.hbm %s9566_s10, %s6792_s2  ;;  %p7992_p6 = scmp.lt.s32.totalorder %s7990_s20, %s7984_s4 }
0x19a4   : > { %p7993_p13 = por %p7992_p6, %p7991_p4 }
0x19a5   : > { %p9567_p8 = scmp.ne.s32.totalorder %s9564_s26, 0 }
0x19a7   : > { %p7986_p1 = pnand %p7985_p2, %p9567_p8 }
0x19a9   : > { %p7987_p3 = pneg %p7986_p1 }
0x19ab   : > { %p7994_p0 = pnand %p7993_p13, %p7987_p3 }
0x19cf   : > { %v4968_v12 = vpop.permute.xlu0 %4967 }
0x19d0   : > { %4970 = vst.msk [vmem:[#allocation3] sm:$0xff] %vm1369_vm6, %v4968_v12 }
0x19d3   : > { %v5142_v42 = vpop.permute.xlu1 %5141 }
0x19d4   : > { %5144 = vst.msk [vmem:[#allocation3] sm:$0xff] %vm1544_vm7, %v5142_v42  ;;  %v6787_v42 = vld [vmem:[#allocation18 + $0x2] ss:$0 sm:$0xff] }
0x19d7   : > { %v5316_v47 = vpop.permute.xlu0 %5315 }
0x19d8   : > { %5318 = vst.msk [vmem:[#allocation3] sm:$0xff] %vm1719_vm8, %v5316_v47 }
0x1a05   : > { %v5490_v13 = vpop.permute.xlu1 %5489 }
0x1a06   : > { %5492 = vst.msk [vmem:[#allocation3] sm:$0xff] %vm1894_vm9, %v5490_v13  ;;  %v6788_v13 = vld [vmem:[#allocation19 + $0x2] ss:$0 sm:$0xff] }
0x1a09   : > { %v5664_v14 = vpop.permute.xlu0 %5663 }
0x1a0a   : > { %5666 = vst.msk [vmem:[#allocation3] sm:$0xff] %vm2069_vm10, %v5664_v14 }
0x1a0d   : > { %v5838_v15 = vpop.permute.xlu1 %5837 }
0x1a0e   : > { %5840 = vst.msk [vmem:[#allocation3] sm:$0xff] %vm2244_vm11, %v5838_v15 }
0x1a11   : > { %v6012_v16 = vpop.permute.xlu0 %6011 }
0x1a12   : > { %6014 = vst.msk [vmem:[#allocation3] sm:$0xff] %vm2419_vm12, %v6012_v16 }
0x1a19   : > { %v6015_v17 = vld [vmem:[#allocation3] sm:$0xff] }
0x1a1a   : > { %7360 = vmatmul.mubr.msk.f32.vlgmr.msra.gmra.mxu1 %vm777_vm0, %v6015_v17 }
0x1a1b   : > { %7389 = vmatprep.mubr.msk.f32.mxu1 %vm8086_vm1, %v8085_v6  ;;  %7374 = vmatpush3.msra.mxu1 %v6784_v33 }
0x1a1c   : > { %7375 = vmatprep.subr.mxu1 %v8085_v6 }
0x1a1d   : > { %7376 = vmatpush3.msra.mxu1 %v6783_v34 }
0x1a1e   : > { %7377 = vmatprep.subr.mxu1 %v8085_v6 }
0x1a1f   : > { %7378 = vmatpush3.msra.mxu1 %v6782_v35 }
0x1a20   : > { %7379 = vmatprep.subr.mxu1 %v8085_v6 }
0x1a21   : > { %7380 = vmatpush3.msra.mxu1 %v6781_v36 }
0x1a22   : > { %7381 = vmatprep.subr.mxu1 %v8085_v6 }
0x1a23   : > { %7382 = vmatpush3.msra.mxu1 %v6780_v37 }
0x1a24   : > { %7383 = vmatprep.subr.mxu1 %v8085_v6 }
0x1a25   : > { %7384 = vmatpush3.msra.mxu1 %v6779_v49 }
0x1a26   : > { %7385 = vmatprep.subr.mxu1 %v8085_v6 }
0x1a27   : > { %7386 = vmatpush3.msra.mxu1 %v6778_v50 }
0x1a28   : > { %7387 = vmatprep.subr.mxu1 %v8085_v6 }
0x1a29   : > { %7388 = vmatpush3.msra.mxu1 %v6777_v51 }
0x1ada   : > { %v6098_v19 = vpop.f32.mrf.mxu1 }
0x1adb   : > { %v6099_v20 = vadd.f32 %v6767_v18, %v6098_v19 }
0x1adc   : > { %v7361_v22 = vpop.f32.mrf.mxu1 }
0x1add   : > { %v6102_v23 = vadd.f32 %v6099_v20, %v9066_v60  ;;  %v6772_v60 = vld [vmem:[%s9372_s11 + $0x48] sm:$0xff] }
0x1ade   : > { %7367 = vmatpush3.msra.mxu0 %v6772_v60 }
0x1adf   : > { %v6107_v24 = vsel %vm777_vm0, %v6102_v23, 0.0  ;;  %7368 = vmatprep.subr.mxu0 %v8085_v6 }
0x1ae0   : > { %6108 = vadd.xlane.f32.xlu1 %v6107_v24  ;;  %7369 = vmatpush3.msra.mxu0 %v6771_v1 }
0x1ae1   : > { %7392 = vmatprep.subr.mxu0 %v8085_v6 }
0x1b69   : > { %v6109_v25 = vpop.xlane.xlu1 %6108 }
0x1b6a   : > { %v6110_v26 = vmul.f32 0.03125, %v6109_v25 }
0x1b6c   : > { %v6111_v28 = vsub.f32 %v6102_v23, %v6110_v26 }
0x1b6e   : > { %v6112_v29 = vmul.f32 %v6111_v28, %v6111_v28 }
0x1b70   : > { %v6113_v30 = vsel %vm777_vm0, %v6112_v29, 0.0 }
0x1b71   : > { %6114 = vadd.xlane.f32.xlu0 %v6113_v30 }
0x1bfa   : > { %v6115_v38 = vpop.xlane.xlu0 %6114 }
0x1bfb   : > { %v6116_v39 = vmul.f32 0.03125, %v6115_v38 }
0x1bfd   : > { %v6117_v40 = vadd.f32 1e-05, %v6116_v39 }
0x1bff   : > { %7692 = vrsqrt.f32 %v6117_v40 }
0x1c0c   : > { %v7693_v41 = vpop.eup %7692 }
0x1c0d   : > { %v6119_v44 = vmul.f32 %v7693_v41, %v6111_v28 }
0x1c0f   : > { %v6126_v46 = vmul.f32 %v6769_v43, %v6119_v44 }
0x1c11   : > { %v6133_v48 = vadd.f32 %v6770_v45, %v6126_v46 }
0x1c13   : > { %7371 = vmatmul.mubr.msk.f32.vlgmr.msra.gmra.mxu0 %vm777_vm0, %v6133_v48 }
0x1c14   : > { %7400 = vmatprep.mubr.msk.f32.mxu0 %vm8086_vm1, %v8085_v6  ;;  %7393 = vmatpush3.msra.mxu0 %v6346_v4 }
0x1c15   : > { %7394 = vmatprep.subr.mxu0 %v8085_v6 }
0x1c16   : > { %7395 = vmatpush3.msra.mxu0 %v6345_v5 }
0x1c17   : > { %7396 = vmatprep.subr.mxu0 %v8085_v6 }
0x1c18   : > { %7397 = vmatpush3.msra.mxu0 %v6344_v7 }
0x1c19   : > { %7398 = vmatprep.subr.mxu0 %v8085_v6  ;;  %v6789_v6 = vld [vmem:[%s9565_s6] ss:$0 sm:$0xff] }
0x1c1a   : > { %7399 = vmatpush3.msra.mxu0 %v6343_v8 }
0x1cd3   : > { %v6216_v53 = vpop.f32.mrf.mxu0 }
0x1cd4   : > { %v6217_v54 = vadd.f32 %v6775_v52, %v6216_v53 }
0x1cd5   : > { %v7372_v55 = vpop.f32.mrf.mxu0 }
0x1cd6   : > { %v6220_v56 = vmax.f32 %v6217_v54, 0.0 }
0x1cd8   : > { %7390 = vmatmul.mubr.msk.f32.vlgmr.msra.gmra.mxu1 %vm2637_vm13, %v6220_v56 }
0x1d98   : > { %v6307_v21 = vpop.f32.mrf.mxu1 }
0x1d99   : > { %v6308_v27 = vadd.f32 %v6785_v57, %v6307_v21 }
0x1d9a   : > { %v7391_v58 = vpop.f32.mrf.mxu1 }
0x1d9b   : > { %v6311_v59 = vadd.f32 %v6308_v27, %v6133_v48 }
0x1d9d   : > { %v6316_v61 = vsel %vm777_vm0, %v6311_v59, 0.0 }
0x1d9e   : > { %6317 = vadd.xlane.f32.xlu0 %v6316_v61 }
0x1e27   : > { %v6318_v62 = vpop.xlane.xlu0 %6317 }
0x1e28   : > { %v6319_v63 = vmul.f32 0.03125, %v6318_v62 }
0x1e2a   : > { %v6320_v0 = vsub.f32 %v6311_v59, %v6319_v63 }
0x1e2c   : > { %v6321_v2 = vmul.f32 %v6320_v0, %v6320_v0 }
0x1e2e   : > { %v6322_v3 = vsel %vm777_vm0, %v6321_v2, 0.0 }
0x1e2f   : > { %6323 = vadd.xlane.f32.xlu1 %v6322_v3 }
0x1eb8   : > { %v6324_v9 = vpop.xlane.xlu1 %6323 }
0x1eb9   : > { %v6325_v10 = vmul.f32 0.03125, %v6324_v9 }
0x1ebb   : > { %v6326_v11 = vadd.f32 1e-05, %v6325_v10 }
0x1ebd   : > { %7694 = vrsqrt.f32 %v6326_v11 }
0x1eca   : > { %v7695_v12 = vpop.eup %7694 }
0x1ecb   : > { %v6328_v47 = vmul.f32 %v7695_v12, %v6320_v0 }
0x1ecd   : > { %v6335_v14 = vmul.f32 %v6787_v42, %v6328_v47 }
0x1ecf   : > { %v6342_v15 = vadd.f32 %v6788_v13, %v6335_v14 }
0x1ed1   : > { %7401 = vmatmul.mubr.msk.f32.vlgmr.msra.gmra.mxu0 %vm777_vm0, %v6342_v15 }
0x1f91   : > { %v6423_v16 = vpop.f32.mrf.mxu0 }
0x1f92   : > { %v6424_v17 = vadd.f32 %v6789_v6, %v6423_v16 }
0x1f93   : > { %v7402_v18 = vpop.f32.mrf.mxu0 }
0x1f94   : > { %6428 = vst.msk [vmem:[%s763_s0] sm:$0xff] %vm6427_vm14, %v6424_v17 }
0x1f95   : > { %7997 = shalt.err (!%p7994_p0)
}
0x1f96   : > { %s7998_s29 = scalar_lea.hbm %s9324_s25, 128  ;;  %s8002_s14 = scalar_lea.hbm %s9566_s10, 256 }
0x1f97   : > { %p7999_p7 = scmp.ne.s32.totalorder %s9324_s25, %s7998_s29  ;;  %p8003_p9 = scmp.lt.s32.totalorder %s9324_s25, %s9566_s10 }
0x1f98   : > { %p8004_p11 = scmp.lt.s32.totalorder %s8002_s14, %s7998_s29 }
0x1f99   : > { %p8000_p5 = pnand %p7999_p7, %p9567_p8 }
0x1f9a   : > { %p8005_p12 = por %p8004_p11, %p8003_p9 }
0x1f9b   : > { %p8001_p10 = pneg %p8000_p5 }
0x1f9d   : > { %p8006_p2 = pnand %p8005_p12, %p8001_p10 }
0x1f9f   : > { %8009 = shalt.err (!%p8006_p2)
}
0x1fa0   : > { %7445 = dma.vmem_to_hbm [thread:$0]  (%p9567_p8), %s6444_s30, 128, %s9324_s25, %s6430_s1  }
0x1fa1 PF: > { %s9568_s24 = sld [smem:[#allocation30_spill]] }
0x1fa2   : > { %s9569_s9 = sld [smem:[#allocation38_spill]] }
0x1fa3   : > { %s9570_s23 = sld [smem:[#allocation33_spill]] }
0x1fa7   : > { %s6455_s13 = sand.u32 1, %s9568_s24  }
0x1fa8   : > { %p9571_p1 = scmp.ne.s32.totalorder %s9569_s9, 0  ;;  %s6456_s18 = scalar_lea.sflag [#allocation6], %s6455_s13 }
0x1fa9   : > { %p9572_p3 = scmp.ge.s32.totalorder %s9570_s23, 2 }
0x1fab   : > { %p7483_p4 = pnand %p9572_p3, %p9571_p1 }
0x1fad   : > { %p7484_p6 = pneg %p7483_p4 }
0x1faf   : > { %8051 = dma.done.wait (%p7484_p6), %s6456_s18, 128  }
0x1fb0   : > { %8053 = vsyncadd (%p7484_p6), %s6456_s18, 4294967168  ;;  %s9573_s21 = sld [smem:[#allocation35_spill]] }
0x1fb1   : > { %s9574_s0 = sld [smem:[#allocation31_spill]] }
0x1fb2   : > { %s9575_s30 = sld [smem:[#allocation32_spill]] }
0x1fb3   : > { %s9576_s20 = sld [smem:[#allocation36_spill]] }
0x1fb6   : > { %p37_p13 = scmp.ge.s32.totalorder %s9573_s21, 4  }
0x1fb8   :  { %39 = sbr.rel (!%p37_p13) target bundleno = 28 (0x1c), region = 205 }
0x1fbd   :  { %6461 = vsyncpa [#allocation5], 1 }
0x1fbe   :  { %6463 = vsyncpa [#allocation5 + $0x1], 1 }
0x1fbf   :  { %6464 = vsyncpa [#allocation8], 1 }
0x1fc0   :  { %6465 = vsyncpa [#allocation11], 1 }
0x1fc1   :  { %6466 = vsyncpa [#allocation14], 1 }
0x1fc2   :  { %6467 = vsyncpa [#allocation17], 1 }
0x1fc3   :  { %6468 = vsyncpa [#allocation20], 1 }
0x1fc4   :  { %6469 = vsyncpa [#allocation6], 1 }
0x1fc5   :  { %6471 = vsyncpa [#allocation6 + $0x1], 1 }

</bundles_post_ra>
